<compile_context>
chip_gen: v7x
topology: tpu7x:2x2x1
jax: 0.10.0
libtpu: 0.0.40
codegen_flags: <defaults>
</compile_context>

<pallas_src>
import jax
import jax.numpy as jnp
import numpy as np
from jax import lax
from jax.experimental import pallas as pl
from jax.experimental.pallas import tpu as pltpu


def _for(n, body):
    """Run body(i) for i in range(n): unroll short loops, fori_loop otherwise."""
    if n <= 16:
        for i in range(n):
            body(i)
    else:
        def wrapped(i, carry):
            body(i)
            return carry
        lax.fori_loop(0, n, wrapped, 0)


def _encdec_lstm_kernel(x_ref, wcat0_ref, wcatr_ref, b_ref, wfc_ref, bfc_ref,
                        out_ref, state_ref, c_ref):
    T, B, I = x_ref.shape
    L, _, H = c_ref.shape
    TS, _, O = out_ref.shape
    SP = state_ref.shape[1] - L * H          # width of the layer-0 input slot

    # h0 = c0 = 0 and a zeroed input slot, as in the PyTorch forward.
    state_ref[...] = jnp.zeros(state_ref.shape, state_ref.dtype)
    c_ref[...] = jnp.zeros(c_ref.shape, c_ref.dtype)

    # ---- hoist loop-invariant loads / broadcasts out of the time loops ----
    w_cat = [wcat0_ref[...]] + [wcatr_ref[l - 1] for l in range(1, L)]
    win_lo = [0] + [SP + (l - 1) * H for l in range(1, L)]
    win_sz = [SP + H] + [2 * H] * (L - 1)
    biases = [jnp.broadcast_to(b_ref[l], (B, 4 * H)) for l in range(L)]
    w_fc = wfc_ref[...]
    b_fc = jnp.broadcast_to(bfc_ref[...], (B, O))

    def lstm_step():
        """One timestep through all L stacked layers; returns top-layer h."""
        h_new = None
        for l in range(L):
            lo = win_lo[l]
            inp = state_ref[:, lo:lo + win_sz[l]]      # [layer input | h_l]
            gates = jnp.dot(inp, w_cat[l],
                            preferred_element_type=jnp.float32) + biases[l]
            # full-width activations on the (B, 4H) slab, then slice gates
            sig = pl.reciprocal(1.0 + jnp.exp(-gates), approx=True)
            th = jnp.tanh(gates)
            i_g = sig[:, 0 * H:1 * H]
            f_g = sig[:, 1 * H:2 * H]
            g_g = th[:, 2 * H:3 * H]
            o_g = sig[:, 3 * H:4 * H]
            c_new = f_g * c_ref[l, :, :] + i_g * g_g
            h_new = o_g * jnp.tanh(c_new)
            c_ref[l, :, :] = c_new
            state_ref[:, SP + l * H:SP + (l + 1) * H] = h_new
        return h_new

    # ---- encoder: consume x, keep only (h, c) ----
    def enc_step(t):
        state_ref[:, 0:I] = x_ref[t]          # x_t into the fused-input slot
        lstm_step()
    _for(T, enc_step)

    # ---- decoder (eval branch): start from zeros, feed fc(out) back ----
    state_ref[:, 0:SP] = jnp.zeros((B, SP), jnp.float32)

    def dec_step(s):
        h_top = lstm_step()
        out = jnp.dot(h_top, w_fc, preferred_element_type=jnp.float32) + b_fc
        out_ref[s, :, :] = out
        state_ref[:, 0:O] = out               # feedback for next step (O == I)
    _for(TS, dec_step)
    # TODO(synk): training-mode branch (teacher forcing with y) is not implemented here.


def multivariate_lstm_forward(x, params, *, hidden_size, num_layers,
                              time_size, output_size):
    """Inference forward of MultivariateLSTM. x: (B, T, input_size) float32."""
    B, T, I = x.shape
    H = hidden_size
    L = num_layers
    O = output_size
    # The module's eval branch feeds fc(out) back into the LSTM input:
    assert O == I, "eval-path decoder requires output_size == input_size"

    SP = ((I + 7) // 8) * 8   # pad the input slot so the fused weight rows are 8-aligned

    # ---- plain-JAX glue: pack fused per-layer weights [W_ih^T ; W_hh^T] ----
    w_ih0, w_hh0, b_ih0, b_hh0 = params["lstm"][0]
    wih0_t = jnp.transpose(w_ih0)                                      # (I, 4H)
    if SP > I:
        wih0_t = jnp.concatenate(
            [wih0_t, jnp.zeros((SP - I, 4 * H), wih0_t.dtype)], axis=0)
    wcat0 = jnp.concatenate([wih0_t, jnp.transpose(w_hh0)], axis=0)    # (SP+H, 4H)
    biases = [(b_ih0 + b_hh0)[None, :]]

    wcat_r = []
    for l in range(1, L):
        w_ih, w_hh, b_ih, b_hh = params["lstm"][l]
        wcat_r.append(jnp.concatenate(
            [jnp.transpose(w_ih), jnp.transpose(w_hh)], axis=0))       # (2H, 4H)
        biases.append((b_ih + b_hh)[None, :])
    wcat_r = (jnp.stack(wcat_r) if wcat_r
              else jnp.zeros((1, 2 * H, 4 * H), jnp.float32))          # (L-1, 2H, 4H)
    bias = jnp.stack(biases)                                           # (L, 1, 4H)

    wfc = jnp.transpose(params["fc_w"])                                # (H, O)
    bfc = params["fc_b"][None, :]                                      # (1, O)

    x_tm = jnp.transpose(x.astype(jnp.float32), (1, 0, 2))             # (T, B, I)

    vmem = pl.BlockSpec(memory_space=pltpu.MemorySpace.VMEM)
    out_tm = pl.pallas_call(
        _encdec_lstm_kernel,
        out_shape=jax.ShapeDtypeStruct((time_size, B, O), jnp.float32),
        in_specs=[vmem] * 6,
        out_specs=vmem,
        scratch_shapes=[pltpu.VMEM((B, SP + L * H), jnp.float32),  # [x | h_0..h_{L-1}]
                        pltpu.VMEM((L, B, H), jnp.float32)],       # cell states c_l
    )(x_tm, wcat0, wcat_r, bias, wfc, bfc)
    return jnp.transpose(out_tm, (1, 0, 2))                            # (B, TS, O)


def _numpy_reference(x, params, *, hidden_size, num_layers, time_size):
    def sigmoid(z):
        return 1.0 / (1.0 + np.exp(-z))

    lstm = [[np.asarray(a, np.float32) for a in layer] for layer in params["lstm"]]
    fc_w = np.asarray(params["fc_w"], np.float32)
    fc_b = np.asarray(params["fc_b"], np.float32)
    x = np.asarray(x, np.float32)
    B, T, I = x.shape
    H = hidden_size
    h = np.zeros((num_layers, B, H), np.float32)
    c = np.zeros((num_layers, B, H), np.float32)

    def step(x_in):
        inp = x_in
        for l in range(num_layers):
            w_ih, w_hh, b_ih, b_hh = lstm[l]
            gates = inp @ w_ih.T + b_ih + h[l] @ w_hh.T + b_hh
            i = sigmoid(gates[:, 0 * H:1 * H])
            f = sigmoid(gates[:, 1 * H:2 * H])
            g = np.tanh(gates[:, 2 * H:3 * H])
            o = sigmoid(gates[:, 3 * H:4 * H])
            c[l] = f * c[l] + i * g
            h[l] = o * np.tanh(c[l])
            inp = h[l]
        return h[num_layers - 1]

    for t in range(T):
        step(x[:, t, :])
    dec = np.zeros((B, I), np.float32)
    outs = []
    for _ in range(time_size):
        top = step(dec)
        out = top @ fc_w.T + fc_b
        outs.append(out)
        dec = out
    return np.stack(outs, axis=1)


if __name__ == "__main__":
    # small shapes consistent with the module; output_size == input_size is
    # required by the module's eval branch (fc output is fed back into the LSTM).
    input_size, hidden_size, output_size = 8, 32, 8
    num_layers, time_size = 2, 4
    B, T = 2, 6

    key = jax.random.PRNGKey(0)
    n_keys = 4 * num_layers + 3
    keys = jax.random.split(key, n_keys)
    k = 1.0 / np.sqrt(hidden_size)

    lstm_params = []
    ki = 0
    for l in range(num_layers):
        in_dim = input_size if l == 0 else hidden_size
        w_ih = jax.random.uniform(keys[ki], (4 * hidden_size, in_dim),
                                  jnp.float32, -k, k); ki += 1
        w_hh = jax.random.uniform(keys[ki], (4 * hidden_size, hidden_size),
                                  jnp.float32, -k, k); ki += 1
        b_ih = jax.random.uniform(keys[ki], (4 * hidden_size,),
                                  jnp.float32, -k, k); ki += 1
        b_hh = jax.random.uniform(keys[ki], (4 * hidden_size,),
                                  jnp.float32, -k, k); ki += 1
        lstm_params.append((w_ih, w_hh, b_ih, b_hh))
    fc_w = jax.random.uniform(keys[ki], (output_size, hidden_size),
                              jnp.float32, -k, k); ki += 1
    fc_b = jax.random.uniform(keys[ki], (output_size,),
                              jnp.float32, -k, k); ki += 1
    x = jax.random.normal(keys[ki], (B, T, input_size), jnp.float32)

    params = {"lstm": lstm_params, "fc_w": fc_w, "fc_b": fc_b}

    out = multivariate_lstm_forward(
        x, params, hidden_size=hidden_size, num_layers=num_layers,
        time_size=time_size, output_size=output_size)
    out = jax.block_until_ready(out)

    ref = _numpy_reference(x, params, hidden_size=hidden_size,
                           num_layers=num_layers, time_size=time_size)
    assert out.shape == (B, time_size, output_size), out.shape
    np.testing.assert_allclose(np.asarray(out), ref, rtol=5e-2, atol=5e-2)
    print("KERNEL_OK")
</pallas_src>

<mosaic_0001>
module attributes {stable_mosaic.version = 11 : i64} {
  func.func @_encdec_lstm_kernel(%arg0: memref<6x2x8xf32, #tpu.memory_space<vmem>>, %arg1: memref<40x128xf32, #tpu.memory_space<vmem>>, %arg2: memref<1x64x128xf32, #tpu.memory_space<vmem>>, %arg3: memref<2x1x128xf32, #tpu.memory_space<vmem>>, %arg4: memref<32x8xf32, #tpu.memory_space<vmem>>, %arg5: memref<1x8xf32, #tpu.memory_space<vmem>>, %arg6: memref<4x2x8xf32, #tpu.memory_space<vmem>>, %arg7: memref<2x72xf32, #tpu.memory_space<vmem>>, %arg8: memref<2x2x32xf32, #tpu.memory_space<vmem>>) attributes {dimension_semantics = [], scalar_prefetch = 0 : i64, scratch_operands = 2 : i64, tpu.core_type = #tpu.core_type<tc>} {
    %cst = arith.constant 0.000000e+00 : f32
    %0 = vector.broadcast %cst : f32 to vector<2x72xf32>
    %c0 = arith.constant 0 : index
    %c0_0 = arith.constant 0 : index
    %1 = vector.load %arg7[%c0, %c0_0] : memref<2x72xf32, #tpu.memory_space<vmem>>, vector<2x72xf32>
    tpu.vector_store %arg7[%c0, %c0_0], %0 {strides = array<i32>} : memref<2x72xf32, #tpu.memory_space<vmem>>, vector<2x72xf32>,
    %cst_1 = arith.constant 0.000000e+00 : f32
    %2 = vector.broadcast %cst_1 : f32 to vector<2x2x32xf32>
    %c0_2 = arith.constant 0 : index
    %c0_3 = arith.constant 0 : index
    %c0_4 = arith.constant 0 : index
    %3 = vector.load %arg8[%c0_2, %c0_3, %c0_4] : memref<2x2x32xf32, #tpu.memory_space<vmem>>, vector<2x2x32xf32>
    tpu.vector_store %arg8[%c0_2, %c0_3, %c0_4], %2 {strides = array<i32>} : memref<2x2x32xf32, #tpu.memory_space<vmem>>, vector<2x2x32xf32>,
    %c0_5 = arith.constant 0 : index
    %c0_6 = arith.constant 0 : index
    %4 = vector.load %arg1[%c0_5, %c0_6] : memref<40x128xf32, #tpu.memory_space<vmem>>, vector<40x128xf32>
    %c0_7 = arith.constant 0 : index
    %c0_8 = arith.constant 0 : index
    %c0_9 = arith.constant 0 : index
    %5 = vector.load %arg2[%c0_7, %c0_8, %c0_9] : memref<1x64x128xf32, #tpu.memory_space<vmem>>, vector<1x64x128xf32>
    %6 = vector.shape_cast %5 : vector<1x64x128xf32> to vector<64x128xf32>
    %c0_10 = arith.constant 0 : index
    %c0_11 = arith.constant 0 : index
    %c0_12 = arith.constant 0 : index
    %7 = vector.load %arg3[%c0_10, %c0_11, %c0_12] : memref<2x1x128xf32, #tpu.memory_space<vmem>>, vector<1x1x128xf32>
    %8 = vector.shape_cast %7 : vector<1x1x128xf32> to vector<1x128xf32>
    %9 = vector.shape_cast %8 : vector<1x128xf32> to vector<1x128xf32>
    %10 = vector.broadcast %9 : vector<1x128xf32> to vector<2x128xf32>
    %c1 = arith.constant 1 : index
    %c0_13 = arith.constant 0 : index
    %c0_14 = arith.constant 0 : index
    %11 = vector.load %arg3[%c1, %c0_13, %c0_14] : memref<2x1x128xf32, #tpu.memory_space<vmem>>, vector<1x1x128xf32>
    %12 = vector.shape_cast %11 : vector<1x1x128xf32> to vector<1x128xf32>
    %13 = vector.shape_cast %12 : vector<1x128xf32> to vector<1x128xf32>
    %14 = vector.broadcast %13 : vector<1x128xf32> to vector<2x128xf32>
    %c0_15 = arith.constant 0 : index
    %c0_16 = arith.constant 0 : index
    %15 = vector.load %arg4[%c0_15, %c0_16] : memref<32x8xf32, #tpu.memory_space<vmem>>, vector<32x8xf32>
    %c0_17 = arith.constant 0 : index
    %c0_18 = arith.constant 0 : index
    %16 = vector.load %arg5[%c0_17, %c0_18] : memref<1x8xf32, #tpu.memory_space<vmem>>, vector<1x8xf32>
    %17 = vector.shape_cast %16 : vector<1x8xf32> to vector<1x8xf32>
    %18 = vector.broadcast %17 : vector<1x8xf32> to vector<2x8xf32>
    %c0_19 = arith.constant 0 : index
    %c0_20 = arith.constant 0 : index
    %c0_21 = arith.constant 0 : index
    %19 = vector.load %arg0[%c0_19, %c0_20, %c0_21] : memref<6x2x8xf32, #tpu.memory_space<vmem>>, vector<1x2x8xf32>
    %20 = vector.shape_cast %19 : vector<1x2x8xf32> to vector<2x8xf32>
    %c0_22 = arith.constant 0 : index
    %c0_23 = arith.constant 0 : index
    %21 = vector.load %arg7[%c0_22, %c0_23] : memref<2x72xf32, #tpu.memory_space<vmem>>, vector<2x8xf32>
    tpu.vector_store %arg7[%c0_22, %c0_23], %20 {strides = array<i32>} : memref<2x72xf32, #tpu.memory_space<vmem>>, vector<2x8xf32>,
    %c0_24 = arith.constant 0 : index
    %c0_25 = arith.constant 0 : index
    %22 = vector.load %arg7[%c0_24, %c0_25] : memref<2x72xf32, #tpu.memory_space<vmem>>, vector<2x40xf32>
    %cst_26 = arith.constant dense<0.000000e+00> : vector<2x128xf32>
    %23 = tpu.matmul %22, %4, %cst_26 {dimension_numbers = #tpu.dot_dimension_numbers<[1], [0], [0], [1], [0, 0, 1, 1], [], []>} : vector<2x40xf32>, vector<40x128xf32>, vector<2x128xf32> -> vector<2x128xf32>
    %24 = arith.addf %23, %10 : vector<2x128xf32>
    %cst_27 = arith.constant 0.000000e+00 : f32
    %25 = vector.broadcast %cst_27 : f32 to vector<2x128xf32>
    %26 = arith.subf %25, %24 : vector<2x128xf32>
    %27 = math.exp %26 : vector<2x128xf32>
    %cst_28 = arith.constant 1.000000e+00 : f32
    %28 = vector.broadcast %cst_28 : f32 to vector<2x128xf32>
    %29 = arith.addf %28, %27 : vector<2x128xf32>
    %30 = tpu.reciprocal %29 {approx = true} : vector<2x128xf32> -> vector<2x128xf32>
    %31 = math.tanh %24 : vector<2x128xf32>
    %32 = vector.extract_strided_slice %30 {offsets = [0, 0], sizes = [2, 32], strides = [1, 1]} : vector<2x128xf32> to vector<2x32xf32>
    %33 = vector.extract_strided_slice %30 {offsets = [0, 32], sizes = [2, 32], strides = [1, 1]} : vector<2x128xf32> to vector<2x32xf32>
    %34 = vector.extract_strided_slice %31 {offsets = [0, 64], sizes = [2, 32], strides = [1, 1]} : vector<2x128xf32> to vector<2x32xf32>
    %35 = vector.extract_strided_slice %30 {offsets = [0, 96], sizes = [2, 32], strides = [1, 1]} : vector<2x128xf32> to vector<2x32xf32>
    %c0_29 = arith.constant 0 : index
    %c0_30 = arith.constant 0 : index
    %c0_31 = arith.constant 0 : index
    %36 = vector.load %arg8[%c0_29, %c0_30, %c0_31] : memref<2x2x32xf32, #tpu.memory_space<vmem>>, vector<1x2x32xf32>
    %37 = vector.shape_cast %36 : vector<1x2x32xf32> to vector<2x32xf32>
    %38 = arith.mulf %33, %37 : vector<2x32xf32>
    %39 = arith.mulf %32, %34 : vector<2x32xf32>
    %40 = arith.addf %38, %39 : vector<2x32xf32>
    %41 = math.tanh %40 : vector<2x32xf32>
    %42 = arith.mulf %35, %41 : vector<2x32xf32>
    %c0_32 = arith.constant 0 : index
    %c0_33 = arith.constant 0 : index
    %c0_34 = arith.constant 0 : index
    %43 = vector.load %arg8[%c0_32, %c0_33, %c0_34] : memref<2x2x32xf32, #tpu.memory_space<vmem>>, vector<1x2x32xf32>
    %44 = vector.shape_cast %43 : vector<1x2x32xf32> to vector<2x32xf32>
    %45 = vector.shape_cast %40 : vector<2x32xf32> to vector<1x2x32xf32>
    tpu.vector_store %arg8[%c0_32, %c0_33, %c0_34], %45 {strides = array<i32>} : memref<2x2x32xf32, #tpu.memory_space<vmem>>, vector<1x2x32xf32>,
    %c0_35 = arith.constant 0 : index
    %c8 = arith.constant 8 : index
    %46 = vector.load %arg7[%c0_35, %c8] : memref<2x72xf32, #tpu.memory_space<vmem>>, vector<2x32xf32>
    tpu.vector_store %arg7[%c0_35, %c8], %42 {strides = array<i32>} : memref<2x72xf32, #tpu.memory_space<vmem>>, vector<2x32xf32>,
    %c0_36 = arith.constant 0 : index
    %c8_37 = arith.constant 8 : index
    %47 = vector.load %arg7[%c0_36, %c8_37] : memref<2x72xf32, #tpu.memory_space<vmem>>, vector<2x64xf32>
    %cst_38 = arith.constant dense<0.000000e+00> : vector<2x128xf32>
    %48 = tpu.matmul %47, %6, %cst_38 {dimension_numbers = #tpu.dot_dimension_numbers<[1], [0], [0], [1], [0, 0, 1, 1], [], []>} : vector<2x64xf32>, vector<64x128xf32>, vector<2x128xf32> -> vector<2x128xf32>
    %49 = arith.addf %48, %14 : vector<2x128xf32>
    %cst_39 = arith.constant 0.000000e+00 : f32
    %50 = vector.broadcast %cst_39 : f32 to vector<2x128xf32>
    %51 = arith.subf %50, %49 : vector<2x128xf32>
    %52 = math.exp %51 : vector<2x128xf32>
    %cst_40 = arith.constant 1.000000e+00 : f32
    %53 = vector.broadcast %cst_40 : f32 to vector<2x128xf32>
    %54 = arith.addf %53, %52 : vector<2x128xf32>
    %55 = tpu.reciprocal %54 {approx = true} : vector<2x128xf32> -> vector<2x128xf32>
    %56 = math.tanh %49 : vector<2x128xf32>
    %57 = vector.extract_strided_slice %55 {offsets = [0, 0], sizes = [2, 32], strides = [1, 1]} : vector<2x128xf32> to vector<2x32xf32>
    %58 = vector.extract_strided_slice %55 {offsets = [0, 32], sizes = [2, 32], strides = [1, 1]} : vector<2x128xf32> to vector<2x32xf32>
    %59 = vector.extract_strided_slice %56 {offsets = [0, 64], sizes = [2, 32], strides = [1, 1]} : vector<2x128xf32> to vector<2x32xf32>
    %60 = vector.extract_strided_slice %55 {offsets = [0, 96], sizes = [2, 32], strides = [1, 1]} : vector<2x128xf32> to vector<2x32xf32>
    %c1_41 = arith.constant 1 : index
    %c0_42 = arith.constant 0 : index
    %c0_43 = arith.constant 0 : index
    %61 = vector.load %arg8[%c1_41, %c0_42, %c0_43] : memref<2x2x32xf32, #tpu.memory_space<vmem>>, vector<1x2x32xf32>
    %62 = vector.shape_cast %61 : vector<1x2x32xf32> to vector<2x32xf32>
    %63 = arith.mulf %58, %62 : vector<2x32xf32>
    %64 = arith.mulf %57, %59 : vector<2x32xf32>
    %65 = arith.addf %63, %64 : vector<2x32xf32>
    %66 = math.tanh %65 : vector<2x32xf32>
    %67 = arith.mulf %60, %66 : vector<2x32xf32>
    %c1_44 = arith.constant 1 : index
    %c0_45 = arith.constant 0 : index
    %c0_46 = arith.constant 0 : index
    %68 = vector.load %arg8[%c1_44, %c0_45, %c0_46] : memref<2x2x32xf32, #tpu.memory_space<vmem>>, vector<1x2x32xf32>
    %69 = vector.shape_cast %68 : vector<1x2x32xf32> to vector<2x32xf32>
    %70 = vector.shape_cast %65 : vector<2x32xf32> to vector<1x2x32xf32>
    tpu.vector_store %arg8[%c1_44, %c0_45, %c0_46], %70 {strides = array<i32>} : memref<2x2x32xf32, #tpu.memory_space<vmem>>, vector<1x2x32xf32>,
    %c0_47 = arith.constant 0 : index
    %c40 = arith.constant 40 : index
    %71 = vector.load %arg7[%c0_47, %c40] : memref<2x72xf32, #tpu.memory_space<vmem>>, vector<2x32xf32>
    tpu.vector_store %arg7[%c0_47, %c40], %67 {strides = array<i32>} : memref<2x72xf32, #tpu.memory_space<vmem>>, vector<2x32xf32>,
    %c1_48 = arith.constant 1 : index
    %c0_49 = arith.constant 0 : index
    %c0_50 = arith.constant 0 : index
    %72 = vector.load %arg0[%c1_48, %c0_49, %c0_50] : memref<6x2x8xf32, #tpu.memory_space<vmem>>, vector<1x2x8xf32>
    %73 = vector.shape_cast %72 : vector<1x2x8xf32> to vector<2x8xf32>
    %c0_51 = arith.constant 0 : index
    %c0_52 = arith.constant 0 : index
    %74 = vector.load %arg7[%c0_51, %c0_52] : memref<2x72xf32, #tpu.memory_space<vmem>>, vector<2x8xf32>
    tpu.vector_store %arg7[%c0_51, %c0_52], %73 {strides = array<i32>} : memref<2x72xf32, #tpu.memory_space<vmem>>, vector<2x8xf32>,
    %c0_53 = arith.constant 0 : index
    %c0_54 = arith.constant 0 : index
    %75 = vector.load %arg7[%c0_53, %c0_54] : memref<2x72xf32, #tpu.memory_space<vmem>>, vector<2x40xf32>
    %cst_55 = arith.constant dense<0.000000e+00> : vector<2x128xf32>
    %76 = tpu.matmul %75, %4, %cst_55 {dimension_numbers = #tpu.dot_dimension_numbers<[1], [0], [0], [1], [0, 0, 1, 1], [], []>} : vector<2x40xf32>, vector<40x128xf32>, vector<2x128xf32> -> vector<2x128xf32>
    %77 = arith.addf %76, %10 : vector<2x128xf32>
    %cst_56 = arith.constant 0.000000e+00 : f32
    %78 = vector.broadcast %cst_56 : f32 to vector<2x128xf32>
    %79 = arith.subf %78, %77 : vector<2x128xf32>
    %80 = math.exp %79 : vector<2x128xf32>
    %cst_57 = arith.constant 1.000000e+00 : f32
    %81 = vector.broadcast %cst_57 : f32 to vector<2x128xf32>
    %82 = arith.addf %81, %80 : vector<2x128xf32>
    %83 = tpu.reciprocal %82 {approx = true} : vector<2x128xf32> -> vector<2x128xf32>
    %84 = math.tanh %77 : vector<2x128xf32>
    %85 = vector.extract_strided_slice %83 {offsets = [0, 0], sizes = [2, 32], strides = [1, 1]} : vector<2x128xf32> to vector<2x32xf32>
    %86 = vector.extract_strided_slice %83 {offsets = [0, 32], sizes = [2, 32], strides = [1, 1]} : vector<2x128xf32> to vector<2x32xf32>
    %87 = vector.extract_strided_slice %84 {offsets = [0, 64], sizes = [2, 32], strides = [1, 1]} : vector<2x128xf32> to vector<2x32xf32>
    %88 = vector.extract_strided_slice %83 {offsets = [0, 96], sizes = [2, 32], strides = [1, 1]} : vector<2x128xf32> to vector<2x32xf32>
    %c0_58 = arith.constant 0 : index
    %c0_59 = arith.constant 0 : index
    %c0_60 = arith.constant 0 : index
    %89 = vector.load %arg8[%c0_58, %c0_59, %c0_60] : memref<2x2x32xf32, #tpu.memory_space<vmem>>, vector<1x2x32xf32>
    %90 = vector.shape_cast %89 : vector<1x2x32xf32> to vector<2x32xf32>
    %91 = arith.mulf %86, %90 : vector<2x32xf32>
    %92 = arith.mulf %85, %87 : vector<2x32xf32>
    %93 = arith.addf %91, %92 : vector<2x32xf32>
    %94 = math.tanh %93 : vector<2x32xf32>
    %95 = arith.mulf %88, %94 : vector<2x32xf32>
    %c0_61 = arith.constant 0 : index
    %c0_62 = arith.constant 0 : index
    %c0_63 = arith.constant 0 : index
    %96 = vector.load %arg8[%c0_61, %c0_62, %c0_63] : memref<2x2x32xf32, #tpu.memory_space<vmem>>, vector<1x2x32xf32>
    %97 = vector.shape_cast %96 : vector<1x2x32xf32> to vector<2x32xf32>
    %98 = vector.shape_cast %93 : vector<2x32xf32> to vector<1x2x32xf32>
    tpu.vector_store %arg8[%c0_61, %c0_62, %c0_63], %98 {strides = array<i32>} : memref<2x2x32xf32, #tpu.memory_space<vmem>>, vector<1x2x32xf32>,
    %c0_64 = arith.constant 0 : index
    %c8_65 = arith.constant 8 : index
    %99 = vector.load %arg7[%c0_64, %c8_65] : memref<2x72xf32, #tpu.memory_space<vmem>>, vector<2x32xf32>
    tpu.vector_store %arg7[%c0_64, %c8_65], %95 {strides = array<i32>} : memref<2x72xf32, #tpu.memory_space<vmem>>, vector<2x32xf32>,
    %c0_66 = arith.constant 0 : index
    %c8_67 = arith.constant 8 : index
    %100 = vector.load %arg7[%c0_66, %c8_67] : memref<2x72xf32, #tpu.memory_space<vmem>>, vector<2x64xf32>
    %cst_68 = arith.constant dense<0.000000e+00> : vector<2x128xf32>
    %101 = tpu.matmul %100, %6, %cst_68 {dimension_numbers = #tpu.dot_dimension_numbers<[1], [0], [0], [1], [0, 0, 1, 1], [], []>} : vector<2x64xf32>, vector<64x128xf32>, vector<2x128xf32> -> vector<2x128xf32>
    %102 = arith.addf %101, %14 : vector<2x128xf32>
    %cst_69 = arith.constant 0.000000e+00 : f32
    %103 = vector.broadcast %cst_69 : f32 to vector<2x128xf32>
    %104 = arith.subf %103, %102 : vector<2x128xf32>
    %105 = math.exp %104 : vector<2x128xf32>
    %cst_70 = arith.constant 1.000000e+00 : f32
    %106 = vector.broadcast %cst_70 : f32 to vector<2x128xf32>
    %107 = arith.addf %106, %105 : vector<2x128xf32>
    %108 = tpu.reciprocal %107 {approx = true} : vector<2x128xf32> -> vector<2x128xf32>
    %109 = math.tanh %102 : vector<2x128xf32>
    %110 = vector.extract_strided_slice %108 {offsets = [0, 0], sizes = [2, 32], strides = [1, 1]} : vector<2x128xf32> to vector<2x32xf32>
    %111 = vector.extract_strided_slice %108 {offsets = [0, 32], sizes = [2, 32], strides = [1, 1]} : vector<2x128xf32> to vector<2x32xf32>
    %112 = vector.extract_strided_slice %109 {offsets = [0, 64], sizes = [2, 32], strides = [1, 1]} : vector<2x128xf32> to vector<2x32xf32>
    %113 = vector.extract_strided_slice %108 {offsets = [0, 96], sizes = [2, 32], strides = [1, 1]} : vector<2x128xf32> to vector<2x32xf32>
    %c1_71 = arith.constant 1 : index
    %c0_72 = arith.constant 0 : index
    %c0_73 = arith.constant 0 : index
    %114 = vector.load %arg8[%c1_71, %c0_72, %c0_73] : memref<2x2x32xf32, #tpu.memory_space<vmem>>, vector<1x2x32xf32>
    %115 = vector.shape_cast %114 : vector<1x2x32xf32> to vector<2x32xf32>
    %116 = arith.mulf %111, %115 : vector<2x32xf32>
    %117 = arith.mulf %110, %112 : vector<2x32xf32>
    %118 = arith.addf %116, %117 : vector<2x32xf32>
    %119 = math.tanh %118 : vector<2x32xf32>
    %120 = arith.mulf %113, %119 : vector<2x32xf32>
    %c1_74 = arith.constant 1 : index
    %c0_75 = arith.constant 0 : index
    %c0_76 = arith.constant 0 : index
    %121 = vector.load %arg8[%c1_74, %c0_75, %c0_76] : memref<2x2x32xf32, #tpu.memory_space<vmem>>, vector<1x2x32xf32>
    %122 = vector.shape_cast %121 : vector<1x2x32xf32> to vector<2x32xf32>
    %123 = vector.shape_cast %118 : vector<2x32xf32> to vector<1x2x32xf32>
    tpu.vector_store %arg8[%c1_74, %c0_75, %c0_76], %123 {strides = array<i32>} : memref<2x2x32xf32, #tpu.memory_space<vmem>>, vector<1x2x32xf32>,
    %c0_77 = arith.constant 0 : index
    %c40_78 = arith.constant 40 : index
    %124 = vector.load %arg7[%c0_77, %c40_78] : memref<2x72xf32, #tpu.memory_space<vmem>>, vector<2x32xf32>
    tpu.vector_store %arg7[%c0_77, %c40_78], %120 {strides = array<i32>} : memref<2x72xf32, #tpu.memory_space<vmem>>, vector<2x32xf32>,
    %c2 = arith.constant 2 : index
    %c0_79 = arith.constant 0 : index
    %c0_80 = arith.constant 0 : index
    %125 = vector.load %arg0[%c2, %c0_79, %c0_80] : memref<6x2x8xf32, #tpu.memory_space<vmem>>, vector<1x2x8xf32>
    %126 = vector.shape_cast %125 : vector<1x2x8xf32> to vector<2x8xf32>
    %c0_81 = arith.constant 0 : index
    %c0_82 = arith.constant 0 : index
    %127 = vector.load %arg7[%c0_81, %c0_82] : memref<2x72xf32, #tpu.memory_space<vmem>>, vector<2x8xf32>
    tpu.vector_store %arg7[%c0_81, %c0_82], %126 {strides = array<i32>} : memref<2x72xf32, #tpu.memory_space<vmem>>, vector<2x8xf32>,
    %c0_83 = arith.constant 0 : index
    %c0_84 = arith.constant 0 : index
    %128 = vector.load %arg7[%c0_83, %c0_84] : memref<2x72xf32, #tpu.memory_space<vmem>>, vector<2x40xf32>
    %cst_85 = arith.constant dense<0.000000e+00> : vector<2x128xf32>
    %129 = tpu.matmul %128, %4, %cst_85 {dimension_numbers = #tpu.dot_dimension_numbers<[1], [0], [0], [1], [0, 0, 1, 1], [], []>} : vector<2x40xf32>, vector<40x128xf32>, vector<2x128xf32> -> vector<2x128xf32>
    %130 = arith.addf %129, %10 : vector<2x128xf32>
    %cst_86 = arith.constant 0.000000e+00 : f32
    %131 = vector.broadcast %cst_86 : f32 to vector<2x128xf32>
    %132 = arith.subf %131, %130 : vector<2x128xf32>
    %133 = math.exp %132 : vector<2x128xf32>
    %cst_87 = arith.constant 1.000000e+00 : f32
    %134 = vector.broadcast %cst_87 : f32 to vector<2x128xf32>
    %135 = arith.addf %134, %133 : vector<2x128xf32>
    %136 = tpu.reciprocal %135 {approx = true} : vector<2x128xf32> -> vector<2x128xf32>
    %137 = math.tanh %130 : vector<2x128xf32>
    %138 = vector.extract_strided_slice %136 {offsets = [0, 0], sizes = [2, 32], strides = [1, 1]} : vector<2x128xf32> to vector<2x32xf32>
    %139 = vector.extract_strided_slice %136 {offsets = [0, 32], sizes = [2, 32], strides = [1, 1]} : vector<2x128xf32> to vector<2x32xf32>
    %140 = vector.extract_strided_slice %137 {offsets = [0, 64], sizes = [2, 32], strides = [1, 1]} : vector<2x128xf32> to vector<2x32xf32>
    %141 = vector.extract_strided_slice %136 {offsets = [0, 96], sizes = [2, 32], strides = [1, 1]} : vector<2x128xf32> to vector<2x32xf32>
    %c0_88 = arith.constant 0 : index
    %c0_89 = arith.constant 0 : index
    %c0_90 = arith.constant 0 : index
    %142 = vector.load %arg8[%c0_88, %c0_89, %c0_90] : memref<2x2x32xf32, #tpu.memory_space<vmem>>, vector<1x2x32xf32>
    %143 = vector.shape_cast %142 : vector<1x2x32xf32> to vector<2x32xf32>
    %144 = arith.mulf %139, %143 : vector<2x32xf32>
    %145 = arith.mulf %138, %140 : vector<2x32xf32>
    %146 = arith.addf %144, %145 : vector<2x32xf32>
    %147 = math.tanh %146 : vector<2x32xf32>
    %148 = arith.mulf %141, %147 : vector<2x32xf32>
    %c0_91 = arith.constant 0 : index
    %c0_92 = arith.constant 0 : index
    %c0_93 = arith.constant 0 : index
    %149 = vector.load %arg8[%c0_91, %c0_92, %c0_93] : memref<2x2x32xf32, #tpu.memory_space<vmem>>, vector<1x2x32xf32>
    %150 = vector.shape_cast %149 : vector<1x2x32xf32> to vector<2x32xf32>
    %151 = vector.shape_cast %146 : vector<2x32xf32> to vector<1x2x32xf32>
    tpu.vector_store %arg8[%c0_91, %c0_92, %c0_93], %151 {strides = array<i32>} : memref<2x2x32xf32, #tpu.memory_space<vmem>>, vector<1x2x32xf32>,
    %c0_94 = arith.constant 0 : index
    %c8_95 = arith.constant 8 : index
    %152 = vector.load %arg7[%c0_94, %c8_95] : memref<2x72xf32, #tpu.memory_space<vmem>>, vector<2x32xf32>
    tpu.vector_store %arg7[%c0_94, %c8_95], %148 {strides = array<i32>} : memref<2x72xf32, #tpu.memory_space<vmem>>, vector<2x32xf32>,
    %c0_96 = arith.constant 0 : index
    %c8_97 = arith.constant 8 : index
    %153 = vector.load %arg7[%c0_96, %c8_97] : memref<2x72xf32, #tpu.memory_space<vmem>>, vector<2x64xf32>
    %cst_98 = arith.constant dense<0.000000e+00> : vector<2x128xf32>
    %154 = tpu.matmul %153, %6, %cst_98 {dimension_numbers = #tpu.dot_dimension_numbers<[1], [0], [0], [1], [0, 0, 1, 1], [], []>} : vector<2x64xf32>, vector<64x128xf32>, vector<2x128xf32> -> vector<2x128xf32>
    %155 = arith.addf %154, %14 : vector<2x128xf32>
    %cst_99 = arith.constant 0.000000e+00 : f32
    %156 = vector.broadcast %cst_99 : f32 to vector<2x128xf32>
    %157 = arith.subf %156, %155 : vector<2x128xf32>
    %158 = math.exp %157 : vector<2x128xf32>
    %cst_100 = arith.constant 1.000000e+00 : f32
    %159 = vector.broadcast %cst_100 : f32 to vector<2x128xf32>
    %160 = arith.addf %159, %158 : vector<2x128xf32>
    %161 = tpu.reciprocal %160 {approx = true} : vector<2x128xf32> -> vector<2x128xf32>
    %162 = math.tanh %155 : vector<2x128xf32>
    %163 = vector.extract_strided_slice %161 {offsets = [0, 0], sizes = [2, 32], strides = [1, 1]} : vector<2x128xf32> to vector<2x32xf32>
    %164 = vector.extract_strided_slice %161 {offsets = [0, 32], sizes = [2, 32], strides = [1, 1]} : vector<2x128xf32> to vector<2x32xf32>
    %165 = vector.extract_strided_slice %162 {offsets = [0, 64], sizes = [2, 32], strides = [1, 1]} : vector<2x128xf32> to vector<2x32xf32>
    %166 = vector.extract_strided_slice %161 {offsets = [0, 96], sizes = [2, 32], strides = [1, 1]} : vector<2x128xf32> to vector<2x32xf32>
    %c1_101 = arith.constant 1 : index
    %c0_102 = arith.constant 0 : index
    %c0_103 = arith.constant 0 : index
    %167 = vector.load %arg8[%c1_101, %c0_102, %c0_103] : memref<2x2x32xf32, #tpu.memory_space<vmem>>, vector<1x2x32xf32>
    %168 = vector.shape_cast %167 : vector<1x2x32xf32> to vector<2x32xf32>
    %169 = arith.mulf %164, %168 : vector<2x32xf32>
    %170 = arith.mulf %163, %165 : vector<2x32xf32>
    %171 = arith.addf %169, %170 : vector<2x32xf32>
    %172 = math.tanh %171 : vector<2x32xf32>
    %173 = arith.mulf %166, %172 : vector<2x32xf32>
    %c1_104 = arith.constant 1 : index
    %c0_105 = arith.constant 0 : index
    %c0_106 = arith.constant 0 : index
    %174 = vector.load %arg8[%c1_104, %c0_105, %c0_106] : memref<2x2x32xf32, #tpu.memory_space<vmem>>, vector<1x2x32xf32>
    %175 = vector.shape_cast %174 : vector<1x2x32xf32> to vector<2x32xf32>
    %176 = vector.shape_cast %171 : vector<2x32xf32> to vector<1x2x32xf32>
    tpu.vector_store %arg8[%c1_104, %c0_105, %c0_106], %176 {strides = array<i32>} : memref<2x2x32xf32, #tpu.memory_space<vmem>>, vector<1x2x32xf32>,
    %c0_107 = arith.constant 0 : index
    %c40_108 = arith.constant 40 : index
    %177 = vector.load %arg7[%c0_107, %c40_108] : memref<2x72xf32, #tpu.memory_space<vmem>>, vector<2x32xf32>
    tpu.vector_store %arg7[%c0_107, %c40_108], %173 {strides = array<i32>} : memref<2x72xf32, #tpu.memory_space<vmem>>, vector<2x32xf32>,
    %c3 = arith.constant 3 : index
    %c0_109 = arith.constant 0 : index
    %c0_110 = arith.constant 0 : index
    %178 = vector.load %arg0[%c3, %c0_109, %c0_110] : memref<6x2x8xf32, #tpu.memory_space<vmem>>, vector<1x2x8xf32>
    %179 = vector.shape_cast %178 : vector<1x2x8xf32> to vector<2x8xf32>
    %c0_111 = arith.constant 0 : index
    %c0_112 = arith.constant 0 : index
    %180 = vector.load %arg7[%c0_111, %c0_112] : memref<2x72xf32, #tpu.memory_space<vmem>>, vector<2x8xf32>
    tpu.vector_store %arg7[%c0_111, %c0_112], %179 {strides = array<i32>} : memref<2x72xf32, #tpu.memory_space<vmem>>, vector<2x8xf32>,
    %c0_113 = arith.constant 0 : index
    %c0_114 = arith.constant 0 : index
    %181 = vector.load %arg7[%c0_113, %c0_114] : memref<2x72xf32, #tpu.memory_space<vmem>>, vector<2x40xf32>
    %cst_115 = arith.constant dense<0.000000e+00> : vector<2x128xf32>
    %182 = tpu.matmul %181, %4, %cst_115 {dimension_numbers = #tpu.dot_dimension_numbers<[1], [0], [0], [1], [0, 0, 1, 1], [], []>} : vector<2x40xf32>, vector<40x128xf32>, vector<2x128xf32> -> vector<2x128xf32>
    %183 = arith.addf %182, %10 : vector<2x128xf32>
    %cst_116 = arith.constant 0.000000e+00 : f32
    %184 = vector.broadcast %cst_116 : f32 to vector<2x128xf32>
    %185 = arith.subf %184, %183 : vector<2x128xf32>
    %186 = math.exp %185 : vector<2x128xf32>
    %cst_117 = arith.constant 1.000000e+00 : f32
    %187 = vector.broadcast %cst_117 : f32 to vector<2x128xf32>
    %188 = arith.addf %187, %186 : vector<2x128xf32>
    %189 = tpu.reciprocal %188 {approx = true} : vector<2x128xf32> -> vector<2x128xf32>
    %190 = math.tanh %183 : vector<2x128xf32>
    %191 = vector.extract_strided_slice %189 {offsets = [0, 0], sizes = [2, 32], strides = [1, 1]} : vector<2x128xf32> to vector<2x32xf32>
    %192 = vector.extract_strided_slice %189 {offsets = [0, 32], sizes = [2, 32], strides = [1, 1]} : vector<2x128xf32> to vector<2x32xf32>
    %193 = vector.extract_strided_slice %190 {offsets = [0, 64], sizes = [2, 32], strides = [1, 1]} : vector<2x128xf32> to vector<2x32xf32>
    %194 = vector.extract_strided_slice %189 {offsets = [0, 96], sizes = [2, 32], strides = [1, 1]} : vector<2x128xf32> to vector<2x32xf32>
    %c0_118 = arith.constant 0 : index
    %c0_119 = arith.constant 0 : index
    %c0_120 = arith.constant 0 : index
    %195 = vector.load %arg8[%c0_118, %c0_119, %c0_120] : memref<2x2x32xf32, #tpu.memory_space<vmem>>, vector<1x2x32xf32>
    %196 = vector.shape_cast %195 : vector<1x2x32xf32> to vector<2x32xf32>
    %197 = arith.mulf %192, %196 : vector<2x32xf32>
    %198 = arith.mulf %191, %193 : vector<2x32xf32>
    %199 = arith.addf %197, %198 : vector<2x32xf32>
    %200 = math.tanh %199 : vector<2x32xf32>
    %201 = arith.mulf %194, %200 : vector<2x32xf32>
    %c0_121 = arith.constant 0 : index
    %c0_122 = arith.constant 0 : index
    %c0_123 = arith.constant 0 : index
    %202 = vector.load %arg8[%c0_121, %c0_122, %c0_123] : memref<2x2x32xf32, #tpu.memory_space<vmem>>, vector<1x2x32xf32>
    %203 = vector.shape_cast %202 : vector<1x2x32xf32> to vector<2x32xf32>
    %204 = vector.shape_cast %199 : vector<2x32xf32> to vector<1x2x32xf32>
    tpu.vector_store %arg8[%c0_121, %c0_122, %c0_123], %204 {strides = array<i32>} : memref<2x2x32xf32, #tpu.memory_space<vmem>>, vector<1x2x32xf32>,
    %c0_124 = arith.constant 0 : index
    %c8_125 = arith.constant 8 : index
    %205 = vector.load %arg7[%c0_124, %c8_125] : memref<2x72xf32, #tpu.memory_space<vmem>>, vector<2x32xf32>
    tpu.vector_store %arg7[%c0_124, %c8_125], %201 {strides = array<i32>} : memref<2x72xf32, #tpu.memory_space<vmem>>, vector<2x32xf32>,
    %c0_126 = arith.constant 0 : index
    %c8_127 = arith.constant 8 : index
    %206 = vector.load %arg7[%c0_126, %c8_127] : memref<2x72xf32, #tpu.memory_space<vmem>>, vector<2x64xf32>
    %cst_128 = arith.constant dense<0.000000e+00> : vector<2x128xf32>
    %207 = tpu.matmul %206, %6, %cst_128 {dimension_numbers = #tpu.dot_dimension_numbers<[1], [0], [0], [1], [0, 0, 1, 1], [], []>} : vector<2x64xf32>, vector<64x128xf32>, vector<2x128xf32> -> vector<2x128xf32>
    %208 = arith.addf %207, %14 : vector<2x128xf32>
    %cst_129 = arith.constant 0.000000e+00 : f32
    %209 = vector.broadcast %cst_129 : f32 to vector<2x128xf32>
    %210 = arith.subf %209, %208 : vector<2x128xf32>
    %211 = math.exp %210 : vector<2x128xf32>
    %cst_130 = arith.constant 1.000000e+00 : f32
    %212 = vector.broadcast %cst_130 : f32 to vector<2x128xf32>
    %213 = arith.addf %212, %211 : vector<2x128xf32>
    %214 = tpu.reciprocal %213 {approx = true} : vector<2x128xf32> -> vector<2x128xf32>
    %215 = math.tanh %208 : vector<2x128xf32>
    %216 = vector.extract_strided_slice %214 {offsets = [0, 0], sizes = [2, 32], strides = [1, 1]} : vector<2x128xf32> to vector<2x32xf32>
    %217 = vector.extract_strided_slice %214 {offsets = [0, 32], sizes = [2, 32], strides = [1, 1]} : vector<2x128xf32> to vector<2x32xf32>
    %218 = vector.extract_strided_slice %215 {offsets = [0, 64], sizes = [2, 32], strides = [1, 1]} : vector<2x128xf32> to vector<2x32xf32>
    %219 = vector.extract_strided_slice %214 {offsets = [0, 96], sizes = [2, 32], strides = [1, 1]} : vector<2x128xf32> to vector<2x32xf32>
    %c1_131 = arith.constant 1 : index
    %c0_132 = arith.constant 0 : index
    %c0_133 = arith.constant 0 : index
    %220 = vector.load %arg8[%c1_131, %c0_132, %c0_133] : memref<2x2x32xf32, #tpu.memory_space<vmem>>, vector<1x2x32xf32>
    %221 = vector.shape_cast %220 : vector<1x2x32xf32> to vector<2x32xf32>
    %222 = arith.mulf %217, %221 : vector<2x32xf32>
    %223 = arith.mulf %216, %218 : vector<2x32xf32>
    %224 = arith.addf %222, %223 : vector<2x32xf32>
    %225 = math.tanh %224 : vector<2x32xf32>
    %226 = arith.mulf %219, %225 : vector<2x32xf32>
    %c1_134 = arith.constant 1 : index
    %c0_135 = arith.constant 0 : index
    %c0_136 = arith.constant 0 : index
    %227 = vector.load %arg8[%c1_134, %c0_135, %c0_136] : memref<2x2x32xf32, #tpu.memory_space<vmem>>, vector<1x2x32xf32>
    %228 = vector.shape_cast %227 : vector<1x2x32xf32> to vector<2x32xf32>
    %229 = vector.shape_cast %224 : vector<2x32xf32> to vector<1x2x32xf32>
    tpu.vector_store %arg8[%c1_134, %c0_135, %c0_136], %229 {strides = array<i32>} : memref<2x2x32xf32, #tpu.memory_space<vmem>>, vector<1x2x32xf32>,
    %c0_137 = arith.constant 0 : index
    %c40_138 = arith.constant 40 : index
    %230 = vector.load %arg7[%c0_137, %c40_138] : memref<2x72xf32, #tpu.memory_space<vmem>>, vector<2x32xf32>
    tpu.vector_store %arg7[%c0_137, %c40_138], %226 {strides = array<i32>} : memref<2x72xf32, #tpu.memory_space<vmem>>, vector<2x32xf32>,
    %c4 = arith.constant 4 : index
    %c0_139 = arith.constant 0 : index
    %c0_140 = arith.constant 0 : index
    %231 = vector.load %arg0[%c4, %c0_139, %c0_140] : memref<6x2x8xf32, #tpu.memory_space<vmem>>, vector<1x2x8xf32>
    %232 = vector.shape_cast %231 : vector<1x2x8xf32> to vector<2x8xf32>
    %c0_141 = arith.constant 0 : index
    %c0_142 = arith.constant 0 : index
    %233 = vector.load %arg7[%c0_141, %c0_142] : memref<2x72xf32, #tpu.memory_space<vmem>>, vector<2x8xf32>
    tpu.vector_store %arg7[%c0_141, %c0_142], %232 {strides = array<i32>} : memref<2x72xf32, #tpu.memory_space<vmem>>, vector<2x8xf32>,
    %c0_143 = arith.constant 0 : index
    %c0_144 = arith.constant 0 : index
    %234 = vector.load %arg7[%c0_143, %c0_144] : memref<2x72xf32, #tpu.memory_space<vmem>>, vector<2x40xf32>
    %cst_145 = arith.constant dense<0.000000e+00> : vector<2x128xf32>
    %235 = tpu.matmul %234, %4, %cst_145 {dimension_numbers = #tpu.dot_dimension_numbers<[1], [0], [0], [1], [0, 0, 1, 1], [], []>} : vector<2x40xf32>, vector<40x128xf32>, vector<2x128xf32> -> vector<2x128xf32>
    %236 = arith.addf %235, %10 : vector<2x128xf32>
    %cst_146 = arith.constant 0.000000e+00 : f32
    %237 = vector.broadcast %cst_146 : f32 to vector<2x128xf32>
    %238 = arith.subf %237, %236 : vector<2x128xf32>
    %239 = math.exp %238 : vector<2x128xf32>
    %cst_147 = arith.constant 1.000000e+00 : f32
    %240 = vector.broadcast %cst_147 : f32 to vector<2x128xf32>
    %241 = arith.addf %240, %239 : vector<2x128xf32>
    %242 = tpu.reciprocal %241 {approx = true} : vector<2x128xf32> -> vector<2x128xf32>
    %243 = math.tanh %236 : vector<2x128xf32>
    %244 = vector.extract_strided_slice %242 {offsets = [0, 0], sizes = [2, 32], strides = [1, 1]} : vector<2x128xf32> to vector<2x32xf32>
    %245 = vector.extract_strided_slice %242 {offsets = [0, 32], sizes = [2, 32], strides = [1, 1]} : vector<2x128xf32> to vector<2x32xf32>
    %246 = vector.extract_strided_slice %243 {offsets = [0, 64], sizes = [2, 32], strides = [1, 1]} : vector<2x128xf32> to vector<2x32xf32>
    %247 = vector.extract_strided_slice %242 {offsets = [0, 96], sizes = [2, 32], strides = [1, 1]} : vector<2x128xf32> to vector<2x32xf32>
    %c0_148 = arith.constant 0 : index
    %c0_149 = arith.constant 0 : index
    %c0_150 = arith.constant 0 : index
    %248 = vector.load %arg8[%c0_148, %c0_149, %c0_150] : memref<2x2x32xf32, #tpu.memory_space<vmem>>, vector<1x2x32xf32>
    %249 = vector.shape_cast %248 : vector<1x2x32xf32> to vector<2x32xf32>
    %250 = arith.mulf %245, %249 : vector<2x32xf32>
    %251 = arith.mulf %244, %246 : vector<2x32xf32>
    %252 = arith.addf %250, %251 : vector<2x32xf32>
    %253 = math.tanh %252 : vector<2x32xf32>
    %254 = arith.mulf %247, %253 : vector<2x32xf32>
    %c0_151 = arith.constant 0 : index
    %c0_152 = arith.constant 0 : index
    %c0_153 = arith.constant 0 : index
    %255 = vector.load %arg8[%c0_151, %c0_152, %c0_153] : memref<2x2x32xf32, #tpu.memory_space<vmem>>, vector<1x2x32xf32>
    %256 = vector.shape_cast %255 : vector<1x2x32xf32> to vector<2x32xf32>
    %257 = vector.shape_cast %252 : vector<2x32xf32> to vector<1x2x32xf32>
    tpu.vector_store %arg8[%c0_151, %c0_152, %c0_153], %257 {strides = array<i32>} : memref<2x2x32xf32, #tpu.memory_space<vmem>>, vector<1x2x32xf32>,
    %c0_154 = arith.constant 0 : index
    %c8_155 = arith.constant 8 : index
    %258 = vector.load %arg7[%c0_154, %c8_155] : memref<2x72xf32, #tpu.memory_space<vmem>>, vector<2x32xf32>
    tpu.vector_store %arg7[%c0_154, %c8_155], %254 {strides = array<i32>} : memref<2x72xf32, #tpu.memory_space<vmem>>, vector<2x32xf32>,
    %c0_156 = arith.constant 0 : index
    %c8_157 = arith.constant 8 : index
    %259 = vector.load %arg7[%c0_156, %c8_157] : memref<2x72xf32, #tpu.memory_space<vmem>>, vector<2x64xf32>
    %cst_158 = arith.constant dense<0.000000e+00> : vector<2x128xf32>
    %260 = tpu.matmul %259, %6, %cst_158 {dimension_numbers = #tpu.dot_dimension_numbers<[1], [0], [0], [1], [0, 0, 1, 1], [], []>} : vector<2x64xf32>, vector<64x128xf32>, vector<2x128xf32> -> vector<2x128xf32>
    %261 = arith.addf %260, %14 : vector<2x128xf32>
    %cst_159 = arith.constant 0.000000e+00 : f32
    %262 = vector.broadcast %cst_159 : f32 to vector<2x128xf32>
    %263 = arith.subf %262, %261 : vector<2x128xf32>
    %264 = math.exp %263 : vector<2x128xf32>
    %cst_160 = arith.constant 1.000000e+00 : f32
    %265 = vector.broadcast %cst_160 : f32 to vector<2x128xf32>
    %266 = arith.addf %265, %264 : vector<2x128xf32>
    %267 = tpu.reciprocal %266 {approx = true} : vector<2x128xf32> -> vector<2x128xf32>
    %268 = math.tanh %261 : vector<2x128xf32>
    %269 = vector.extract_strided_slice %267 {offsets = [0, 0], sizes = [2, 32], strides = [1, 1]} : vector<2x128xf32> to vector<2x32xf32>
    %270 = vector.extract_strided_slice %267 {offsets = [0, 32], sizes = [2, 32], strides = [1, 1]} : vector<2x128xf32> to vector<2x32xf32>
    %271 = vector.extract_strided_slice %268 {offsets = [0, 64], sizes = [2, 32], strides = [1, 1]} : vector<2x128xf32> to vector<2x32xf32>
    %272 = vector.extract_strided_slice %267 {offsets = [0, 96], sizes = [2, 32], strides = [1, 1]} : vector<2x128xf32> to vector<2x32xf32>
    %c1_161 = arith.constant 1 : index
    %c0_162 = arith.constant 0 : index
    %c0_163 = arith.constant 0 : index
    %273 = vector.load %arg8[%c1_161, %c0_162, %c0_163] : memref<2x2x32xf32, #tpu.memory_space<vmem>>, vector<1x2x32xf32>
    %274 = vector.shape_cast %273 : vector<1x2x32xf32> to vector<2x32xf32>
    %275 = arith.mulf %270, %274 : vector<2x32xf32>
    %276 = arith.mulf %269, %271 : vector<2x32xf32>
    %277 = arith.addf %275, %276 : vector<2x32xf32>
    %278 = math.tanh %277 : vector<2x32xf32>
    %279 = arith.mulf %272, %278 : vector<2x32xf32>
    %c1_164 = arith.constant 1 : index
    %c0_165 = arith.constant 0 : index
    %c0_166 = arith.constant 0 : index
    %280 = vector.load %arg8[%c1_164, %c0_165, %c0_166] : memref<2x2x32xf32, #tpu.memory_space<vmem>>, vector<1x2x32xf32>
    %281 = vector.shape_cast %280 : vector<1x2x32xf32> to vector<2x32xf32>
    %282 = vector.shape_cast %277 : vector<2x32xf32> to vector<1x2x32xf32>
    tpu.vector_store %arg8[%c1_164, %c0_165, %c0_166], %282 {strides = array<i32>} : memref<2x2x32xf32, #tpu.memory_space<vmem>>, vector<1x2x32xf32>,
    %c0_167 = arith.constant 0 : index
    %c40_168 = arith.constant 40 : index
    %283 = vector.load %arg7[%c0_167, %c40_168] : memref<2x72xf32, #tpu.memory_space<vmem>>, vector<2x32xf32>
    tpu.vector_store %arg7[%c0_167, %c40_168], %279 {strides = array<i32>} : memref<2x72xf32, #tpu.memory_space<vmem>>, vector<2x32xf32>,
    %c5 = arith.constant 5 : index
    %c0_169 = arith.constant 0 : index
    %c0_170 = arith.constant 0 : index
    %284 = vector.load %arg0[%c5, %c0_169, %c0_170] : memref<6x2x8xf32, #tpu.memory_space<vmem>>, vector<1x2x8xf32>
    %285 = vector.shape_cast %284 : vector<1x2x8xf32> to vector<2x8xf32>
    %c0_171 = arith.constant 0 : index
    %c0_172 = arith.constant 0 : index
    %286 = vector.load %arg7[%c0_171, %c0_172] : memref<2x72xf32, #tpu.memory_space<vmem>>, vector<2x8xf32>
    tpu.vector_store %arg7[%c0_171, %c0_172], %285 {strides = array<i32>} : memref<2x72xf32, #tpu.memory_space<vmem>>, vector<2x8xf32>,
    %c0_173 = arith.constant 0 : index
    %c0_174 = arith.constant 0 : index
    %287 = vector.load %arg7[%c0_173, %c0_174] : memref<2x72xf32, #tpu.memory_space<vmem>>, vector<2x40xf32>
    %cst_175 = arith.constant dense<0.000000e+00> : vector<2x128xf32>
    %288 = tpu.matmul %287, %4, %cst_175 {dimension_numbers = #tpu.dot_dimension_numbers<[1], [0], [0], [1], [0, 0, 1, 1], [], []>} : vector<2x40xf32>, vector<40x128xf32>, vector<2x128xf32> -> vector<2x128xf32>
    %289 = arith.addf %288, %10 : vector<2x128xf32>
    %cst_176 = arith.constant 0.000000e+00 : f32
    %290 = vector.broadcast %cst_176 : f32 to vector<2x128xf32>
    %291 = arith.subf %290, %289 : vector<2x128xf32>
    %292 = math.exp %291 : vector<2x128xf32>
    %cst_177 = arith.constant 1.000000e+00 : f32
    %293 = vector.broadcast %cst_177 : f32 to vector<2x128xf32>
    %294 = arith.addf %293, %292 : vector<2x128xf32>
    %295 = tpu.reciprocal %294 {approx = true} : vector<2x128xf32> -> vector<2x128xf32>
    %296 = math.tanh %289 : vector<2x128xf32>
    %297 = vector.extract_strided_slice %295 {offsets = [0, 0], sizes = [2, 32], strides = [1, 1]} : vector<2x128xf32> to vector<2x32xf32>
    %298 = vector.extract_strided_slice %295 {offsets = [0, 32], sizes = [2, 32], strides = [1, 1]} : vector<2x128xf32> to vector<2x32xf32>
    %299 = vector.extract_strided_slice %296 {offsets = [0, 64], sizes = [2, 32], strides = [1, 1]} : vector<2x128xf32> to vector<2x32xf32>
    %300 = vector.extract_strided_slice %295 {offsets = [0, 96], sizes = [2, 32], strides = [1, 1]} : vector<2x128xf32> to vector<2x32xf32>
    %c0_178 = arith.constant 0 : index
    %c0_179 = arith.constant 0 : index
    %c0_180 = arith.constant 0 : index
    %301 = vector.load %arg8[%c0_178, %c0_179, %c0_180] : memref<2x2x32xf32, #tpu.memory_space<vmem>>, vector<1x2x32xf32>
    %302 = vector.shape_cast %301 : vector<1x2x32xf32> to vector<2x32xf32>
    %303 = arith.mulf %298, %302 : vector<2x32xf32>
    %304 = arith.mulf %297, %299 : vector<2x32xf32>
    %305 = arith.addf %303, %304 : vector<2x32xf32>
    %306 = math.tanh %305 : vector<2x32xf32>
    %307 = arith.mulf %300, %306 : vector<2x32xf32>
    %c0_181 = arith.constant 0 : index
    %c0_182 = arith.constant 0 : index
    %c0_183 = arith.constant 0 : index
    %308 = vector.load %arg8[%c0_181, %c0_182, %c0_183] : memref<2x2x32xf32, #tpu.memory_space<vmem>>, vector<1x2x32xf32>
    %309 = vector.shape_cast %308 : vector<1x2x32xf32> to vector<2x32xf32>
    %310 = vector.shape_cast %305 : vector<2x32xf32> to vector<1x2x32xf32>
    tpu.vector_store %arg8[%c0_181, %c0_182, %c0_183], %310 {strides = array<i32>} : memref<2x2x32xf32, #tpu.memory_space<vmem>>, vector<1x2x32xf32>,
    %c0_184 = arith.constant 0 : index
    %c8_185 = arith.constant 8 : index
    %311 = vector.load %arg7[%c0_184, %c8_185] : memref<2x72xf32, #tpu.memory_space<vmem>>, vector<2x32xf32>
    tpu.vector_store %arg7[%c0_184, %c8_185], %307 {strides = array<i32>} : memref<2x72xf32, #tpu.memory_space<vmem>>, vector<2x32xf32>,
    %c0_186 = arith.constant 0 : index
    %c8_187 = arith.constant 8 : index
    %312 = vector.load %arg7[%c0_186, %c8_187] : memref<2x72xf32, #tpu.memory_space<vmem>>, vector<2x64xf32>
    %cst_188 = arith.constant dense<0.000000e+00> : vector<2x128xf32>
    %313 = tpu.matmul %312, %6, %cst_188 {dimension_numbers = #tpu.dot_dimension_numbers<[1], [0], [0], [1], [0, 0, 1, 1], [], []>} : vector<2x64xf32>, vector<64x128xf32>, vector<2x128xf32> -> vector<2x128xf32>
    %314 = arith.addf %313, %14 : vector<2x128xf32>
    %cst_189 = arith.constant 0.000000e+00 : f32
    %315 = vector.broadcast %cst_189 : f32 to vector<2x128xf32>
    %316 = arith.subf %315, %314 : vector<2x128xf32>
    %317 = math.exp %316 : vector<2x128xf32>
    %cst_190 = arith.constant 1.000000e+00 : f32
    %318 = vector.broadcast %cst_190 : f32 to vector<2x128xf32>
    %319 = arith.addf %318, %317 : vector<2x128xf32>
    %320 = tpu.reciprocal %319 {approx = true} : vector<2x128xf32> -> vector<2x128xf32>
    %321 = math.tanh %314 : vector<2x128xf32>
    %322 = vector.extract_strided_slice %320 {offsets = [0, 0], sizes = [2, 32], strides = [1, 1]} : vector<2x128xf32> to vector<2x32xf32>
    %323 = vector.extract_strided_slice %320 {offsets = [0, 32], sizes = [2, 32], strides = [1, 1]} : vector<2x128xf32> to vector<2x32xf32>
    %324 = vector.extract_strided_slice %321 {offsets = [0, 64], sizes = [2, 32], strides = [1, 1]} : vector<2x128xf32> to vector<2x32xf32>
    %325 = vector.extract_strided_slice %320 {offsets = [0, 96], sizes = [2, 32], strides = [1, 1]} : vector<2x128xf32> to vector<2x32xf32>
    %c1_191 = arith.constant 1 : index
    %c0_192 = arith.constant 0 : index
    %c0_193 = arith.constant 0 : index
    %326 = vector.load %arg8[%c1_191, %c0_192, %c0_193] : memref<2x2x32xf32, #tpu.memory_space<vmem>>, vector<1x2x32xf32>
    %327 = vector.shape_cast %326 : vector<1x2x32xf32> to vector<2x32xf32>
    %328 = arith.mulf %323, %327 : vector<2x32xf32>
    %329 = arith.mulf %322, %324 : vector<2x32xf32>
    %330 = arith.addf %328, %329 : vector<2x32xf32>
    %331 = math.tanh %330 : vector<2x32xf32>
    %332 = arith.mulf %325, %331 : vector<2x32xf32>
    %c1_194 = arith.constant 1 : index
    %c0_195 = arith.constant 0 : index
    %c0_196 = arith.constant 0 : index
    %333 = vector.load %arg8[%c1_194, %c0_195, %c0_196] : memref<2x2x32xf32, #tpu.memory_space<vmem>>, vector<1x2x32xf32>
    %334 = vector.shape_cast %333 : vector<1x2x32xf32> to vector<2x32xf32>
    %335 = vector.shape_cast %330 : vector<2x32xf32> to vector<1x2x32xf32>
    tpu.vector_store %arg8[%c1_194, %c0_195, %c0_196], %335 {strides = array<i32>} : memref<2x2x32xf32, #tpu.memory_space<vmem>>, vector<1x2x32xf32>,
    %c0_197 = arith.constant 0 : index
    %c40_198 = arith.constant 40 : index
    %336 = vector.load %arg7[%c0_197, %c40_198] : memref<2x72xf32, #tpu.memory_space<vmem>>, vector<2x32xf32>
    tpu.vector_store %arg7[%c0_197, %c40_198], %332 {strides = array<i32>} : memref<2x72xf32, #tpu.memory_space<vmem>>, vector<2x32xf32>,
    %cst_199 = arith.constant 0.000000e+00 : f32
    %337 = vector.broadcast %cst_199 : f32 to vector<2x8xf32>
    %c0_200 = arith.constant 0 : index
    %c0_201 = arith.constant 0 : index
    %338 = vector.load %arg7[%c0_200, %c0_201] : memref<2x72xf32, #tpu.memory_space<vmem>>, vector<2x8xf32>
    tpu.vector_store %arg7[%c0_200, %c0_201], %337 {strides = array<i32>} : memref<2x72xf32, #tpu.memory_space<vmem>>, vector<2x8xf32>,
    %c0_202 = arith.constant 0 : index
    %c0_203 = arith.constant 0 : index
    %339 = vector.load %arg7[%c0_202, %c0_203] : memref<2x72xf32, #tpu.memory_space<vmem>>, vector<2x40xf32>
    %cst_204 = arith.constant dense<0.000000e+00> : vector<2x128xf32>
    %340 = tpu.matmul %339, %4, %cst_204 {dimension_numbers = #tpu.dot_dimension_numbers<[1], [0], [0], [1], [0, 0, 1, 1], [], []>} : vector<2x40xf32>, vector<40x128xf32>, vector<2x128xf32> -> vector<2x128xf32>
    %341 = arith.addf %340, %10 : vector<2x128xf32>
    %cst_205 = arith.constant 0.000000e+00 : f32
    %342 = vector.broadcast %cst_205 : f32 to vector<2x128xf32>
    %343 = arith.subf %342, %341 : vector<2x128xf32>
    %344 = math.exp %343 : vector<2x128xf32>
    %cst_206 = arith.constant 1.000000e+00 : f32
    %345 = vector.broadcast %cst_206 : f32 to vector<2x128xf32>
    %346 = arith.addf %345, %344 : vector<2x128xf32>
    %347 = tpu.reciprocal %346 {approx = true} : vector<2x128xf32> -> vector<2x128xf32>
    %348 = math.tanh %341 : vector<2x128xf32>
    %349 = vector.extract_strided_slice %347 {offsets = [0, 0], sizes = [2, 32], strides = [1, 1]} : vector<2x128xf32> to vector<2x32xf32>
    %350 = vector.extract_strided_slice %347 {offsets = [0, 32], sizes = [2, 32], strides = [1, 1]} : vector<2x128xf32> to vector<2x32xf32>
    %351 = vector.extract_strided_slice %348 {offsets = [0, 64], sizes = [2, 32], strides = [1, 1]} : vector<2x128xf32> to vector<2x32xf32>
    %352 = vector.extract_strided_slice %347 {offsets = [0, 96], sizes = [2, 32], strides = [1, 1]} : vector<2x128xf32> to vector<2x32xf32>
    %c0_207 = arith.constant 0 : index
    %c0_208 = arith.constant 0 : index
    %c0_209 = arith.constant 0 : index
    %353 = vector.load %arg8[%c0_207, %c0_208, %c0_209] : memref<2x2x32xf32, #tpu.memory_space<vmem>>, vector<1x2x32xf32>
    %354 = vector.shape_cast %353 : vector<1x2x32xf32> to vector<2x32xf32>
    %355 = arith.mulf %350, %354 : vector<2x32xf32>
    %356 = arith.mulf %349, %351 : vector<2x32xf32>
    %357 = arith.addf %355, %356 : vector<2x32xf32>
    %358 = math.tanh %357 : vector<2x32xf32>
    %359 = arith.mulf %352, %358 : vector<2x32xf32>
    %c0_210 = arith.constant 0 : index
    %c0_211 = arith.constant 0 : index
    %c0_212 = arith.constant 0 : index
    %360 = vector.load %arg8[%c0_210, %c0_211, %c0_212] : memref<2x2x32xf32, #tpu.memory_space<vmem>>, vector<1x2x32xf32>
    %361 = vector.shape_cast %360 : vector<1x2x32xf32> to vector<2x32xf32>
    %362 = vector.shape_cast %357 : vector<2x32xf32> to vector<1x2x32xf32>
    tpu.vector_store %arg8[%c0_210, %c0_211, %c0_212], %362 {strides = array<i32>} : memref<2x2x32xf32, #tpu.memory_space<vmem>>, vector<1x2x32xf32>,
    %c0_213 = arith.constant 0 : index
    %c8_214 = arith.constant 8 : index
    %363 = vector.load %arg7[%c0_213, %c8_214] : memref<2x72xf32, #tpu.memory_space<vmem>>, vector<2x32xf32>
    tpu.vector_store %arg7[%c0_213, %c8_214], %359 {strides = array<i32>} : memref<2x72xf32, #tpu.memory_space<vmem>>, vector<2x32xf32>,
    %c0_215 = arith.constant 0 : index
    %c8_216 = arith.constant 8 : index
    %364 = vector.load %arg7[%c0_215, %c8_216] : memref<2x72xf32, #tpu.memory_space<vmem>>, vector<2x64xf32>
    %cst_217 = arith.constant dense<0.000000e+00> : vector<2x128xf32>
    %365 = tpu.matmul %364, %6, %cst_217 {dimension_numbers = #tpu.dot_dimension_numbers<[1], [0], [0], [1], [0, 0, 1, 1], [], []>} : vector<2x64xf32>, vector<64x128xf32>, vector<2x128xf32> -> vector<2x128xf32>
    %366 = arith.addf %365, %14 : vector<2x128xf32>
    %cst_218 = arith.constant 0.000000e+00 : f32
    %367 = vector.broadcast %cst_218 : f32 to vector<2x128xf32>
    %368 = arith.subf %367, %366 : vector<2x128xf32>
    %369 = math.exp %368 : vector<2x128xf32>
    %cst_219 = arith.constant 1.000000e+00 : f32
    %370 = vector.broadcast %cst_219 : f32 to vector<2x128xf32>
    %371 = arith.addf %370, %369 : vector<2x128xf32>
    %372 = tpu.reciprocal %371 {approx = true} : vector<2x128xf32> -> vector<2x128xf32>
    %373 = math.tanh %366 : vector<2x128xf32>
    %374 = vector.extract_strided_slice %372 {offsets = [0, 0], sizes = [2, 32], strides = [1, 1]} : vector<2x128xf32> to vector<2x32xf32>
    %375 = vector.extract_strided_slice %372 {offsets = [0, 32], sizes = [2, 32], strides = [1, 1]} : vector<2x128xf32> to vector<2x32xf32>
    %376 = vector.extract_strided_slice %373 {offsets = [0, 64], sizes = [2, 32], strides = [1, 1]} : vector<2x128xf32> to vector<2x32xf32>
    %377 = vector.extract_strided_slice %372 {offsets = [0, 96], sizes = [2, 32], strides = [1, 1]} : vector<2x128xf32> to vector<2x32xf32>
    %c1_220 = arith.constant 1 : index
    %c0_221 = arith.constant 0 : index
    %c0_222 = arith.constant 0 : index
    %378 = vector.load %arg8[%c1_220, %c0_221, %c0_222] : memref<2x2x32xf32, #tpu.memory_space<vmem>>, vector<1x2x32xf32>
    %379 = vector.shape_cast %378 : vector<1x2x32xf32> to vector<2x32xf32>
    %380 = arith.mulf %375, %379 : vector<2x32xf32>
    %381 = arith.mulf %374, %376 : vector<2x32xf32>
    %382 = arith.addf %380, %381 : vector<2x32xf32>
    %383 = math.tanh %382 : vector<2x32xf32>
    %384 = arith.mulf %377, %383 : vector<2x32xf32>
    %c1_223 = arith.constant 1 : index
    %c0_224 = arith.constant 0 : index
    %c0_225 = arith.constant 0 : index
    %385 = vector.load %arg8[%c1_223, %c0_224, %c0_225] : memref<2x2x32xf32, #tpu.memory_space<vmem>>, vector<1x2x32xf32>
    %386 = vector.shape_cast %385 : vector<1x2x32xf32> to vector<2x32xf32>
    %387 = vector.shape_cast %382 : vector<2x32xf32> to vector<1x2x32xf32>
    tpu.vector_store %arg8[%c1_223, %c0_224, %c0_225], %387 {strides = array<i32>} : memref<2x2x32xf32, #tpu.memory_space<vmem>>, vector<1x2x32xf32>,
    %c0_226 = arith.constant 0 : index
    %c40_227 = arith.constant 40 : index
    %388 = vector.load %arg7[%c0_226, %c40_227] : memref<2x72xf32, #tpu.memory_space<vmem>>, vector<2x32xf32>
    tpu.vector_store %arg7[%c0_226, %c40_227], %384 {strides = array<i32>} : memref<2x72xf32, #tpu.memory_space<vmem>>, vector<2x32xf32>,
    %cst_228 = arith.constant dense<0.000000e+00> : vector<2x8xf32>
    %389 = tpu.matmul %384, %15, %cst_228 {dimension_numbers = #tpu.dot_dimension_numbers<[1], [0], [0], [1], [0, 0, 1, 1], [], []>} : vector<2x32xf32>, vector<32x8xf32>, vector<2x8xf32> -> vector<2x8xf32>
    %390 = arith.addf %389, %18 : vector<2x8xf32>
    %c0_229 = arith.constant 0 : index
    %c0_230 = arith.constant 0 : index
    %c0_231 = arith.constant 0 : index
    %391 = vector.load %arg6[%c0_229, %c0_230, %c0_231] : memref<4x2x8xf32, #tpu.memory_space<vmem>>, vector<1x2x8xf32>
    %392 = vector.shape_cast %391 : vector<1x2x8xf32> to vector<2x8xf32>
    %393 = vector.shape_cast %390 : vector<2x8xf32> to vector<1x2x8xf32>
    tpu.vector_store %arg6[%c0_229, %c0_230, %c0_231], %393 {strides = array<i32>} : memref<4x2x8xf32, #tpu.memory_space<vmem>>, vector<1x2x8xf32>,
    %c0_232 = arith.constant 0 : index
    %c0_233 = arith.constant 0 : index
    %394 = vector.load %arg7[%c0_232, %c0_233] : memref<2x72xf32, #tpu.memory_space<vmem>>, vector<2x8xf32>
    tpu.vector_store %arg7[%c0_232, %c0_233], %390 {strides = array<i32>} : memref<2x72xf32, #tpu.memory_space<vmem>>, vector<2x8xf32>,
    %c0_234 = arith.constant 0 : index
    %c0_235 = arith.constant 0 : index
    %395 = vector.load %arg7[%c0_234, %c0_235] : memref<2x72xf32, #tpu.memory_space<vmem>>, vector<2x40xf32>
    %cst_236 = arith.constant dense<0.000000e+00> : vector<2x128xf32>
    %396 = tpu.matmul %395, %4, %cst_236 {dimension_numbers = #tpu.dot_dimension_numbers<[1], [0], [0], [1], [0, 0, 1, 1], [], []>} : vector<2x40xf32>, vector<40x128xf32>, vector<2x128xf32> -> vector<2x128xf32>
    %397 = arith.addf %396, %10 : vector<2x128xf32>
    %cst_237 = arith.constant 0.000000e+00 : f32
    %398 = vector.broadcast %cst_237 : f32 to vector<2x128xf32>
    %399 = arith.subf %398, %397 : vector<2x128xf32>
    %400 = math.exp %399 : vector<2x128xf32>
    %cst_238 = arith.constant 1.000000e+00 : f32
    %401 = vector.broadcast %cst_238 : f32 to vector<2x128xf32>
    %402 = arith.addf %401, %400 : vector<2x128xf32>
    %403 = tpu.reciprocal %402 {approx = true} : vector<2x128xf32> -> vector<2x128xf32>
    %404 = math.tanh %397 : vector<2x128xf32>
    %405 = vector.extract_strided_slice %403 {offsets = [0, 0], sizes = [2, 32], strides = [1, 1]} : vector<2x128xf32> to vector<2x32xf32>
    %406 = vector.extract_strided_slice %403 {offsets = [0, 32], sizes = [2, 32], strides = [1, 1]} : vector<2x128xf32> to vector<2x32xf32>
    %407 = vector.extract_strided_slice %404 {offsets = [0, 64], sizes = [2, 32], strides = [1, 1]} : vector<2x128xf32> to vector<2x32xf32>
    %408 = vector.extract_strided_slice %403 {offsets = [0, 96], sizes = [2, 32], strides = [1, 1]} : vector<2x128xf32> to vector<2x32xf32>
    %c0_239 = arith.constant 0 : index
    %c0_240 = arith.constant 0 : index
    %c0_241 = arith.constant 0 : index
    %409 = vector.load %arg8[%c0_239, %c0_240, %c0_241] : memref<2x2x32xf32, #tpu.memory_space<vmem>>, vector<1x2x32xf32>
    %410 = vector.shape_cast %409 : vector<1x2x32xf32> to vector<2x32xf32>
    %411 = arith.mulf %406, %410 : vector<2x32xf32>
    %412 = arith.mulf %405, %407 : vector<2x32xf32>
    %413 = arith.addf %411, %412 : vector<2x32xf32>
    %414 = math.tanh %413 : vector<2x32xf32>
    %415 = arith.mulf %408, %414 : vector<2x32xf32>
    %c0_242 = arith.constant 0 : index
    %c0_243 = arith.constant 0 : index
    %c0_244 = arith.constant 0 : index
    %416 = vector.load %arg8[%c0_242, %c0_243, %c0_244] : memref<2x2x32xf32, #tpu.memory_space<vmem>>, vector<1x2x32xf32>
    %417 = vector.shape_cast %416 : vector<1x2x32xf32> to vector<2x32xf32>
    %418 = vector.shape_cast %413 : vector<2x32xf32> to vector<1x2x32xf32>
    tpu.vector_store %arg8[%c0_242, %c0_243, %c0_244], %418 {strides = array<i32>} : memref<2x2x32xf32, #tpu.memory_space<vmem>>, vector<1x2x32xf32>,
    %c0_245 = arith.constant 0 : index
    %c8_246 = arith.constant 8 : index
    %419 = vector.load %arg7[%c0_245, %c8_246] : memref<2x72xf32, #tpu.memory_space<vmem>>, vector<2x32xf32>
    tpu.vector_store %arg7[%c0_245, %c8_246], %415 {strides = array<i32>} : memref<2x72xf32, #tpu.memory_space<vmem>>, vector<2x32xf32>,
    %c0_247 = arith.constant 0 : index
    %c8_248 = arith.constant 8 : index
    %420 = vector.load %arg7[%c0_247, %c8_248] : memref<2x72xf32, #tpu.memory_space<vmem>>, vector<2x64xf32>
    %cst_249 = arith.constant dense<0.000000e+00> : vector<2x128xf32>
    %421 = tpu.matmul %420, %6, %cst_249 {dimension_numbers = #tpu.dot_dimension_numbers<[1], [0], [0], [1], [0, 0, 1, 1], [], []>} : vector<2x64xf32>, vector<64x128xf32>, vector<2x128xf32> -> vector<2x128xf32>
    %422 = arith.addf %421, %14 : vector<2x128xf32>
    %cst_250 = arith.constant 0.000000e+00 : f32
    %423 = vector.broadcast %cst_250 : f32 to vector<2x128xf32>
    %424 = arith.subf %423, %422 : vector<2x128xf32>
    %425 = math.exp %424 : vector<2x128xf32>
    %cst_251 = arith.constant 1.000000e+00 : f32
    %426 = vector.broadcast %cst_251 : f32 to vector<2x128xf32>
    %427 = arith.addf %426, %425 : vector<2x128xf32>
    %428 = tpu.reciprocal %427 {approx = true} : vector<2x128xf32> -> vector<2x128xf32>
    %429 = math.tanh %422 : vector<2x128xf32>
    %430 = vector.extract_strided_slice %428 {offsets = [0, 0], sizes = [2, 32], strides = [1, 1]} : vector<2x128xf32> to vector<2x32xf32>
    %431 = vector.extract_strided_slice %428 {offsets = [0, 32], sizes = [2, 32], strides = [1, 1]} : vector<2x128xf32> to vector<2x32xf32>
    %432 = vector.extract_strided_slice %429 {offsets = [0, 64], sizes = [2, 32], strides = [1, 1]} : vector<2x128xf32> to vector<2x32xf32>
    %433 = vector.extract_strided_slice %428 {offsets = [0, 96], sizes = [2, 32], strides = [1, 1]} : vector<2x128xf32> to vector<2x32xf32>
    %c1_252 = arith.constant 1 : index
    %c0_253 = arith.constant 0 : index
    %c0_254 = arith.constant 0 : index
    %434 = vector.load %arg8[%c1_252, %c0_253, %c0_254] : memref<2x2x32xf32, #tpu.memory_space<vmem>>, vector<1x2x32xf32>
    %435 = vector.shape_cast %434 : vector<1x2x32xf32> to vector<2x32xf32>
    %436 = arith.mulf %431, %435 : vector<2x32xf32>
    %437 = arith.mulf %430, %432 : vector<2x32xf32>
    %438 = arith.addf %436, %437 : vector<2x32xf32>
    %439 = math.tanh %438 : vector<2x32xf32>
    %440 = arith.mulf %433, %439 : vector<2x32xf32>
    %c1_255 = arith.constant 1 : index
    %c0_256 = arith.constant 0 : index
    %c0_257 = arith.constant 0 : index
    %441 = vector.load %arg8[%c1_255, %c0_256, %c0_257] : memref<2x2x32xf32, #tpu.memory_space<vmem>>, vector<1x2x32xf32>
    %442 = vector.shape_cast %441 : vector<1x2x32xf32> to vector<2x32xf32>
    %443 = vector.shape_cast %438 : vector<2x32xf32> to vector<1x2x32xf32>
    tpu.vector_store %arg8[%c1_255, %c0_256, %c0_257], %443 {strides = array<i32>} : memref<2x2x32xf32, #tpu.memory_space<vmem>>, vector<1x2x32xf32>,
    %c0_258 = arith.constant 0 : index
    %c40_259 = arith.constant 40 : index
    %444 = vector.load %arg7[%c0_258, %c40_259] : memref<2x72xf32, #tpu.memory_space<vmem>>, vector<2x32xf32>
    tpu.vector_store %arg7[%c0_258, %c40_259], %440 {strides = array<i32>} : memref<2x72xf32, #tpu.memory_space<vmem>>, vector<2x32xf32>,
    %cst_260 = arith.constant dense<0.000000e+00> : vector<2x8xf32>
    %445 = tpu.matmul %440, %15, %cst_260 {dimension_numbers = #tpu.dot_dimension_numbers<[1], [0], [0], [1], [0, 0, 1, 1], [], []>} : vector<2x32xf32>, vector<32x8xf32>, vector<2x8xf32> -> vector<2x8xf32>
    %446 = arith.addf %445, %18 : vector<2x8xf32>
    %c1_261 = arith.constant 1 : index
    %c0_262 = arith.constant 0 : index
    %c0_263 = arith.constant 0 : index
    %447 = vector.load %arg6[%c1_261, %c0_262, %c0_263] : memref<4x2x8xf32, #tpu.memory_space<vmem>>, vector<1x2x8xf32>
    %448 = vector.shape_cast %447 : vector<1x2x8xf32> to vector<2x8xf32>
    %449 = vector.shape_cast %446 : vector<2x8xf32> to vector<1x2x8xf32>
    tpu.vector_store %arg6[%c1_261, %c0_262, %c0_263], %449 {strides = array<i32>} : memref<4x2x8xf32, #tpu.memory_space<vmem>>, vector<1x2x8xf32>,
    %c0_264 = arith.constant 0 : index
    %c0_265 = arith.constant 0 : index
    %450 = vector.load %arg7[%c0_264, %c0_265] : memref<2x72xf32, #tpu.memory_space<vmem>>, vector<2x8xf32>
    tpu.vector_store %arg7[%c0_264, %c0_265], %446 {strides = array<i32>} : memref<2x72xf32, #tpu.memory_space<vmem>>, vector<2x8xf32>,
    %c0_266 = arith.constant 0 : index
    %c0_267 = arith.constant 0 : index
    %451 = vector.load %arg7[%c0_266, %c0_267] : memref<2x72xf32, #tpu.memory_space<vmem>>, vector<2x40xf32>
    %cst_268 = arith.constant dense<0.000000e+00> : vector<2x128xf32>
    %452 = tpu.matmul %451, %4, %cst_268 {dimension_numbers = #tpu.dot_dimension_numbers<[1], [0], [0], [1], [0, 0, 1, 1], [], []>} : vector<2x40xf32>, vector<40x128xf32>, vector<2x128xf32> -> vector<2x128xf32>
    %453 = arith.addf %452, %10 : vector<2x128xf32>
    %cst_269 = arith.constant 0.000000e+00 : f32
    %454 = vector.broadcast %cst_269 : f32 to vector<2x128xf32>
    %455 = arith.subf %454, %453 : vector<2x128xf32>
    %456 = math.exp %455 : vector<2x128xf32>
    %cst_270 = arith.constant 1.000000e+00 : f32
    %457 = vector.broadcast %cst_270 : f32 to vector<2x128xf32>
    %458 = arith.addf %457, %456 : vector<2x128xf32>
    %459 = tpu.reciprocal %458 {approx = true} : vector<2x128xf32> -> vector<2x128xf32>
    %460 = math.tanh %453 : vector<2x128xf32>
    %461 = vector.extract_strided_slice %459 {offsets = [0, 0], sizes = [2, 32], strides = [1, 1]} : vector<2x128xf32> to vector<2x32xf32>
    %462 = vector.extract_strided_slice %459 {offsets = [0, 32], sizes = [2, 32], strides = [1, 1]} : vector<2x128xf32> to vector<2x32xf32>
    %463 = vector.extract_strided_slice %460 {offsets = [0, 64], sizes = [2, 32], strides = [1, 1]} : vector<2x128xf32> to vector<2x32xf32>
    %464 = vector.extract_strided_slice %459 {offsets = [0, 96], sizes = [2, 32], strides = [1, 1]} : vector<2x128xf32> to vector<2x32xf32>
    %c0_271 = arith.constant 0 : index
    %c0_272 = arith.constant 0 : index
    %c0_273 = arith.constant 0 : index
    %465 = vector.load %arg8[%c0_271, %c0_272, %c0_273] : memref<2x2x32xf32, #tpu.memory_space<vmem>>, vector<1x2x32xf32>
    %466 = vector.shape_cast %465 : vector<1x2x32xf32> to vector<2x32xf32>
    %467 = arith.mulf %462, %466 : vector<2x32xf32>
    %468 = arith.mulf %461, %463 : vector<2x32xf32>
    %469 = arith.addf %467, %468 : vector<2x32xf32>
    %470 = math.tanh %469 : vector<2x32xf32>
    %471 = arith.mulf %464, %470 : vector<2x32xf32>
    %c0_274 = arith.constant 0 : index
    %c0_275 = arith.constant 0 : index
    %c0_276 = arith.constant 0 : index
    %472 = vector.load %arg8[%c0_274, %c0_275, %c0_276] : memref<2x2x32xf32, #tpu.memory_space<vmem>>, vector<1x2x32xf32>
    %473 = vector.shape_cast %472 : vector<1x2x32xf32> to vector<2x32xf32>
    %474 = vector.shape_cast %469 : vector<2x32xf32> to vector<1x2x32xf32>
    tpu.vector_store %arg8[%c0_274, %c0_275, %c0_276], %474 {strides = array<i32>} : memref<2x2x32xf32, #tpu.memory_space<vmem>>, vector<1x2x32xf32>,
    %c0_277 = arith.constant 0 : index
    %c8_278 = arith.constant 8 : index
    %475 = vector.load %arg7[%c0_277, %c8_278] : memref<2x72xf32, #tpu.memory_space<vmem>>, vector<2x32xf32>
    tpu.vector_store %arg7[%c0_277, %c8_278], %471 {strides = array<i32>} : memref<2x72xf32, #tpu.memory_space<vmem>>, vector<2x32xf32>,
    %c0_279 = arith.constant 0 : index
    %c8_280 = arith.constant 8 : index
    %476 = vector.load %arg7[%c0_279, %c8_280] : memref<2x72xf32, #tpu.memory_space<vmem>>, vector<2x64xf32>
    %cst_281 = arith.constant dense<0.000000e+00> : vector<2x128xf32>
    %477 = tpu.matmul %476, %6, %cst_281 {dimension_numbers = #tpu.dot_dimension_numbers<[1], [0], [0], [1], [0, 0, 1, 1], [], []>} : vector<2x64xf32>, vector<64x128xf32>, vector<2x128xf32> -> vector<2x128xf32>
    %478 = arith.addf %477, %14 : vector<2x128xf32>
    %cst_282 = arith.constant 0.000000e+00 : f32
    %479 = vector.broadcast %cst_282 : f32 to vector<2x128xf32>
    %480 = arith.subf %479, %478 : vector<2x128xf32>
    %481 = math.exp %480 : vector<2x128xf32>
    %cst_283 = arith.constant 1.000000e+00 : f32
    %482 = vector.broadcast %cst_283 : f32 to vector<2x128xf32>
    %483 = arith.addf %482, %481 : vector<2x128xf32>
    %484 = tpu.reciprocal %483 {approx = true} : vector<2x128xf32> -> vector<2x128xf32>
    %485 = math.tanh %478 : vector<2x128xf32>
    %486 = vector.extract_strided_slice %484 {offsets = [0, 0], sizes = [2, 32], strides = [1, 1]} : vector<2x128xf32> to vector<2x32xf32>
    %487 = vector.extract_strided_slice %484 {offsets = [0, 32], sizes = [2, 32], strides = [1, 1]} : vector<2x128xf32> to vector<2x32xf32>
    %488 = vector.extract_strided_slice %485 {offsets = [0, 64], sizes = [2, 32], strides = [1, 1]} : vector<2x128xf32> to vector<2x32xf32>
    %489 = vector.extract_strided_slice %484 {offsets = [0, 96], sizes = [2, 32], strides = [1, 1]} : vector<2x128xf32> to vector<2x32xf32>
    %c1_284 = arith.constant 1 : index
    %c0_285 = arith.constant 0 : index
    %c0_286 = arith.constant 0 : index
    %490 = vector.load %arg8[%c1_284, %c0_285, %c0_286] : memref<2x2x32xf32, #tpu.memory_space<vmem>>, vector<1x2x32xf32>
    %491 = vector.shape_cast %490 : vector<1x2x32xf32> to vector<2x32xf32>
    %492 = arith.mulf %487, %491 : vector<2x32xf32>
    %493 = arith.mulf %486, %488 : vector<2x32xf32>
    %494 = arith.addf %492, %493 : vector<2x32xf32>
    %495 = math.tanh %494 : vector<2x32xf32>
    %496 = arith.mulf %489, %495 : vector<2x32xf32>
    %c1_287 = arith.constant 1 : index
    %c0_288 = arith.constant 0 : index
    %c0_289 = arith.constant 0 : index
    %497 = vector.load %arg8[%c1_287, %c0_288, %c0_289] : memref<2x2x32xf32, #tpu.memory_space<vmem>>, vector<1x2x32xf32>
    %498 = vector.shape_cast %497 : vector<1x2x32xf32> to vector<2x32xf32>
    %499 = vector.shape_cast %494 : vector<2x32xf32> to vector<1x2x32xf32>
    tpu.vector_store %arg8[%c1_287, %c0_288, %c0_289], %499 {strides = array<i32>} : memref<2x2x32xf32, #tpu.memory_space<vmem>>, vector<1x2x32xf32>,
    %c0_290 = arith.constant 0 : index
    %c40_291 = arith.constant 40 : index
    %500 = vector.load %arg7[%c0_290, %c40_291] : memref<2x72xf32, #tpu.memory_space<vmem>>, vector<2x32xf32>
    tpu.vector_store %arg7[%c0_290, %c40_291], %496 {strides = array<i32>} : memref<2x72xf32, #tpu.memory_space<vmem>>, vector<2x32xf32>,
    %cst_292 = arith.constant dense<0.000000e+00> : vector<2x8xf32>
    %501 = tpu.matmul %496, %15, %cst_292 {dimension_numbers = #tpu.dot_dimension_numbers<[1], [0], [0], [1], [0, 0, 1, 1], [], []>} : vector<2x32xf32>, vector<32x8xf32>, vector<2x8xf32> -> vector<2x8xf32>
    %502 = arith.addf %501, %18 : vector<2x8xf32>
    %c2_293 = arith.constant 2 : index
    %c0_294 = arith.constant 0 : index
    %c0_295 = arith.constant 0 : index
    %503 = vector.load %arg6[%c2_293, %c0_294, %c0_295] : memref<4x2x8xf32, #tpu.memory_space<vmem>>, vector<1x2x8xf32>
    %504 = vector.shape_cast %503 : vector<1x2x8xf32> to vector<2x8xf32>
    %505 = vector.shape_cast %502 : vector<2x8xf32> to vector<1x2x8xf32>
    tpu.vector_store %arg6[%c2_293, %c0_294, %c0_295], %505 {strides = array<i32>} : memref<4x2x8xf32, #tpu.memory_space<vmem>>, vector<1x2x8xf32>,
    %c0_296 = arith.constant 0 : index
    %c0_297 = arith.constant 0 : index
    %506 = vector.load %arg7[%c0_296, %c0_297] : memref<2x72xf32, #tpu.memory_space<vmem>>, vector<2x8xf32>
    tpu.vector_store %arg7[%c0_296, %c0_297], %502 {strides = array<i32>} : memref<2x72xf32, #tpu.memory_space<vmem>>, vector<2x8xf32>,
    %c0_298 = arith.constant 0 : index
    %c0_299 = arith.constant 0 : index
    %507 = vector.load %arg7[%c0_298, %c0_299] : memref<2x72xf32, #tpu.memory_space<vmem>>, vector<2x40xf32>
    %cst_300 = arith.constant dense<0.000000e+00> : vector<2x128xf32>
    %508 = tpu.matmul %507, %4, %cst_300 {dimension_numbers = #tpu.dot_dimension_numbers<[1], [0], [0], [1], [0, 0, 1, 1], [], []>} : vector<2x40xf32>, vector<40x128xf32>, vector<2x128xf32> -> vector<2x128xf32>
    %509 = arith.addf %508, %10 : vector<2x128xf32>
    %cst_301 = arith.constant 0.000000e+00 : f32
    %510 = vector.broadcast %cst_301 : f32 to vector<2x128xf32>
    %511 = arith.subf %510, %509 : vector<2x128xf32>
    %512 = math.exp %511 : vector<2x128xf32>
    %cst_302 = arith.constant 1.000000e+00 : f32
    %513 = vector.broadcast %cst_302 : f32 to vector<2x128xf32>
    %514 = arith.addf %513, %512 : vector<2x128xf32>
    %515 = tpu.reciprocal %514 {approx = true} : vector<2x128xf32> -> vector<2x128xf32>
    %516 = math.tanh %509 : vector<2x128xf32>
    %517 = vector.extract_strided_slice %515 {offsets = [0, 0], sizes = [2, 32], strides = [1, 1]} : vector<2x128xf32> to vector<2x32xf32>
    %518 = vector.extract_strided_slice %515 {offsets = [0, 32], sizes = [2, 32], strides = [1, 1]} : vector<2x128xf32> to vector<2x32xf32>
    %519 = vector.extract_strided_slice %516 {offsets = [0, 64], sizes = [2, 32], strides = [1, 1]} : vector<2x128xf32> to vector<2x32xf32>
    %520 = vector.extract_strided_slice %515 {offsets = [0, 96], sizes = [2, 32], strides = [1, 1]} : vector<2x128xf32> to vector<2x32xf32>
    %c0_303 = arith.constant 0 : index
    %c0_304 = arith.constant 0 : index
    %c0_305 = arith.constant 0 : index
    %521 = vector.load %arg8[%c0_303, %c0_304, %c0_305] : memref<2x2x32xf32, #tpu.memory_space<vmem>>, vector<1x2x32xf32>
    %522 = vector.shape_cast %521 : vector<1x2x32xf32> to vector<2x32xf32>
    %523 = arith.mulf %518, %522 : vector<2x32xf32>
    %524 = arith.mulf %517, %519 : vector<2x32xf32>
    %525 = arith.addf %523, %524 : vector<2x32xf32>
    %526 = math.tanh %525 : vector<2x32xf32>
    %527 = arith.mulf %520, %526 : vector<2x32xf32>
    %c0_306 = arith.constant 0 : index
    %c0_307 = arith.constant 0 : index
    %c0_308 = arith.constant 0 : index
    %528 = vector.load %arg8[%c0_306, %c0_307, %c0_308] : memref<2x2x32xf32, #tpu.memory_space<vmem>>, vector<1x2x32xf32>
    %529 = vector.shape_cast %528 : vector<1x2x32xf32> to vector<2x32xf32>
    %530 = vector.shape_cast %525 : vector<2x32xf32> to vector<1x2x32xf32>
    tpu.vector_store %arg8[%c0_306, %c0_307, %c0_308], %530 {strides = array<i32>} : memref<2x2x32xf32, #tpu.memory_space<vmem>>, vector<1x2x32xf32>,
    %c0_309 = arith.constant 0 : index
    %c8_310 = arith.constant 8 : index
    %531 = vector.load %arg7[%c0_309, %c8_310] : memref<2x72xf32, #tpu.memory_space<vmem>>, vector<2x32xf32>
    tpu.vector_store %arg7[%c0_309, %c8_310], %527 {strides = array<i32>} : memref<2x72xf32, #tpu.memory_space<vmem>>, vector<2x32xf32>,
    %c0_311 = arith.constant 0 : index
    %c8_312 = arith.constant 8 : index
    %532 = vector.load %arg7[%c0_311, %c8_312] : memref<2x72xf32, #tpu.memory_space<vmem>>, vector<2x64xf32>
    %cst_313 = arith.constant dense<0.000000e+00> : vector<2x128xf32>
    %533 = tpu.matmul %532, %6, %cst_313 {dimension_numbers = #tpu.dot_dimension_numbers<[1], [0], [0], [1], [0, 0, 1, 1], [], []>} : vector<2x64xf32>, vector<64x128xf32>, vector<2x128xf32> -> vector<2x128xf32>
    %534 = arith.addf %533, %14 : vector<2x128xf32>
    %cst_314 = arith.constant 0.000000e+00 : f32
    %535 = vector.broadcast %cst_314 : f32 to vector<2x128xf32>
    %536 = arith.subf %535, %534 : vector<2x128xf32>
    %537 = math.exp %536 : vector<2x128xf32>
    %cst_315 = arith.constant 1.000000e+00 : f32
    %538 = vector.broadcast %cst_315 : f32 to vector<2x128xf32>
    %539 = arith.addf %538, %537 : vector<2x128xf32>
    %540 = tpu.reciprocal %539 {approx = true} : vector<2x128xf32> -> vector<2x128xf32>
    %541 = math.tanh %534 : vector<2x128xf32>
    %542 = vector.extract_strided_slice %540 {offsets = [0, 0], sizes = [2, 32], strides = [1, 1]} : vector<2x128xf32> to vector<2x32xf32>
    %543 = vector.extract_strided_slice %540 {offsets = [0, 32], sizes = [2, 32], strides = [1, 1]} : vector<2x128xf32> to vector<2x32xf32>
    %544 = vector.extract_strided_slice %541 {offsets = [0, 64], sizes = [2, 32], strides = [1, 1]} : vector<2x128xf32> to vector<2x32xf32>
    %545 = vector.extract_strided_slice %540 {offsets = [0, 96], sizes = [2, 32], strides = [1, 1]} : vector<2x128xf32> to vector<2x32xf32>
    %c1_316 = arith.constant 1 : index
    %c0_317 = arith.constant 0 : index
    %c0_318 = arith.constant 0 : index
    %546 = vector.load %arg8[%c1_316, %c0_317, %c0_318] : memref<2x2x32xf32, #tpu.memory_space<vmem>>, vector<1x2x32xf32>
    %547 = vector.shape_cast %546 : vector<1x2x32xf32> to vector<2x32xf32>
    %548 = arith.mulf %543, %547 : vector<2x32xf32>
    %549 = arith.mulf %542, %544 : vector<2x32xf32>
    %550 = arith.addf %548, %549 : vector<2x32xf32>
    %551 = math.tanh %550 : vector<2x32xf32>
    %552 = arith.mulf %545, %551 : vector<2x32xf32>
    %c1_319 = arith.constant 1 : index
    %c0_320 = arith.constant 0 : index
    %c0_321 = arith.constant 0 : index
    %553 = vector.load %arg8[%c1_319, %c0_320, %c0_321] : memref<2x2x32xf32, #tpu.memory_space<vmem>>, vector<1x2x32xf32>
    %554 = vector.shape_cast %553 : vector<1x2x32xf32> to vector<2x32xf32>
    %555 = vector.shape_cast %550 : vector<2x32xf32> to vector<1x2x32xf32>
    tpu.vector_store %arg8[%c1_319, %c0_320, %c0_321], %555 {strides = array<i32>} : memref<2x2x32xf32, #tpu.memory_space<vmem>>, vector<1x2x32xf32>,
    %c0_322 = arith.constant 0 : index
    %c40_323 = arith.constant 40 : index
    %556 = vector.load %arg7[%c0_322, %c40_323] : memref<2x72xf32, #tpu.memory_space<vmem>>, vector<2x32xf32>
    tpu.vector_store %arg7[%c0_322, %c40_323], %552 {strides = array<i32>} : memref<2x72xf32, #tpu.memory_space<vmem>>, vector<2x32xf32>,
    %cst_324 = arith.constant dense<0.000000e+00> : vector<2x8xf32>
    %557 = tpu.matmul %552, %15, %cst_324 {dimension_numbers = #tpu.dot_dimension_numbers<[1], [0], [0], [1], [0, 0, 1, 1], [], []>} : vector<2x32xf32>, vector<32x8xf32>, vector<2x8xf32> -> vector<2x8xf32>
    %558 = arith.addf %557, %18 : vector<2x8xf32>
    %c3_325 = arith.constant 3 : index
    %c0_326 = arith.constant 0 : index
    %c0_327 = arith.constant 0 : index
    %559 = vector.load %arg6[%c3_325, %c0_326, %c0_327] : memref<4x2x8xf32, #tpu.memory_space<vmem>>, vector<1x2x8xf32>
    %560 = vector.shape_cast %559 : vector<1x2x8xf32> to vector<2x8xf32>
    %561 = vector.shape_cast %558 : vector<2x8xf32> to vector<1x2x8xf32>
    tpu.vector_store %arg6[%c3_325, %c0_326, %c0_327], %561 {strides = array<i32>} : memref<4x2x8xf32, #tpu.memory_space<vmem>>, vector<1x2x8xf32>,
    %c0_328 = arith.constant 0 : index
    %c0_329 = arith.constant 0 : index
    %562 = vector.load %arg7[%c0_328, %c0_329] : memref<2x72xf32, #tpu.memory_space<vmem>>, vector<2x8xf32>
    tpu.vector_store %arg7[%c0_328, %c0_329], %558 {strides = array<i32>} : memref<2x72xf32, #tpu.memory_space<vmem>>, vector<2x8xf32>,
    return
  }
}

</mosaic_0001>

<bundles_post_ra>
// kernel: tpu_custom_call.1
= control target key start
LH: loop header
LB: loop body
LE: loop exit
PB: predicated region body
PF: predicated region fallthrough
CT: control target
= control target key end

     0   :  { %11 = vsyncpa [#allocation5], 0  ;;  %s4348_s0 = inlined_call_operand.hbm [shape: f32[6,2,8], index: 0, kind: input, shape index: {}]   ;;  %s4349_s1 = inlined_call_operand.vmem [shape: f32[40,128], index: 1, kind: input, shape index: {}]   ;;  %s4350_s2 = inlined_call_operand.hbm [shape: f32[1,64,128], index: 2, kind: input, shape index: {}]   ;;  %s4351_s3 = inlined_call_operand.vmem [shape: f32[2,1,128], index: 3, kind: input, shape index: {}]   ;;  %s4352_s4 = inlined_call_operand.vmem [shape: f32[32,8], index: 4, kind: input, shape index: {}]   ;;  %s4353_s5 = inlined_call_operand.vmem [shape: f32[1,8], index: 5, kind: input, shape index: {}]   ;;  %s4354_s6 = inlined_call_operand.hbm [shape: f32[4,2,8], index: 6, kind: output, shape index: {}]  }
   0x1   :  { %12 = vsyncpa [#allocation8], 0 }
   0x2   :  { %13 = vsyncpa [#allocation6], 0  ;;  %s3722_s21 = smov [#allocation4]   ;;  %s3650_s25 = scalar_lea.hbm %s4348_s0, 192 }
   0x3   :  { %s19_s22 = sshll.u32 %s3722_s21, 4  ;;  %p3651_p0 = scmp.ne.s32.totalorder %s4348_s0, %s3650_s25  ;;  %s20_s22 = int_to_ptr.vmem [resolvable:$true] %s19_s22 }
   0x4   :  { %p3654_p1 = scmp.lt.u32.totalorder %s3650_s25, %s4348_s0 }
   0x6   :  { %p3656_p2 = pnand %p3654_p1, %p3651_p0 }
   0x8   :  { %3659 = shalt.err (!%p3656_p2)
}
   0x9   :  { %s3660_s30 = scalar_lea.vmem %s20_s22, 192  ;;  %p3665_p4 = scmp.lt.s32.totalorder %s20_s22, %s20_s22 }
   0xa   :  { %p3661_p3 = scmp.ne.s32.totalorder %s20_s22, %s3660_s30  ;;  %p3666_p5 = scmp.lt.s32.totalorder %s3660_s30, %s3660_s30 }
   0xc   :  { %p3667_p6 = por %p3666_p5, %p3665_p4 }
   0xe   :  { %p3668_p7 = pnand %p3667_p6, %p3661_p3 }
  0x10   :  { %3671 = shalt.err (!%p3668_p7)
}
  0x11   :  { %s3723_s7 = smov 32   ;;  %s3724_s8 = smov 2  }
  0x12   :  { %25 = dma.hbm_to_vmem [thread:$0]  %s4348_s0, 192, %s20_s22, [#allocation5], %s3723_s7, %s3723_s7, %s3724_s8  }
  0x13   :  { %s3725_s11 = smov [#allocation7]   ;;  %s3672_s15 = scalar_lea.hbm %s4350_s2, 1024 }
  0x14   :  { %s33_s12 = sshll.u32 %s3725_s11, 4  ;;  %p3673_p8 = scmp.ne.s32.totalorder %s4350_s2, %s3672_s15  ;;  %s34_s12 = int_to_ptr.vmem [resolvable:$true] %s33_s12 }
  0x15   :  { %p3676_p9 = scmp.lt.u32.totalorder %s3672_s15, %s4350_s2 }
  0x17   :  { %p3678_p10 = pnand %p3676_p9, %p3673_p8 }
  0x19   :  { %3681 = shalt.err (!%p3678_p10)
}
  0x1a   :  { %s3682_s20 = scalar_lea.vmem %s34_s12, 1024  ;;  %p3687_p12 = scmp.lt.s32.totalorder %s34_s12, %s34_s12 }
  0x1b   :  { %p3683_p11 = scmp.ne.s32.totalorder %s34_s12, %s3682_s20  ;;  %p3688_p13 = scmp.lt.s32.totalorder %s3682_s20, %s3682_s20 }
  0x1d   :  { %p3689_p0 = por %p3688_p13, %p3687_p12 }
  0x1f   :  { %p3690_p1 = pnand %p3689_p0, %p3683_p11 }
  0x21   :  { %3693 = shalt.err (!%p3690_p1)
}
  0x22   :  { %s3726_s0 = smov 128   ;;  %s3727_s21 = smov 8  }
  0x23   :  { %39 = dma.hbm_to_vmem [thread:$0]  %s4350_s2, 1024, %s34_s12, [#allocation8], %s3726_s0, %s3726_s0, %s3727_s21  }
  0x24   :  { %3716 = dma.done.wait [#allocation5], 192  }
  0x25   :  { %3717 = vsyncadd [#allocation5], 4294967104 }
  0x26   :  { %3718 = dma.done.wait [#allocation8], 1024  }
  0x27   :  { %3719 = vsyncadd [#allocation8], 4294966272  ;;  %vm52_vm0 = vcmask 582656   ;;  %v3728_v0 = vmov 0.0|0.0   ;;  %vm3729_vm1 = vmmov 0   ;;  %v3730_v1 = vmov 0.0  }
  0x28   :  { %3268 = vmatprep.subr.bf16.mxu0 %v3728_v0  ;;  %2914 = vmatprep.mubr.msk.f32.mxu0 %vm3729_vm1, %v3730_v1  ;;  %53 = vst.msk [vmem:[#allocation2] sm:$0x3] %vm52_vm0, %v3730_v1  ;;  %vm97_vm2 = vcmask 58368   ;;  %v57_v2 = vld [vmem:[%s4349_s1] sm:$0xff]  ;;  %v58_v3 = vld [vmem:[%s4349_s1 + $0x8] sm:$0xff]  ;;  %v59_v4 = vld [vmem:[%s4349_s1 + $0x10] sm:$0xff] }
  0x29   :  { %3274 = vmatprep.subr.bf16.mxu1 %v3728_v0  ;;  %2933 = vmatprep.mubr.msk.f32.mxu1 %vm3729_vm1, %v3730_v1  ;;  %v3815_v5 = vpack.c.bf16 %v58_v3, %v57_v2  ;;  %v60_v6 = vld [vmem:[%s4349_s1 + $0x18] sm:$0xff]  ;;  %v96_v7 = vld [vmem:[#allocation4] sm:$0x3]  ;;  %vm100_vm3 = vcmask 326656   ;;  %vm54_vm4 = vcmask 254976   ;;  %s3731_s13 = smov 64  }
  0x2a   :  { %98 = vst.msk [vmem:[#allocation2] sm:$0x3] %vm97_vm2, %v96_v7  ;;  %v3822_v8 = vpack.c.bf16 %v60_v6, %v59_v4  ;;  %v3830_v9 = vld [vmem:[%s4349_s1 + $0x20] sm:$0xff]  ;;  %v62_v29 = vld [vmem:[#allocation7] sm:$0xff]  ;;  %v65_v33 = vld [vmem:[#allocation7 + $0x18] sm:$0xff]  ;;  %s3732_s14 = smov 40  }
  0x2b   :  { %3270 = vmatpush3.bf16.msra.mxu0 %v3815_v5  ;;  %55 = vst.msk [vmem:[#allocation3] sm:$0x3] %vm54_vm4, %v3730_v1  ;;  %56 = vst.msk [vmem:[#allocation3 + $0x2] sm:$0x3] %vm54_vm4, %v3730_v1  ;;  %v3850_v11 = vld [vmem:[%s4351_s3] ss:$0 sm:$0xff] }
  0x2c   :  { %3271 = vmatprep.subr.bf16.mxu0 %v3728_v0  ;;  %v63_v30 = vld [vmem:[#allocation7 + $0x8] sm:$0xff]  ;;  %v64_v31 = vld [vmem:[#allocation7 + $0x10] sm:$0xff]  ;;  %v66_v37 = vld [vmem:[#allocation7 + $0x20] sm:$0xff]  ;;  %vm211_vm5 = vcmask 320576   ;;  %s3733_s15 = smov 120   ;;  %vm217_vm6 = vcmask 523264  }
  0x2d   :  { %v3860_v32 = vpack.c.bf16 %v63_v30, %v62_v29  ;;  %v3863_v36 = vpack.c.bf16 %v65_v33, %v64_v31  ;;  %v67_v38 = vld [vmem:[#allocation7 + $0x28] sm:$0xff]  ;;  %v68_v40 = vld [vmem:[#allocation7 + $0x30] sm:$0xff]  ;;  %v69_v41 = vld [vmem:[#allocation7 + $0x38] sm:$0xff]  ;;  %s3734_s18 = smov 96   ;;  %s3735_s19 = smov 72   ;;  %vm328_vm7 = vcmask 582976  }
  0x2e   :  { %v3868_v39 = vpack.c.bf16 %v67_v38, %v66_v37  ;;  %v3872_v42 = vpack.c.bf16 %v69_v41, %v68_v40  ;;  %v3894_v47 = vld [vmem:[%s4351_s3 + $0x1] ss:$0 sm:$0xff]  ;;  %v331_v7 = vld [vmem:[#allocation4 + $0x2] sm:$0x3]  ;;  %vm1704_vm8 = vcmask 261120  }
  0x2f   :  { %3273 = vmatpush3.bf16.msra.mxu0 %v3822_v8  ;;  %3276 = vmatpush3.bf16.msra.mxu1 %v3860_v32 }
  0x30   :  { %2912 = vmatprep.subr.mxu0 %v3730_v1  ;;  %3277 = vmatprep.subr.bf16.mxu1 %v3728_v0 }
  0x31   :  { %v99_v10 = vld [vmem:[#allocation2] sm:$0x3] }
  0x32   :  { %v180_v16 = vld [vmem:[#allocation3] sm:$0x3]  ;;  %v297_v45 = vld [vmem:[#allocation3 + $0x2] sm:$0x3] }
  0x33   :  { %2913 = vmatpush3.msra.mxu0 %v3830_v9  ;;  %3279 = vmatpush3.bf16.msra.mxu1 %v3863_v36 }
  0x34   :  { %2915 = vmatmul.mubr.msk.f32.vlgmr.msra.gmra.mrb[0].mxu0 %vm100_vm3, %v99_v10  ;;  %3286 = vmatprep.subr.bf16.mxu0 %v3728_v0 }
  0x35   :  { %3288 = vmatpush3.bf16.msra.mxu0 %v3815_v5  ;;  %2946 = vmatprep.mubr.msk.f32.mxu0 %vm3729_vm1, %v3730_v1 }
  0x36   :  { %3289 = vmatprep.subr.bf16.mxu0 %v3728_v0  ;;  %3280 = vmatprep.subr.bf16.mxu1 %v3728_v0 }
  0x37   :  { %3282 = vmatpush3.bf16.msra.mxu1 %v3868_v39 }
  0x38   :  { %3283 = vmatprep.subr.bf16.mxu1 %v3728_v0 }
  0x39   :  { %3291 = vmatpush3.bf16.msra.mxu0 %v3822_v8 }
  0x3a   :  { %2944 = vmatprep.subr.mxu0 %v3730_v1 }
  0x3b   :  { %3285 = vmatpush3.bf16.msra.mxu1 %v3872_v42 }
  0x3c   :  { %3292 = vmatprep.subr.bf16.mxu1 %v3728_v0 }
  0x3d   :  { %2945 = vmatpush3.msra.mxu0 %v3830_v9 }
  0x3e   :  { %3304 = vmatprep.subr.bf16.mxu0 %v3728_v0 }
 0x107   :  { %v170_v12 = vpop.f32.mrb[0].mxu0 }
 0x108   :  { %v171_v13 = vadd.f32 %v3850_v11, %v170_v12  ;;  %v2916_v14 = vpop.f32.mrb[1].mxu0 }
 0x10a   :  { %3487 = vtanh.f32 %v171_v13  ;;  %v174_v17 = vsub.f32 0.0, %v171_v13 }
 0x10c   :  { %v175_v18 = vmul.f32 1.442695, %v174_v17 }
 0x10e   :  { %3489 = vpow2.f32 %v175_v18 }
 0x114   :  { %v3488_v15 = vpop.eup %3487 }
 0x115   :  { %187 = vrot.lane.b32.xlu0 %v3488_v15, %s3731_s13 }
 0x118   :  { %v3490_v19 = vpop.eup %3489 }
 0x119   :  { %182 = vrot.lane.b32.xlu0 %v180_v16, %s3723_s7  ;;  %v177_v20 = vadd.f32 1.0, %v3490_v19 }
 0x11b   :  { %3491 = vrcp.f32 %v177_v20 }
 0x125   :  { %v3492_v21 = vpop.eup %3491 }
 0x187   :  { %v188_v22 = vpop.permute.xlu0 %187 }
 0x188   :  { %v190_v23 = vmul.f32 %v3492_v21, %v188_v22 }
 0x18a   :  { %192 = vrot.lane.b32.xlu1 %v190_v23, %s3723_s7 }
 0x18b   :  { %v183_v24 = vpop.permute.xlu0 %182 }
 0x18c   :  { %v185_v25 = vmul.f32 %v3492_v21, %v183_v24 }
 0x1fc   :  { %v193_v26 = vpop.permute.xlu1 %192 }
 0x1fd   :  { %v3856_v27 = vadd.f32 %v193_v26, %v185_v25 }
 0x1ff   :  { %3493 = vtanh.f32 %v3856_v27 }
 0x209   :  { %v3494_v28 = vpop.eup %3493 }
 0x20a   :  { %198 = vrot.lane.b32.xlu1 %v3494_v28, %s3731_s13 }
 0x27c   :  { %v199_v34 = vpop.permute.xlu1 %198 }
 0x27d   :  { %v201_v35 = vmul.f32 %v3492_v21, %v199_v34 }
 0x27f   :  { %208 = vrot.lane.b32.xlu0 %v201_v35, %s3732_s14 }
 0x2f1   :  { %v209_v43 = vpop.permute.xlu0 %208 }
 0x2f2   :  { %212 = vst.msk [vmem:[#allocation2] sm:$0x3] %vm211_vm5, %v209_v43 }
 0x2f9   :  { %v213_v44 = vld [vmem:[#allocation2] sm:$0x3] }
 0x2fa   :  { %215 = vrot.lane.b32.xlu1 %v213_v44, %s3733_s15 }
 0x2fe   :  { %299 = vrot.lane.b32.xlu1 %v297_v45, %s3723_s7 }
 0x36c   :  { %v216_v46 = vpop.permute.xlu1 %215 }
 0x36d   :  { %2934 = vmatmul.mubr.msk.f32.vlgmr.msra.gmra.mrb[0].mxu1 %vm217_vm6, %v216_v46 }
 0x36e   :  { %3294 = vmatpush3.bf16.msra.mxu1 %v3860_v32  ;;  %2965 = vmatprep.mubr.msk.f32.mxu1 %vm3729_vm1, %v3730_v1 }
 0x36f   :  { %3295 = vmatprep.subr.bf16.mxu1 %v3728_v0 }
 0x370   :  { %v300_v59 = vpop.permute.xlu1 %299 }
 0x372   :  { %3297 = vmatpush3.bf16.msra.mxu1 %v3863_v36 }
 0x373   :  { %3298 = vmatprep.subr.bf16.mxu1 %v3728_v0 }
 0x376   :  { %3300 = vmatpush3.bf16.msra.mxu1 %v3868_v39 }
 0x377   :  { %3301 = vmatprep.subr.bf16.mxu1 %v3728_v0 }
 0x37a   :  { %3303 = vmatpush3.bf16.msra.mxu1 %v3872_v42 }
 0x37b   :  { %3322 = vmatprep.subr.bf16.mxu1 %v3728_v0 }
 0x440   :  { %v286_v48 = vpop.f32.mrb[0].mxu1 }
 0x441   :  { %v287_v49 = vadd.f32 %v3894_v47, %v286_v48  ;;  %v2935_v50 = vpop.f32.mrb[1].mxu1 }
 0x443   :  { %3495 = vtanh.f32 %v287_v49  ;;  %v290_v52 = vsub.f32 0.0, %v287_v49 }
 0x445   :  { %v291_v53 = vmul.f32 1.442695, %v290_v52 }
 0x447   :  { %3497 = vpow2.f32 %v291_v53 }
 0x44d   :  { %v3496_v51 = vpop.eup %3495 }
 0x44e   :  { %304 = vrot.lane.b32.xlu0 %v3496_v51, %s3731_s13 }
 0x451   :  { %v3498_v54 = vpop.eup %3497 }
 0x452   :  { %v293_v55 = vadd.f32 1.0, %v3498_v54 }
 0x454   :  { %3499 = vrcp.f32 %v293_v55 }
 0x45e   :  { %v3500_v56 = vpop.eup %3499 }
 0x45f   :  { %v302_v60 = vmul.f32 %v3500_v56, %v300_v59 }
 0x4c0   :  { %v305_v57 = vpop.permute.xlu0 %304 }
 0x4c1   :  { %v307_v58 = vmul.f32 %v3500_v56, %v305_v57 }
 0x4c3   :  { %309 = vrot.lane.b32.xlu0 %v307_v58, %s3723_s7 }
 0x535   :  { %v310_v61 = vpop.permute.xlu0 %309 }
 0x536   :  { %v312_v62 = vadd.f32 %v310_v61, %v302_v60  ;;  %v560_v61 = vld [vmem:[#allocation4 + $0x4] sm:$0x3] }
 0x538   :  { %3501 = vtanh.f32 %v312_v62 }
 0x542   :  { %v3502_v63 = vpop.eup %3501 }
 0x543   :  { %315 = vrot.lane.b32.xlu1 %v3502_v63, %s3731_s13 }
 0x547   :  { %203 = vrot.lane.b32.xlu1 %v3856_v27, %s3734_s18 }
 0x5b5   :  { %v316_v2 = vpop.permute.xlu1 %315 }
 0x5b6   :  { %v318_v3 = vmul.f32 %v3500_v56, %v316_v2 }
 0x5b8   :  { %325 = vrot.lane.b32.xlu0 %v318_v3, %s3735_s19 }
 0x5b9   :  { %v204_v4 = vpop.permute.xlu1 %203 }
 0x5ba   :  { %206 = vst.msk [vmem:[#allocation3] sm:$0x3] %vm54_vm4, %v204_v4 }
 0x5c1   :  { %v413_v6 = vld [vmem:[#allocation3] sm:$0x3] }
 0x5c2   :  { %415 = vrot.lane.b32.xlu1 %v413_v6, %s3723_s7 }
 0x62a   :  { %v326_v10 = vpop.permute.xlu0 %325 }
 0x62b   :  { %329 = vst.msk [vmem:[#allocation2] sm:$0x3] %vm328_vm7, %v326_v10 }
 0x62c   :  { %332 = vst.msk [vmem:[#allocation2] sm:$0x3] %vm97_vm2, %v331_v7 }
 0x633   :  { %v333_v12 = vld [vmem:[#allocation2] sm:$0x3] }
 0x634   :  { %2947 = vmatmul.mubr.msk.f32.vlgmr.msra.gmra.mrb[2].mxu0 %vm100_vm3, %v333_v12  ;;  %v416_v24 = vpop.permute.xlu1 %415 }
 0x635   :  { %3306 = vmatpush3.bf16.msra.mxu0 %v3815_v5  ;;  %2978 = vmatprep.mubr.msk.f32.mxu0 %vm3729_vm1, %v3730_v1 }
 0x636   :  { %3307 = vmatprep.subr.bf16.mxu0 %v3728_v0 }
 0x639   :  { %3309 = vmatpush3.bf16.msra.mxu0 %v3822_v8 }
 0x63a   :  { %2976 = vmatprep.subr.mxu0 %v3730_v1 }
 0x63d   :  { %2977 = vmatpush3.msra.mxu0 %v3830_v9 }
 0x63e   :  { %3310 = vmatprep.subr.bf16.mxu0 %v3728_v0 }
 0x707   :  { %v403_v13 = vpop.f32.mrb[2].mxu0 }
 0x708   :  { %v404_v14 = vadd.f32 %v3850_v11, %v403_v13  ;;  %v2948_v15 = vpop.f32.mrb[3].mxu0 }
 0x70a   :  { %3503 = vtanh.f32 %v404_v14  ;;  %v407_v17 = vsub.f32 0.0, %v404_v14 }
 0x70c   :  { %v408_v18 = vmul.f32 1.442695, %v407_v17 }
 0x70e   :  { %3505 = vpow2.f32 %v408_v18 }
 0x714   :  { %v3504_v16 = vpop.eup %3503 }
 0x715   :  { %420 = vrot.lane.b32.xlu0 %v3504_v16, %s3731_s13 }
 0x718   :  { %v3506_v19 = vpop.eup %3505 }
 0x719   :  { %v410_v20 = vadd.f32 1.0, %v3506_v19 }
 0x71b   :  { %3507 = vrcp.f32 %v410_v20 }
 0x725   :  { %v3508_v21 = vpop.eup %3507 }
 0x726   :  { %v418_v25 = vmul.f32 %v3508_v21, %v416_v24 }
 0x787   :  { %v421_v22 = vpop.permute.xlu0 %420 }
 0x788   :  { %v423_v23 = vmul.f32 %v3508_v21, %v421_v22 }
 0x78a   :  { %425 = vrot.lane.b32.xlu0 %v423_v23, %s3723_s7 }
 0x7fc   :  { %v426_v26 = vpop.permute.xlu0 %425 }
 0x7fd   :  { %v428_v27 = vadd.f32 %v426_v26, %v418_v25 }
 0x7ff   :  { %3509 = vtanh.f32 %v428_v27 }
 0x809   :  { %v3510_v28 = vpop.eup %3509 }
 0x80a   :  { %431 = vrot.lane.b32.xlu1 %v3510_v28, %s3731_s13 }
 0x87c   :  { %v432_v29 = vpop.permute.xlu1 %431 }
 0x87d   :  { %v434_v30 = vmul.f32 %v3508_v21, %v432_v29 }
 0x87f   :  { %441 = vrot.lane.b32.xlu0 %v434_v30, %s3732_s14 }
 0x883   :  { %320 = vrot.lane.b32.xlu0 %v312_v62, %s3734_s18 }
 0x8f1   :  { %v442_v31 = vpop.permute.xlu0 %441 }
 0x8f2   :  { %444 = vst.msk [vmem:[#allocation2] sm:$0x3] %vm211_vm5, %v442_v31 }
 0x8f5   :  { %v321_v33 = vpop.permute.xlu0 %320 }
 0x8f6   :  { %323 = vst.msk [vmem:[#allocation3 + $0x2] sm:$0x3] %vm54_vm4, %v321_v33 }
 0x8f9   :  { %v445_v34 = vld [vmem:[#allocation2] sm:$0x3] }
 0x8fa   :  { %447 = vrot.lane.b32.xlu1 %v445_v34, %s3733_s15 }
 0x8fd   :  { %v527_v35 = vld [vmem:[#allocation3 + $0x2] sm:$0x3] }
 0x8fe   :  { %529 = vrot.lane.b32.xlu0 %v527_v35, %s3723_s7 }
 0x96c   :  { %v448_v37 = vpop.permute.xlu1 %447 }
 0x96d   :  { %2966 = vmatmul.mubr.msk.f32.vlgmr.msra.gmra.mrb[2].mxu1 %vm217_vm6, %v448_v37 }
 0x96e   :  { %3324 = vmatpush3.bf16.msra.mxu1 %v3815_v5  ;;  %3010 = vmatprep.mubr.msk.f32.mxu1 %vm3729_vm1, %v3730_v1 }
 0x96f   :  { %3325 = vmatprep.subr.bf16.mxu1 %v3728_v0 }
 0x970   :  { %v530_v52 = vpop.permute.xlu0 %529 }
 0x972   :  { %3327 = vmatpush3.bf16.msra.mxu1 %v3822_v8 }
 0x973   :  { %3008 = vmatprep.subr.mxu1 %v3730_v1 }
 0x976   :  { %3009 = vmatpush3.msra.mxu1 %v3830_v9 }
 0x977   :  { %3328 = vmatprep.subr.bf16.mxu1 %v3728_v0 }
 0xa40   :  { %v517_v38 = vpop.f32.mrb[2].mxu1 }
 0xa41   :  { %v518_v40 = vadd.f32 %v3894_v47, %v517_v38  ;;  %v2967_v41 = vpop.f32.mrb[3].mxu1 }
 0xa43   :  { %3511 = vtanh.f32 %v518_v40  ;;  %v521_v44 = vsub.f32 0.0, %v518_v40 }
 0xa45   :  { %v522_v45 = vmul.f32 1.442695, %v521_v44 }
 0xa47   :  { %3513 = vpow2.f32 %v522_v45 }
 0xa4d   :  { %v3512_v43 = vpop.eup %3511 }
 0xa4e   :  { %534 = vrot.lane.b32.xlu1 %v3512_v43, %s3731_s13 }
 0xa51   :  { %v3514_v46 = vpop.eup %3513 }
 0xa52   :  { %v524_v48 = vadd.f32 1.0, %v3514_v46 }
 0xa54   :  { %3515 = vrcp.f32 %v524_v48 }
 0xa5e   :  { %v3516_v49 = vpop.eup %3515 }
 0xa5f   :  { %v532_v53 = vmul.f32 %v3516_v49, %v530_v52 }
 0xac0   :  { %v535_v50 = vpop.permute.xlu1 %534 }
 0xac1   :  { %v537_v51 = vmul.f32 %v3516_v49, %v535_v50 }
 0xac3   :  { %539 = vrot.lane.b32.xlu1 %v537_v51, %s3723_s7 }
 0xb35   :  { %v540_v54 = vpop.permute.xlu1 %539 }
 0xb36   :  { %v542_v55 = vadd.f32 %v540_v54, %v532_v53  ;;  %v789_v54 = vld [vmem:[#allocation4 + $0x6] sm:$0x3] }
 0xb38   :  { %3517 = vtanh.f32 %v542_v55 }
 0xb42   :  { %v3518_v56 = vpop.eup %3517 }
 0xb43   :  { %545 = vrot.lane.b32.xlu0 %v3518_v56, %s3731_s13 }
 0xb47   :  { %436 = vrot.lane.b32.xlu0 %v428_v27, %s3734_s18 }
 0xbb5   :  { %v546_v57 = vpop.permute.xlu0 %545 }
 0xbb6   :  { %v548_v58 = vmul.f32 %v3516_v49, %v546_v57 }
 0xbb8   :  { %555 = vrot.lane.b32.xlu1 %v548_v58, %s3735_s19 }
 0xbb9   :  { %v437_v59 = vpop.permute.xlu0 %436 }
 0xbba   :  { %439 = vst.msk [vmem:[#allocation3] sm:$0x3] %vm54_vm4, %v437_v59 }
 0xbc1   :  { %v642_v60 = vld [vmem:[#allocation3] sm:$0x3] }
 0xbc2   :  { %644 = vrot.lane.b32.xlu0 %v642_v60, %s3723_s7 }
 0xc2a   :  { %v556_v62 = vpop.permute.xlu1 %555 }
 0xc2b   :  { %558 = vst.msk [vmem:[#allocation2] sm:$0x3] %vm328_vm7, %v556_v62 }
 0xc2c   :  { %561 = vst.msk [vmem:[#allocation2] sm:$0x3] %vm97_vm2, %v560_v61 }
 0xc33   :  { %v562_v63 = vld [vmem:[#allocation2] sm:$0x3] }
 0xc34   :  { %2979 = vmatmul.mubr.msk.f32.vlgmr.msra.gmra.mrb[4].mxu0 %vm100_vm3, %v562_v63  ;;  %v645_v17 = vpop.permute.xlu0 %644 }
 0xc35   :  { %3312 = vmatpush3.bf16.msra.mxu0 %v3860_v32  ;;  %2997 = vmatprep.mubr.msk.f32.mxu0 %vm3729_vm1, %v3730_v1 }
 0xc36   :  { %3313 = vmatprep.subr.bf16.mxu0 %v3728_v0 }
 0xc39   :  { %3315 = vmatpush3.bf16.msra.mxu0 %v3863_v36 }
 0xc3a   :  { %3316 = vmatprep.subr.bf16.mxu0 %v3728_v0 }
 0xc3d   :  { %3318 = vmatpush3.bf16.msra.mxu0 %v3868_v39 }
 0xc3e   :  { %3319 = vmatprep.subr.bf16.mxu0 %v3728_v0 }
 0xc41   :  { %3321 = vmatpush3.bf16.msra.mxu0 %v3872_v42 }
 0xc42   :  { %3340 = vmatprep.subr.bf16.mxu0 %v3728_v0 }
 0xd07   :  { %v632_v2 = vpop.f32.mrb[4].mxu0 }
 0xd08   :  { %v633_v3 = vadd.f32 %v3850_v11, %v632_v2  ;;  %v2980_v4 = vpop.f32.mrb[5].mxu0 }
 0xd0a   :  { %3519 = vtanh.f32 %v633_v3  ;;  %v636_v7 = vsub.f32 0.0, %v633_v3 }
 0xd0c   :  { %v637_v10 = vmul.f32 1.442695, %v636_v7 }
 0xd0e   :  { %3521 = vpow2.f32 %v637_v10 }
 0xd14   :  { %v3520_v6 = vpop.eup %3519 }
 0xd15   :  { %649 = vrot.lane.b32.xlu1 %v3520_v6, %s3731_s13 }
 0xd18   :  { %v3522_v12 = vpop.eup %3521 }
 0xd19   :  { %v639_v13 = vadd.f32 1.0, %v3522_v12 }
 0xd1b   :  { %3523 = vrcp.f32 %v639_v13 }
 0xd25   :  { %v3524_v14 = vpop.eup %3523 }
 0xd26   :  { %v647_v18 = vmul.f32 %v3524_v14, %v645_v17 }
 0xd87   :  { %v650_v15 = vpop.permute.xlu1 %649 }
 0xd88   :  { %v652_v16 = vmul.f32 %v3524_v14, %v650_v15 }
 0xd8a   :  { %654 = vrot.lane.b32.xlu1 %v652_v16, %s3723_s7 }
 0xdfc   :  { %v655_v19 = vpop.permute.xlu1 %654 }
 0xdfd   :  { %v657_v20 = vadd.f32 %v655_v19, %v647_v18 }
 0xdff   :  { %3525 = vtanh.f32 %v657_v20 }
 0xe09   :  { %v3526_v21 = vpop.eup %3525 }
 0xe0a   :  { %660 = vrot.lane.b32.xlu0 %v3526_v21, %s3731_s13 }
 0xe7c   :  { %v661_v22 = vpop.permute.xlu0 %660 }
 0xe7d   :  { %v663_v23 = vmul.f32 %v3524_v14, %v661_v22 }
 0xe7f   :  { %670 = vrot.lane.b32.xlu1 %v663_v23, %s3732_s14 }
 0xe83   :  { %550 = vrot.lane.b32.xlu1 %v542_v55, %s3734_s18 }
 0xef1   :  { %v671_v24 = vpop.permute.xlu1 %670 }
 0xef2   :  { %673 = vst.msk [vmem:[#allocation2] sm:$0x3] %vm211_vm5, %v671_v24 }
 0xef5   :  { %v551_v25 = vpop.permute.xlu1 %550 }
 0xef6   :  { %553 = vst.msk [vmem:[#allocation3 + $0x2] sm:$0x3] %vm54_vm4, %v551_v25 }
 0xef9   :  { %v674_v26 = vld [vmem:[#allocation2] sm:$0x3] }
 0xefa   :  { %676 = vrot.lane.b32.xlu0 %v674_v26, %s3733_s15 }
 0xefd   :  { %v756_v27 = vld [vmem:[#allocation3 + $0x2] sm:$0x3] }
 0xefe   :  { %758 = vrot.lane.b32.xlu1 %v756_v27, %s3723_s7 }
 0xf6c   :  { %v677_v28 = vpop.permute.xlu0 %676 }
 0xf6d   :  { %2998 = vmatmul.mubr.msk.f32.vlgmr.msra.gmra.mrb[6].mxu0 %vm217_vm6, %v677_v28 }
 0xf6e   :  { %3342 = vmatpush3.bf16.msra.mxu0 %v3815_v5  ;;  %3042 = vmatprep.mubr.msk.f32.mxu0 %vm3729_vm1, %v3730_v1 }
 0xf6f   :  { %3343 = vmatprep.subr.bf16.mxu0 %v3728_v0 }
 0xf70   :  { %v759_v44 = vpop.permute.xlu1 %758 }
 0xf72   :  { %3345 = vmatpush3.bf16.msra.mxu0 %v3822_v8 }
 0xf73   :  { %3040 = vmatprep.subr.mxu0 %v3730_v1 }
 0xf76   :  { %3041 = vmatpush3.msra.mxu0 %v3830_v9 }
 0xf77   :  { %3346 = vmatprep.subr.bf16.mxu0 %v3728_v0 }
0x1040   :  { %v746_v29 = vpop.f32.mrb[6].mxu0 }
0x1041   :  { %v747_v30 = vadd.f32 %v3894_v47, %v746_v29  ;;  %v2999_v31 = vpop.f32.mrb[7].mxu0 }
0x1043   :  { %3527 = vtanh.f32 %v747_v30  ;;  %v750_v34 = vsub.f32 0.0, %v747_v30 }
0x1045   :  { %v751_v35 = vmul.f32 1.442695, %v750_v34 }
0x1047   :  { %3529 = vpow2.f32 %v751_v35 }
0x104d   :  { %v3528_v33 = vpop.eup %3527 }
0x104e   :  { %763 = vrot.lane.b32.xlu0 %v3528_v33, %s3731_s13 }
0x1051   :  { %v3530_v37 = vpop.eup %3529 }
0x1052   :  { %v753_v38 = vadd.f32 1.0, %v3530_v37 }
0x1054   :  { %3531 = vrcp.f32 %v753_v38 }
0x105e   :  { %v3532_v40 = vpop.eup %3531 }
0x105f   :  { %v761_v45 = vmul.f32 %v3532_v40, %v759_v44 }
0x10c0   :  { %v764_v41 = vpop.permute.xlu0 %763 }
0x10c1   :  { %v766_v43 = vmul.f32 %v3532_v40, %v764_v41 }
0x10c3   :  { %768 = vrot.lane.b32.xlu0 %v766_v43, %s3723_s7 }
0x1135   :  { %v769_v46 = vpop.permute.xlu0 %768 }
0x1136   :  { %v771_v48 = vadd.f32 %v769_v46, %v761_v45  ;;  %v1018_v46 = vld [vmem:[#allocation4 + $0x8] sm:$0x3] }
0x1138   :  { %3533 = vtanh.f32 %v771_v48 }
0x1142   :  { %v3534_v49 = vpop.eup %3533 }
0x1143   :  { %774 = vrot.lane.b32.xlu1 %v3534_v49, %s3731_s13 }
0x1147   :  { %665 = vrot.lane.b32.xlu1 %v657_v20, %s3734_s18 }
0x11b5   :  { %v775_v50 = vpop.permute.xlu1 %774 }
0x11b6   :  { %v777_v51 = vmul.f32 %v3532_v40, %v775_v50 }
0x11b8   :  { %784 = vrot.lane.b32.xlu0 %v777_v51, %s3735_s19 }
0x11b9   :  { %v666_v52 = vpop.permute.xlu1 %665 }
0x11ba   :  { %668 = vst.msk [vmem:[#allocation3] sm:$0x3] %vm54_vm4, %v666_v52 }
0x11c1   :  { %v871_v53 = vld [vmem:[#allocation3] sm:$0x3] }
0x11c2   :  { %873 = vrot.lane.b32.xlu1 %v871_v53, %s3723_s7 }
0x122a   :  { %v785_v55 = vpop.permute.xlu0 %784 }
0x122b   :  { %787 = vst.msk [vmem:[#allocation2] sm:$0x3] %vm328_vm7, %v785_v55 }
0x122c   :  { %790 = vst.msk [vmem:[#allocation2] sm:$0x3] %vm97_vm2, %v789_v54 }
0x1233   :  { %v791_v56 = vld [vmem:[#allocation2] sm:$0x3] }
0x1234   :  { %3011 = vmatmul.mubr.msk.f32.vlgmr.msra.gmra.mrb[4].mxu1 %vm100_vm3, %v791_v56  ;;  %v874_v7 = vpop.permute.xlu1 %873 }
0x1235   :  { %3330 = vmatpush3.bf16.msra.mxu1 %v3860_v32  ;;  %3029 = vmatprep.mubr.msk.f32.mxu1 %vm3729_vm1, %v3730_v1 }
0x1236   :  { %3331 = vmatprep.subr.bf16.mxu1 %v3728_v0 }
0x1239   :  { %3333 = vmatpush3.bf16.msra.mxu1 %v3863_v36 }
0x123a   :  { %3334 = vmatprep.subr.bf16.mxu1 %v3728_v0 }
0x123d   :  { %3336 = vmatpush3.bf16.msra.mxu1 %v3868_v39 }
0x123e   :  { %3337 = vmatprep.subr.bf16.mxu1 %v3728_v0 }
0x1241   :  { %3339 = vmatpush3.bf16.msra.mxu1 %v3872_v42 }
0x1242   :  { %3358 = vmatprep.subr.bf16.mxu1 %v3728_v0 }
0x1307   :  { %v861_v57 = vpop.f32.mrb[4].mxu1 }
0x1308   :  { %v862_v58 = vadd.f32 %v3850_v11, %v861_v57  ;;  %v3012_v59 = vpop.f32.mrb[5].mxu1 }
0x130a   :  { %3535 = vtanh.f32 %v862_v58  ;;  %v865_v61 = vsub.f32 0.0, %v862_v58 }
0x130c   :  { %v866_v62 = vmul.f32 1.442695, %v865_v61 }
0x130e   :  { %3537 = vpow2.f32 %v866_v62 }
0x1314   :  { %v3536_v60 = vpop.eup %3535 }
0x1315   :  { %878 = vrot.lane.b32.xlu0 %v3536_v60, %s3731_s13 }
0x1318   :  { %v3538_v63 = vpop.eup %3537 }
0x1319   :  { %v868_v2 = vadd.f32 1.0, %v3538_v63 }
0x131b   :  { %3539 = vrcp.f32 %v868_v2 }
0x1325   :  { %v3540_v3 = vpop.eup %3539 }
0x1326   :  { %v876_v10 = vmul.f32 %v3540_v3, %v874_v7 }
0x1387   :  { %v879_v4 = vpop.permute.xlu0 %878 }
0x1388   :  { %v881_v6 = vmul.f32 %v3540_v3, %v879_v4 }
0x138a   :  { %883 = vrot.lane.b32.xlu0 %v881_v6, %s3723_s7 }
0x13fc   :  { %v884_v12 = vpop.permute.xlu0 %883 }
0x13fd   :  { %v886_v13 = vadd.f32 %v884_v12, %v876_v10 }
0x13ff   :  { %3541 = vtanh.f32 %v886_v13 }
0x1409   :  { %v3542_v14 = vpop.eup %3541 }
0x140a   :  { %889 = vrot.lane.b32.xlu1 %v3542_v14, %s3731_s13 }
0x147c   :  { %v890_v15 = vpop.permute.xlu1 %889 }
0x147d   :  { %v892_v16 = vmul.f32 %v3540_v3, %v890_v15 }
0x147f   :  { %899 = vrot.lane.b32.xlu0 %v892_v16, %s3732_s14 }
0x1483   :  { %779 = vrot.lane.b32.xlu0 %v771_v48, %s3734_s18 }
0x14f1   :  { %v900_v17 = vpop.permute.xlu0 %899 }
0x14f2   :  { %902 = vst.msk [vmem:[#allocation2] sm:$0x3] %vm211_vm5, %v900_v17 }
0x14f5   :  { %v780_v18 = vpop.permute.xlu0 %779 }
0x14f6   :  { %782 = vst.msk [vmem:[#allocation3 + $0x2] sm:$0x3] %vm54_vm4, %v780_v18 }
0x14f9   :  { %v903_v19 = vld [vmem:[#allocation2] sm:$0x3] }
0x14fa   :  { %905 = vrot.lane.b32.xlu1 %v903_v19, %s3733_s15 }
0x14fd   :  { %v985_v20 = vld [vmem:[#allocation3 + $0x2] sm:$0x3] }
0x14fe   :  { %987 = vrot.lane.b32.xlu0 %v985_v20, %s3723_s7 }
0x156c   :  { %v906_v21 = vpop.permute.xlu1 %905 }
0x156d   :  { %3030 = vmatmul.mubr.msk.f32.vlgmr.msra.gmra.mrb[6].mxu1 %vm217_vm6, %v906_v21 }
0x156e   :  { %3360 = vmatpush3.bf16.msra.mxu1 %v3815_v5  ;;  %3074 = vmatprep.mubr.msk.f32.mxu1 %vm3729_vm1, %v3730_v1 }
0x156f   :  { %3361 = vmatprep.subr.bf16.mxu1 %v3728_v0 }
0x1570   :  { %v988_v34 = vpop.permute.xlu0 %987 }
0x1572   :  { %3363 = vmatpush3.bf16.msra.mxu1 %v3822_v8 }
0x1573   :  { %3072 = vmatprep.subr.mxu1 %v3730_v1 }
0x1576   :  { %3073 = vmatpush3.msra.mxu1 %v3830_v9 }
0x1577   :  { %3364 = vmatprep.subr.bf16.mxu1 %v3728_v0 }
0x1640   :  { %v975_v22 = vpop.f32.mrb[6].mxu1 }
0x1641   :  { %v976_v23 = vadd.f32 %v3894_v47, %v975_v22  ;;  %v3031_v24 = vpop.f32.mrb[7].mxu1 }
0x1643   :  { %3543 = vtanh.f32 %v976_v23  ;;  %v979_v26 = vsub.f32 0.0, %v976_v23 }
0x1645   :  { %v980_v27 = vmul.f32 1.442695, %v979_v26 }
0x1647   :  { %3545 = vpow2.f32 %v980_v27 }
0x164d   :  { %v3544_v25 = vpop.eup %3543 }
0x164e   :  { %992 = vrot.lane.b32.xlu1 %v3544_v25, %s3731_s13 }
0x1651   :  { %v3546_v28 = vpop.eup %3545 }
0x1652   :  { %v982_v29 = vadd.f32 1.0, %v3546_v28 }
0x1654   :  { %3547 = vrcp.f32 %v982_v29 }
0x165e   :  { %v3548_v30 = vpop.eup %3547 }
0x165f   :  { %v990_v35 = vmul.f32 %v3548_v30, %v988_v34 }
0x16c0   :  { %v993_v31 = vpop.permute.xlu1 %992 }
0x16c1   :  { %v995_v33 = vmul.f32 %v3548_v30, %v993_v31 }
0x16c3   :  { %997 = vrot.lane.b32.xlu1 %v995_v33, %s3723_s7 }
0x1735   :  { %v998_v37 = vpop.permute.xlu1 %997 }
0x1736   :  { %v1000_v38 = vadd.f32 %v998_v37, %v990_v35  ;;  %v1247_v35 = vld [vmem:[#allocation4 + $0xa] sm:$0x3] }
0x1738   :  { %3549 = vtanh.f32 %v1000_v38 }
0x1742   :  { %v3550_v40 = vpop.eup %3549 }
0x1743   :  { %1003 = vrot.lane.b32.xlu0 %v3550_v40, %s3731_s13 }
0x1747   :  { %894 = vrot.lane.b32.xlu0 %v886_v13, %s3734_s18 }
0x17b5   :  { %v1004_v41 = vpop.permute.xlu0 %1003 }
0x17b6   :  { %v1006_v43 = vmul.f32 %v3548_v30, %v1004_v41 }
0x17b8   :  { %1013 = vrot.lane.b32.xlu1 %v1006_v43, %s3735_s19 }
0x17b9   :  { %v895_v44 = vpop.permute.xlu0 %894 }
0x17ba   :  { %897 = vst.msk [vmem:[#allocation3] sm:$0x3] %vm54_vm4, %v895_v44 }
0x17c1   :  { %v1100_v45 = vld [vmem:[#allocation3] sm:$0x3] }
0x17c2   :  { %1102 = vrot.lane.b32.xlu0 %v1100_v45, %s3723_s7 }
0x182a   :  { %v1014_v48 = vpop.permute.xlu1 %1013 }
0x182b   :  { %1016 = vst.msk [vmem:[#allocation2] sm:$0x3] %vm328_vm7, %v1014_v48 }
0x182c   :  { %1019 = vst.msk [vmem:[#allocation2] sm:$0x3] %vm97_vm2, %v1018_v46 }
0x1833   :  { %v1020_v49 = vld [vmem:[#allocation2] sm:$0x3] }
0x1834   :  { %3043 = vmatmul.mubr.msk.f32.vlgmr.msra.gmra.mrb[8].mxu0 %vm100_vm3, %v1020_v49  ;;  %v1103_v61 = vpop.permute.xlu0 %1102 }
0x1835   :  { %3348 = vmatpush3.bf16.msra.mxu0 %v3860_v32  ;;  %3061 = vmatprep.mubr.msk.f32.mxu0 %vm3729_vm1, %v3730_v1 }
0x1836   :  { %3349 = vmatprep.subr.bf16.mxu0 %v3728_v0 }
0x1839   :  { %3351 = vmatpush3.bf16.msra.mxu0 %v3863_v36 }
0x183a   :  { %3352 = vmatprep.subr.bf16.mxu0 %v3728_v0 }
0x183d   :  { %3354 = vmatpush3.bf16.msra.mxu0 %v3868_v39 }
0x183e   :  { %3355 = vmatprep.subr.bf16.mxu0 %v3728_v0 }
0x1841   :  { %3357 = vmatpush3.bf16.msra.mxu0 %v3872_v42 }
0x1842   :  { %3376 = vmatprep.subr.bf16.mxu0 %v3728_v0 }
0x1907   :  { %v1090_v50 = vpop.f32.mrb[8].mxu0 }
0x1908   :  { %v1091_v51 = vadd.f32 %v3850_v11, %v1090_v50  ;;  %v3044_v52 = vpop.f32.mrb[9].mxu0 }
0x190a   :  { %3551 = vtanh.f32 %v1091_v51  ;;  %v1094_v54 = vsub.f32 0.0, %v1091_v51 }
0x190c   :  { %v1095_v55 = vmul.f32 1.442695, %v1094_v54 }
0x190e   :  { %3553 = vpow2.f32 %v1095_v55 }
0x1914   :  { %v3552_v53 = vpop.eup %3551 }
0x1915   :  { %1107 = vrot.lane.b32.xlu1 %v3552_v53, %s3731_s13 }
0x1918   :  { %v3554_v56 = vpop.eup %3553 }
0x1919   :  { %v1097_v57 = vadd.f32 1.0, %v3554_v56 }
0x191b   :  { %3555 = vrcp.f32 %v1097_v57 }
0x1925   :  { %v3556_v58 = vpop.eup %3555 }
0x1926   :  { %v1105_v62 = vmul.f32 %v3556_v58, %v1103_v61 }
0x1987   :  { %v1108_v59 = vpop.permute.xlu1 %1107 }
0x1988   :  { %v1110_v60 = vmul.f32 %v3556_v58, %v1108_v59 }
0x198a   :  { %1112 = vrot.lane.b32.xlu1 %v1110_v60, %s3723_s7 }
0x19fc   :  { %v1113_v63 = vpop.permute.xlu1 %1112 }
0x19fd   :  { %v1115_v2 = vadd.f32 %v1113_v63, %v1105_v62 }
0x19ff   :  { %3557 = vtanh.f32 %v1115_v2 }
0x1a09   :  { %v3558_v3 = vpop.eup %3557 }
0x1a0a   :  { %1118 = vrot.lane.b32.xlu0 %v3558_v3, %s3731_s13 }
0x1a7c   :  { %v1119_v4 = vpop.permute.xlu0 %1118 }
0x1a7d   :  { %v1121_v6 = vmul.f32 %v3556_v58, %v1119_v4 }
0x1a7f   :  { %1128 = vrot.lane.b32.xlu1 %v1121_v6, %s3732_s14 }
0x1a83   :  { %1008 = vrot.lane.b32.xlu1 %v1000_v38, %s3734_s18 }
0x1af1   :  { %v1129_v7 = vpop.permute.xlu1 %1128 }
0x1af2   :  { %1131 = vst.msk [vmem:[#allocation2] sm:$0x3] %vm211_vm5, %v1129_v7 }
0x1af5   :  { %v1009_v10 = vpop.permute.xlu1 %1008 }
0x1af6   :  { %1011 = vst.msk [vmem:[#allocation3 + $0x2] sm:$0x3] %vm54_vm4, %v1009_v10 }
0x1af9   :  { %v1132_v12 = vld [vmem:[#allocation2] sm:$0x3] }
0x1afa   :  { %1134 = vrot.lane.b32.xlu0 %v1132_v12, %s3733_s15 }
0x1afd   :  { %v1214_v13 = vld [vmem:[#allocation3 + $0x2] sm:$0x3] }
0x1afe   :  { %1216 = vrot.lane.b32.xlu1 %v1214_v13, %s3723_s7 }
0x1b6c   :  { %v1135_v14 = vpop.permute.xlu0 %1134 }
0x1b6d   :  { %3062 = vmatmul.mubr.msk.f32.vlgmr.msra.gmra.mrb[10].mxu0 %vm217_vm6, %v1135_v14 }
0x1b6e   :  { %3378 = vmatpush3.bf16.msra.mxu0 %v3815_v5  ;;  %3106 = vmatprep.mubr.msk.f32.mxu0 %vm3729_vm1, %v3730_v1 }
0x1b6f   :  { %3379 = vmatprep.subr.bf16.mxu0 %v3728_v0 }
0x1b72   :  { %3381 = vmatpush3.bf16.msra.mxu0 %v3822_v8 }
0x1b73   :  { %3104 = vmatprep.subr.mxu0 %v3730_v1 }
0x1b76   :  { %3105 = vmatpush3.msra.mxu0 %v3830_v9  ;;  %v1217_v9 = vpop.permute.xlu1 %1216 }
0x1b77   :  { %3382 = vmatprep.subr.bf16.mxu0 %v3728_v0 }
0x1c40   :  { %v1204_v15 = vpop.f32.mrb[10].mxu0 }
0x1c41   :  { %v1205_v16 = vadd.f32 %v3894_v47, %v1204_v15  ;;  %v3063_v17 = vpop.f32.mrb[11].mxu0 }
0x1c43   :  { %3559 = vtanh.f32 %v1205_v16  ;;  %v1208_v19 = vsub.f32 0.0, %v1205_v16 }
0x1c45   :  { %v1209_v20 = vmul.f32 1.442695, %v1208_v19 }
0x1c47   :  { %3561 = vpow2.f32 %v1209_v20 }
0x1c4d   :  { %v3560_v18 = vpop.eup %3559 }
0x1c4e   :  { %1221 = vrot.lane.b32.xlu0 %v3560_v18, %s3731_s13 }
0x1c51   :  { %v3562_v21 = vpop.eup %3561 }
0x1c52   :  { %v1211_v22 = vadd.f32 1.0, %v3562_v21 }
0x1c54   :  { %3563 = vrcp.f32 %v1211_v22 }
0x1c5e   :  { %v3564_v23 = vpop.eup %3563 }
0x1c5f   :  { %v1219_v26 = vmul.f32 %v3564_v23, %v1217_v9 }
0x1cc0   :  { %v1222_v24 = vpop.permute.xlu0 %1221 }
0x1cc1   :  { %v1224_v25 = vmul.f32 %v3564_v23, %v1222_v24 }
0x1cc3   :  { %1226 = vrot.lane.b32.xlu0 %v1224_v25, %s3723_s7 }
0x1d35   :  { %v1227_v27 = vpop.permute.xlu0 %1226 }
0x1d36   :  { %v1229_v28 = vadd.f32 %v1227_v27, %v1219_v26  ;;  %v4114_v27 = vld [vmem:[%s4351_s3] ss:$0 sm:$0xff] }
0x1d38   :  { %3565 = vtanh.f32 %v1229_v28 }
0x1d42   :  { %v3566_v29 = vpop.eup %3565 }
0x1d43   :  { %1232 = vrot.lane.b32.xlu1 %v3566_v29, %s3731_s13 }
0x1d47   :  { %1123 = vrot.lane.b32.xlu1 %v1115_v2, %s3734_s18 }
0x1db5   :  { %v1233_v30 = vpop.permute.xlu1 %1232 }
0x1db6   :  { %v1235_v31 = vmul.f32 %v3564_v23, %v1233_v30 }
0x1db8   :  { %1242 = vrot.lane.b32.xlu0 %v1235_v31, %s3735_s19 }
0x1db9   :  { %v1124_v33 = vpop.permute.xlu1 %1123 }
0x1dba   :  { %1126 = vst.msk [vmem:[#allocation3] sm:$0x3] %vm54_vm4, %v1124_v33 }
0x1dc1   :  { %v1329_v34 = vld [vmem:[#allocation3] sm:$0x3] }
0x1dc2   :  { %1331 = vrot.lane.b32.xlu1 %v1329_v34, %s3723_s7 }
0x1e2a   :  { %v1243_v37 = vpop.permute.xlu0 %1242 }
0x1e2b   :  { %1245 = vst.msk [vmem:[#allocation2] sm:$0x3] %vm328_vm7, %v1243_v37 }
0x1e2c   :  { %1248 = vst.msk [vmem:[#allocation2] sm:$0x3] %vm97_vm2, %v1247_v35 }
0x1e33   :  { %v1249_v38 = vld [vmem:[#allocation2] sm:$0x3] }
0x1e34   :  { %3075 = vmatmul.mubr.msk.f32.vlgmr.msra.gmra.mrb[8].mxu1 %vm100_vm3, %v1249_v38  ;;  %v1332_v53 = vpop.permute.xlu1 %1331 }
0x1e35   :  { %3366 = vmatpush3.bf16.msra.mxu1 %v3860_v32  ;;  %3093 = vmatprep.mubr.msk.f32.mxu1 %vm3729_vm1, %v3730_v1 }
0x1e36   :  { %3367 = vmatprep.subr.bf16.mxu1 %v3728_v0 }
0x1e39   :  { %3369 = vmatpush3.bf16.msra.mxu1 %v3863_v36 }
0x1e3a   :  { %3370 = vmatprep.subr.bf16.mxu1 %v3728_v0 }
0x1e3d   :  { %3372 = vmatpush3.bf16.msra.mxu1 %v3868_v39 }
0x1e3e   :  { %3373 = vmatprep.subr.bf16.mxu1 %v3728_v0 }
0x1e41   :  { %3375 = vmatpush3.bf16.msra.mxu1 %v3872_v42 }
0x1e42   :  { %3394 = vmatprep.subr.bf16.mxu1 %v3728_v0 }
0x1f07   :  { %v1319_v40 = vpop.f32.mrb[8].mxu1 }
0x1f08   :  { %v1320_v41 = vadd.f32 %v3850_v11, %v1319_v40  ;;  %v3076_v43 = vpop.f32.mrb[9].mxu1 }
0x1f0a   :  { %3567 = vtanh.f32 %v1320_v41  ;;  %v1323_v45 = vsub.f32 0.0, %v1320_v41 }
0x1f0c   :  { %v1324_v46 = vmul.f32 1.442695, %v1323_v45 }
0x1f0e   :  { %3569 = vpow2.f32 %v1324_v46 }
0x1f14   :  { %v3568_v44 = vpop.eup %3567 }
0x1f15   :  { %1336 = vrot.lane.b32.xlu0 %v3568_v44, %s3731_s13 }
0x1f18   :  { %v3570_v48 = vpop.eup %3569 }
0x1f19   :  { %v1326_v49 = vadd.f32 1.0, %v3570_v48 }
0x1f1b   :  { %3571 = vrcp.f32 %v1326_v49 }
0x1f25   :  { %v3572_v50 = vpop.eup %3571 }
0x1f26   :  { %v1334_v54 = vmul.f32 %v3572_v50, %v1332_v53 }
0x1f87   :  { %v1337_v51 = vpop.permute.xlu0 %1336 }
0x1f88   :  { %v1339_v52 = vmul.f32 %v3572_v50, %v1337_v51 }
0x1f8a   :  { %1341 = vrot.lane.b32.xlu0 %v1339_v52, %s3723_s7 }
0x1ffc   :  { %v1342_v55 = vpop.permute.xlu0 %1341 }
0x1ffd   :  { %v1344_v11 = vadd.f32 %v1342_v55, %v1334_v54 }
0x1fff   :  { %3573 = vtanh.f32 %v1344_v11 }
0x2009   :  { %v3574_v56 = vpop.eup %3573 }
0x200a   :  { %1347 = vrot.lane.b32.xlu1 %v3574_v56, %s3731_s13 }
0x207c   :  { %v1348_v57 = vpop.permute.xlu1 %1347 }
0x207d   :  { %v1350_v58 = vmul.f32 %v3572_v50, %v1348_v57 }
0x207f   :  { %1357 = vrot.lane.b32.xlu0 %v1350_v58, %s3732_s14 }
0x2083   :  { %1237 = vrot.lane.b32.xlu0 %v1229_v28, %s3734_s18 }
0x20f1   :  { %v1358_v59 = vpop.permute.xlu0 %1357 }
0x20f2   :  { %1360 = vst.msk [vmem:[#allocation2] sm:$0x3] %vm211_vm5, %v1358_v59 }
0x20f5   :  { %v1238_v60 = vpop.permute.xlu0 %1237 }
0x20f6   :  { %1240 = vst.msk [vmem:[#allocation3 + $0x2] sm:$0x3] %vm54_vm4, %v1238_v60 }
0x20f9   :  { %v1361_v61 = vld [vmem:[#allocation2] sm:$0x3] }
0x20fa   :  { %1363 = vrot.lane.b32.xlu1 %v1361_v61, %s3733_s15 }
0x20fd   :  { %v1443_v62 = vld [vmem:[#allocation3 + $0x2] sm:$0x3] }
0x20fe   :  { %1445 = vrot.lane.b32.xlu0 %v1443_v62, %s3723_s7 }
0x216c   :  { %v1364_v63 = vpop.permute.xlu1 %1363 }
0x216d   :  { %3094 = vmatmul.mubr.msk.f32.vlgmr.msra.gmra.mrb[10].mxu1 %vm217_vm6, %v1364_v63 }
0x216e   :  { %3136 = vmatprep.mubr.msk.f32.mxu1 %vm3729_vm1, %v3730_v1 }
0x2170   :  { %v1446_v17 = vpop.permute.xlu0 %1445 }
0x2240   :  { %v1433_v2 = vpop.f32.mrb[10].mxu1 }
0x2241   :  { %v1434_v3 = vadd.f32 %v3894_v47, %v1433_v2  ;;  %v3095_v4 = vpop.f32.mrb[11].mxu1 }
0x2243   :  { %3575 = vtanh.f32 %v1434_v3  ;;  %v1437_v7 = vsub.f32 0.0, %v1434_v3 }
0x2245   :  { %v1438_v10 = vmul.f32 1.442695, %v1437_v7 }
0x2247   :  { %3577 = vpow2.f32 %v1438_v10 }
0x224d   :  { %v3576_v6 = vpop.eup %3575 }
0x224e   :  { %1450 = vrot.lane.b32.xlu1 %v3576_v6, %s3731_s13 }
0x2251   :  { %v3578_v12 = vpop.eup %3577 }
0x2252   :  { %v1440_v13 = vadd.f32 1.0, %v3578_v12  ;;  %v85_v12 = vld [vmem:[%s4352_s4] sm:$0xff] }
0x2254   :  { %3579 = vrcp.f32 %v1440_v13  ;;  %v86_v13 = vld [vmem:[%s4352_s4 + $0x8] sm:$0xff] }
0x225e   :  { %v3580_v14 = vpop.eup %3579 }
0x225f   :  { %v1448_v18 = vmul.f32 %v3580_v14, %v1446_v17 }
0x22c0   :  { %v1451_v15 = vpop.permute.xlu1 %1450 }
0x22c1   :  { %v1453_v16 = vmul.f32 %v3580_v14, %v1451_v15  ;;  %v4160_v15 = vpack.c.bf16 %v86_v13, %v85_v12 }
0x22c3   :  { %1455 = vrot.lane.b32.xlu1 %v1453_v16, %s3723_s7  ;;  %v88_v16 = vld [vmem:[%s4352_s4 + $0x18] sm:$0xff]  ;;  %3396 = vmatpush3.bf16.msra.mxu1 %v4160_v15 }
0x22c4   :  { %3397 = vmatprep.subr.bf16.mxu1 %v3728_v0 }
0x2335   :  { %v1456_v19 = vpop.permute.xlu1 %1455 }
0x2336   :  { %v1458_v47 = vadd.f32 %v1456_v19, %v1448_v18 }
0x2338   :  { %3581 = vtanh.f32 %v1458_v47 }
0x2342   :  { %v3582_v20 = vpop.eup %3581 }
0x2343   :  { %1461 = vrot.lane.b32.xlu0 %v3582_v20, %s3731_s13 }
0x2347   :  { %1352 = vrot.lane.b32.xlu0 %v1344_v11, %s3734_s18  ;;  %v4143_v11 = vld [vmem:[%s4351_s3 + $0x1] ss:$0 sm:$0xff] }
0x23b5   :  { %v1462_v21 = vpop.permute.xlu0 %1461 }
0x23b6   :  { %v1464_v22 = vmul.f32 %v3580_v14, %v1462_v21  ;;  %v87_v14 = vld [vmem:[%s4352_s4 + $0x10] sm:$0xff] }
0x23b7   :  { %v4166_v17 = vpack.c.bf16 %v88_v16, %v87_v14 }
0x23b8   :  { %1471 = vrot.lane.b32.xlu1 %v1464_v22, %s3735_s19 }
0x23b9   :  { %v1353_v23 = vpop.permute.xlu0 %1352  ;;  %3399 = vmatpush3.bf16.msra.mxu1 %v4166_v17 }
0x23ba   :  { %1355 = vst.msk [vmem:[#allocation3] sm:$0x3] %vm54_vm4, %v1353_v23  ;;  %3400 = vmatprep.subr.bf16.mxu1 %v3728_v0  ;;  %v4188_v23 = vld [vmem:[%s4349_s1 + $0x20] sm:$0xff]  ;;  %s3736_s1 = smov [#allocation9]  }
0x23c1   :  { %v1556_v24 = vld [vmem:[#allocation3] sm:$0x3] }
0x23c2   :  { %1558 = vrot.lane.b32.xlu0 %v1556_v24, %s3723_s7 }
0x242a   :  { %v1472_v25 = vpop.permute.xlu1 %1471 }
0x242b   :  { %1474 = vst.msk [vmem:[#allocation2] sm:$0x3] %vm328_vm7, %v1472_v25  ;;  %v4196_v25 = vld [vmem:[%s4353_s5] ss:$0 sm:$0xff]  ;;  %s2693_s5 = sshll.u32 %s3736_s1, 4  ;;  %s2694_s5 = int_to_ptr.vmem [resolvable:$true] %s2693_s5 }
0x242c   :  { %1475 = vst.msk [vmem:[#allocation2] sm:$0x3] %vm97_vm2, %v3730_v1  ;;  %s3694_s10 = scalar_lea.vmem %s2694_s5, 128  ;;  %p3699_p3 = scmp.lt.s32.totalorder %s2694_s5, %s2694_s5 }
0x242d   :  { %p3695_p2 = scmp.ne.s32.totalorder %s2694_s5, %s3694_s10  ;;  %p3700_p4 = scmp.lt.s32.totalorder %s3694_s10, %s3694_s10 }
0x242f   :  { %p3701_p5 = por %p3700_p4, %p3699_p3 }
0x2431   :  { %p3702_p6 = pnand %p3701_p5, %p3695_p2 }
0x2433   :  { %v1476_v9 = vld [vmem:[#allocation2] sm:$0x3] }
0x2434   :  { %3107 = vmatmul.mubr.msk.f32.vlgmr.msra.gmra.mrb[12].mxu0 %vm100_vm3, %v1476_v9  ;;  %v1559_v41 = vpop.permute.xlu0 %1558 }
0x2435   :  { %3384 = vmatpush3.bf16.msra.mxu0 %v3860_v32  ;;  %3125 = vmatprep.mubr.msk.f32.mxu0 %vm3729_vm1, %v3730_v1 }
0x2436   :  { %3385 = vmatprep.subr.bf16.mxu0 %v3728_v0 }
0x2439   :  { %3387 = vmatpush3.bf16.msra.mxu0 %v3863_v36 }
0x243a   :  { %3388 = vmatprep.subr.bf16.mxu0 %v3728_v0 }
0x243d   :  { %3390 = vmatpush3.bf16.msra.mxu0 %v3868_v39 }
0x243e   :  { %3391 = vmatprep.subr.bf16.mxu0 %v3728_v0 }
0x2441   :  { %3393 = vmatpush3.bf16.msra.mxu0 %v3872_v42 }
0x2442   :  { %3406 = vmatprep.subr.bf16.mxu0 %v3728_v0 }
0x2507   :  { %v1546_v26 = vpop.f32.mrb[12].mxu0 }
0x2508   :  { %v1547_v28 = vadd.f32 %v4114_v27, %v1546_v26  ;;  %v3108_v29 = vpop.f32.mrb[13].mxu0 }
0x250a   :  { %3583 = vtanh.f32 %v1547_v28  ;;  %v1550_v31 = vsub.f32 0.0, %v1547_v28 }
0x250c   :  { %v1551_v33 = vmul.f32 1.442695, %v1550_v31 }
0x250e   :  { %3585 = vpow2.f32 %v1551_v33 }
0x2514   :  { %v3584_v30 = vpop.eup %3583 }
0x2515   :  { %1563 = vrot.lane.b32.xlu1 %v3584_v30, %s3731_s13 }
0x2518   :  { %v3586_v34 = vpop.eup %3585 }
0x2519   :  { %v1553_v35 = vadd.f32 1.0, %v3586_v34 }
0x251b   :  { %3587 = vrcp.f32 %v1553_v35 }
0x2525   :  { %v3588_v37 = vpop.eup %3587 }
0x2526   :  { %v1561_v43 = vmul.f32 %v3588_v37, %v1559_v41 }
0x2587   :  { %v1564_v38 = vpop.permute.xlu1 %1563 }
0x2588   :  { %v1566_v40 = vmul.f32 %v3588_v37, %v1564_v38 }
0x258a   :  { %1568 = vrot.lane.b32.xlu1 %v1566_v40, %s3723_s7 }
0x25fc   :  { %v1569_v44 = vpop.permute.xlu1 %1568 }
0x25fd   :  { %v4119_v45 = vadd.f32 %v1569_v44, %v1561_v43 }
0x25ff   :  { %3589 = vtanh.f32 %v4119_v45 }
0x2609   :  { %v3590_v46 = vpop.eup %3589 }
0x260a   :  { %1574 = vrot.lane.b32.xlu0 %v3590_v46, %s3731_s13 }
0x267c   :  { %v1575_v48 = vpop.permute.xlu0 %1574 }
0x267d   :  { %v1577_v49 = vmul.f32 %v3588_v37, %v1575_v48 }
0x267f   :  { %1584 = vrot.lane.b32.xlu1 %v1577_v49, %s3732_s14 }
0x2683   :  { %1466 = vrot.lane.b32.xlu1 %v1458_v47, %s3734_s18 }
0x26f1   :  { %v1585_v50 = vpop.permute.xlu1 %1584 }
0x26f2   :  { %1587 = vst.msk [vmem:[#allocation2] sm:$0x3] %vm211_vm5, %v1585_v50 }
0x26f5   :  { %v1467_v51 = vpop.permute.xlu1 %1466 }
0x26f6   :  { %1469 = vst.msk [vmem:[#allocation3 + $0x2] sm:$0x3] %vm54_vm4, %v1467_v51 }
0x26f9   :  { %v1588_v52 = vld [vmem:[#allocation2] sm:$0x3] }
0x26fa   :  { %1590 = vrot.lane.b32.xlu0 %v1588_v52, %s3733_s15 }
0x26fd   :  { %v1670_v53 = vld [vmem:[#allocation3 + $0x2] sm:$0x3] }
0x26fe   :  { %1672 = vrot.lane.b32.xlu1 %v1670_v53, %s3723_s7 }
0x276c   :  { %v1591_v54 = vpop.permute.xlu0 %1590 }
0x276d   :  { %3126 = vmatmul.mubr.msk.f32.vlgmr.msra.gmra.mrb[14].mxu0 %vm217_vm6, %v1591_v54 }
0x276e   :  { %3408 = vmatpush3.bf16.msra.mxu0 %v3860_v32  ;;  %3168 = vmatprep.mubr.msk.f32.mxu0 %vm3729_vm1, %v3730_v1 }
0x276f   :  { %3409 = vmatprep.subr.bf16.mxu0 %v3728_v0 }
0x2770   :  { %v1673_v4 = vpop.permute.xlu1 %1672 }
0x2772   :  { %3411 = vmatpush3.bf16.msra.mxu0 %v3863_v36 }
0x2773   :  { %3412 = vmatprep.subr.bf16.mxu0 %v3728_v0 }
0x2776   :  { %3414 = vmatpush3.bf16.msra.mxu0 %v3868_v39 }
0x2777   :  { %3415 = vmatprep.subr.bf16.mxu0 %v3728_v0 }
0x277a   :  { %3417 = vmatpush3.bf16.msra.mxu0 %v3872_v42 }
0x277b   :  { %3430 = vmatprep.subr.bf16.mxu0 %v3728_v0 }
0x2840   :  { %v1660_v55 = vpop.f32.mrb[14].mxu0 }
0x2841   :  { %v1661_v56 = vadd.f32 %v4143_v11, %v1660_v55  ;;  %v3127_v57 = vpop.f32.mrb[15].mxu0 }
0x2843   :  { %3591 = vtanh.f32 %v1661_v56  ;;  %v1664_v59 = vsub.f32 0.0, %v1661_v56 }
0x2845   :  { %v1665_v60 = vmul.f32 1.442695, %v1664_v59 }
0x2847   :  { %3593 = vpow2.f32 %v1665_v60 }
0x284d   :  { %v3592_v58 = vpop.eup %3591 }
0x284e   :  { %1677 = vrot.lane.b32.xlu0 %v3592_v58, %s3731_s13 }
0x2851   :  { %v3594_v61 = vpop.eup %3593 }
0x2852   :  { %v1667_v62 = vadd.f32 1.0, %v3594_v61 }
0x2854   :  { %3595 = vrcp.f32 %v1667_v62 }
0x285e   :  { %v3596_v63 = vpop.eup %3595 }
0x285f   :  { %v1675_v6 = vmul.f32 %v3596_v63, %v1673_v4 }
0x28c0   :  { %v1678_v2 = vpop.permute.xlu0 %1677 }
0x28c1   :  { %v1680_v3 = vmul.f32 %v3596_v63, %v1678_v2 }
0x28c3   :  { %1682 = vrot.lane.b32.xlu0 %v1680_v3, %s3723_s7 }
0x2935   :  { %v1683_v7 = vpop.permute.xlu0 %1682 }
0x2936   :  { %v4148_v10 = vadd.f32 %v1683_v7, %v1675_v6 }
0x2938   :  { %3597 = vtanh.f32 %v4148_v10 }
0x2942   :  { %v3598_v18 = vpop.eup %3597 }
0x2943   :  { %1688 = vrot.lane.b32.xlu1 %v3598_v18, %s3731_s13 }
0x29b5   :  { %v1689_v19 = vpop.permute.xlu1 %1688 }
0x29b6   :  { %v1691_v47 = vmul.f32 %v3596_v63, %v1689_v19 }
0x29b8   :  { %1698 = vrot.lane.b32.xlu1 %v1691_v47, %s3735_s19  ;;  %1702 = vrot.lane.b32.xlu0 %v1691_v47, %s3723_s7 }
0x29bc   :  { %1579 = vrot.lane.b32.xlu0 %v4119_v45, %s3734_s18 }
0x2a2a   :  { %v1699_v20 = vpop.permute.xlu1 %1698  ;;  %v1703_v21 = vpop.permute.xlu0 %1702 }
0x2a2b   :  { %1701 = vst.msk [vmem:[#allocation2] sm:$0x3] %vm328_vm7, %v1699_v20  ;;  %3137 = vmatmul.mubr.msk.f32.vlgmr.msra.gmra.mrb[12].mxu1 %vm1704_vm8, %v1703_v21 }
0x2a2c   :  { %3402 = vmatpush3.bf16.msra.mxu1 %v3815_v5  ;;  %3149 = vmatprep.mubr.msk.f32.mxu1 %vm3729_vm1, %v3730_v1 }
0x2a2d   :  { %3403 = vmatprep.subr.bf16.mxu1 %v3728_v0 }
0x2a2e   :  { %v1580_v22 = vpop.permute.xlu0 %1579 }
0x2a2f   :  { %1582 = vst.msk [vmem:[#allocation3] sm:$0x3] %vm54_vm4, %v1580_v22 }
0x2a30   :  { %3405 = vmatpush3.bf16.msra.mxu1 %v3822_v8 }
0x2a31   :  { %3147 = vmatprep.subr.mxu1 %v3730_v1 }
0x2a34   :  { %3148 = vmatpush3.msra.mxu1 %v4188_v23 }
0x2a35   :  { %3418 = vmatprep.subr.bf16.mxu1 %v3728_v0 }
0x2a36   :  { %v1859_v24 = vld [vmem:[#allocation3] sm:$0x3] }
0x2a37   :  { %1861 = vrot.lane.b32.xlu0 %v1859_v24, %s3723_s7 }
0x2aa9   :  { %v1862_v45 = vpop.permute.xlu0 %1861 }
0x2afe   :  { %v1773_v9 = vpop.f32.mrb[12].mxu1 }
0x2aff   :  { %v1774_v26 = vadd.f32 %v4196_v25, %v1773_v9  ;;  %v3138_v28 = vpop.f32.mrb[13].mxu1 }
0x2b01   :  { %1777 = vst.msk [vmem:[#allocation9] sm:$0x3] %vm97_vm2, %v1774_v26  ;;  %1778 = vst.msk [vmem:[#allocation2] sm:$0x3] %vm97_vm2, %v1774_v26 }
0x2b08   :  { %v1779_v29 = vld [vmem:[#allocation2] sm:$0x3] }
0x2b09   :  { %3150 = vmatmul.mubr.msk.f32.vlgmr.msra.gmra.mrb[14].mxu1 %vm100_vm3, %v1779_v29 }
0x2b0a   :  { %3420 = vmatpush3.bf16.msra.mxu1 %v4160_v15  ;;  %3179 = vmatprep.mubr.msk.f32.mxu1 %vm3729_vm1, %v3730_v1 }
0x2b0b   :  { %3421 = vmatprep.subr.bf16.mxu1 %v3728_v0 }
0x2b0e   :  { %3423 = vmatpush3.bf16.msra.mxu1 %v4166_v17 }
0x2b0f   :  { %3424 = vmatprep.subr.bf16.mxu1 %v3728_v0 }
0x2bdc   :  { %v1849_v30 = vpop.f32.mrb[14].mxu1 }
0x2bdd   :  { %v1850_v31 = vadd.f32 %v4114_v27, %v1849_v30  ;;  %v3151_v33 = vpop.f32.mrb[15].mxu1 }
0x2bdf   :  { %3599 = vtanh.f32 %v1850_v31  ;;  %v1853_v35 = vsub.f32 0.0, %v1850_v31 }
0x2be1   :  { %v1854_v37 = vmul.f32 1.442695, %v1853_v35 }
0x2be3   :  { %3601 = vpow2.f32 %v1854_v37 }
0x2be9   :  { %v3600_v34 = vpop.eup %3599 }
0x2bea   :  { %1866 = vrot.lane.b32.xlu1 %v3600_v34, %s3731_s13 }
0x2bed   :  { %v3602_v38 = vpop.eup %3601 }
0x2bee   :  { %v1856_v40 = vadd.f32 1.0, %v3602_v38 }
0x2bf0   :  { %3603 = vrcp.f32 %v1856_v40 }
0x2bfa   :  { %v3604_v41 = vpop.eup %3603 }
0x2bfb   :  { %v1864_v46 = vmul.f32 %v3604_v41, %v1862_v45 }
0x2c5c   :  { %v1867_v43 = vpop.permute.xlu1 %1866 }
0x2c5d   :  { %v1869_v44 = vmul.f32 %v3604_v41, %v1867_v43 }
0x2c5f   :  { %1871 = vrot.lane.b32.xlu1 %v1869_v44, %s3723_s7 }
0x2cd1   :  { %v1872_v48 = vpop.permute.xlu1 %1871 }
0x2cd2   :  { %v1874_v49 = vadd.f32 %v1872_v48, %v1864_v46 }
0x2cd4   :  { %3605 = vtanh.f32 %v1874_v49 }
0x2cde   :  { %v3606_v50 = vpop.eup %3605 }
0x2cdf   :  { %1877 = vrot.lane.b32.xlu0 %v3606_v50, %s3731_s13 }
0x2d51   :  { %v1878_v51 = vpop.permute.xlu0 %1877 }
0x2d52   :  { %v1880_v52 = vmul.f32 %v3604_v41, %v1878_v51 }
0x2d54   :  { %1887 = vrot.lane.b32.xlu1 %v1880_v52, %s3732_s14 }
0x2d58   :  { %1693 = vrot.lane.b32.xlu1 %v4148_v10, %s3734_s18 }
0x2dc6   :  { %v1888_v53 = vpop.permute.xlu1 %1887 }
0x2dc7   :  { %1890 = vst.msk [vmem:[#allocation2] sm:$0x3] %vm211_vm5, %v1888_v53 }
0x2dca   :  { %v1694_v54 = vpop.permute.xlu1 %1693 }
0x2dcb   :  { %1696 = vst.msk [vmem:[#allocation3 + $0x2] sm:$0x3] %vm54_vm4, %v1694_v54 }
0x2dce   :  { %v1891_v55 = vld [vmem:[#allocation2] sm:$0x3] }
0x2dcf   :  { %1893 = vrot.lane.b32.xlu0 %v1891_v55, %s3733_s15 }
0x2dd2   :  { %v1973_v56 = vld [vmem:[#allocation3 + $0x2] sm:$0x3] }
0x2dd3   :  { %1975 = vrot.lane.b32.xlu1 %v1973_v56, %s3723_s7 }
0x2e41   :  { %v1894_v57 = vpop.permute.xlu0 %1893 }
0x2e42   :  { %3169 = vmatmul.mubr.msk.f32.vlgmr.msra.gmra.mrb[16].mxu0 %vm217_vm6, %v1894_v57 }
0x2e43   :  { %3432 = vmatpush3.bf16.msra.mxu0 %v3860_v32  ;;  %3211 = vmatprep.mubr.msk.f32.mxu0 %vm3729_vm1, %v3730_v1 }
0x2e44   :  { %3433 = vmatprep.subr.bf16.mxu0 %v3728_v0 }
0x2e45   :  { %v1976_v10 = vpop.permute.xlu1 %1975 }
0x2e47   :  { %3435 = vmatpush3.bf16.msra.mxu0 %v3863_v36 }
0x2e48   :  { %3436 = vmatprep.subr.bf16.mxu0 %v3728_v0 }
0x2e4b   :  { %3438 = vmatpush3.bf16.msra.mxu0 %v3868_v39 }
0x2e4c   :  { %3439 = vmatprep.subr.bf16.mxu0 %v3728_v0 }
0x2e4f   :  { %3441 = vmatpush3.bf16.msra.mxu0 %v3872_v42 }
0x2e50   :  { %3454 = vmatprep.subr.bf16.mxu0 %v3728_v0 }
0x2f15   :  { %v1963_v58 = vpop.f32.mrb[16].mxu0 }
0x2f16   :  { %v1964_v59 = vadd.f32 %v4143_v11, %v1963_v58  ;;  %v3170_v60 = vpop.f32.mrb[17].mxu0 }
0x2f18   :  { %3607 = vtanh.f32 %v1964_v59  ;;  %v1967_v62 = vsub.f32 0.0, %v1964_v59 }
0x2f1a   :  { %v1968_v63 = vmul.f32 1.442695, %v1967_v62 }
0x2f1c   :  { %3609 = vpow2.f32 %v1968_v63 }
0x2f22   :  { %v3608_v61 = vpop.eup %3607 }
0x2f23   :  { %1980 = vrot.lane.b32.xlu0 %v3608_v61, %s3731_s13 }
0x2f26   :  { %v3610_v2 = vpop.eup %3609 }
0x2f27   :  { %v1970_v3 = vadd.f32 1.0, %v3610_v2 }
0x2f29   :  { %3611 = vrcp.f32 %v1970_v3 }
0x2f33   :  { %v3612_v4 = vpop.eup %3611 }
0x2f34   :  { %v1978_v12 = vmul.f32 %v3612_v4, %v1976_v10 }
0x2f95   :  { %v1981_v6 = vpop.permute.xlu0 %1980 }
0x2f96   :  { %v1983_v7 = vmul.f32 %v3612_v4, %v1981_v6 }
0x2f98   :  { %1985 = vrot.lane.b32.xlu0 %v1983_v7, %s3723_s7 }
0x300a   :  { %v1986_v13 = vpop.permute.xlu0 %1985 }
0x300b   :  { %v1988_v14 = vadd.f32 %v1986_v13, %v1978_v12 }
0x300d   :  { %3613 = vtanh.f32 %v1988_v14 }
0x3017   :  { %v3614_v16 = vpop.eup %3613 }
0x3018   :  { %1991 = vrot.lane.b32.xlu1 %v3614_v16, %s3731_s13 }
0x308a   :  { %v1992_v18 = vpop.permute.xlu1 %1991 }
0x308b   :  { %v1994_v19 = vmul.f32 %v3612_v4, %v1992_v18 }
0x308d   :  { %2001 = vrot.lane.b32.xlu1 %v1994_v19, %s3735_s19  ;;  %2005 = vrot.lane.b32.xlu0 %v1994_v19, %s3723_s7 }
0x3091   :  { %1882 = vrot.lane.b32.xlu0 %v1874_v49, %s3734_s18 }
0x30ff   :  { %v2002_v47 = vpop.permute.xlu1 %2001  ;;  %v2006_v20 = vpop.permute.xlu0 %2005 }
0x3100   :  { %2004 = vst.msk [vmem:[#allocation2] sm:$0x3] %vm328_vm7, %v2002_v47  ;;  %3180 = vmatmul.mubr.msk.f32.vlgmr.msra.gmra.mrb[16].mxu1 %vm1704_vm8, %v2006_v20 }
0x3101   :  { %3426 = vmatpush3.bf16.msra.mxu1 %v3815_v5  ;;  %3192 = vmatprep.mubr.msk.f32.mxu1 %vm3729_vm1, %v3730_v1 }
0x3102   :  { %3427 = vmatprep.subr.bf16.mxu1 %v3728_v0 }
0x3103   :  { %v1883_v21 = vpop.permute.xlu0 %1882 }
0x3104   :  { %1885 = vst.msk [vmem:[#allocation3] sm:$0x3] %vm54_vm4, %v1883_v21 }
0x3105   :  { %3429 = vmatpush3.bf16.msra.mxu1 %v3822_v8 }
0x3106   :  { %3190 = vmatprep.subr.mxu1 %v3730_v1 }
0x3109   :  { %3191 = vmatpush3.msra.mxu1 %v4188_v23 }
0x310a   :  { %3442 = vmatprep.subr.bf16.mxu1 %v3728_v0 }
0x310b   :  { %v2162_v22 = vld [vmem:[#allocation3] sm:$0x3] }
0x310c   :  { %2164 = vrot.lane.b32.xlu0 %v2162_v22, %s3723_s7 }
0x317e   :  { %v2165_v44 = vpop.permute.xlu0 %2164 }
0x31d3   :  { %v2075_v24 = vpop.f32.mrb[16].mxu1 }
0x31d4   :  { %v2076_v9 = vadd.f32 %v4196_v25, %v2075_v24  ;;  %v3181_v26 = vpop.f32.mrb[17].mxu1 }
0x31d6   :  { %2080 = vst.msk [vmem:[#allocation9 + $0x2] sm:$0x3] %vm97_vm2, %v2076_v9  ;;  %2081 = vst.msk [vmem:[#allocation2] sm:$0x3] %vm97_vm2, %v2076_v9 }
0x31dd   :  { %v2082_v28 = vld [vmem:[#allocation2] sm:$0x3] }
0x31de   :  { %3193 = vmatmul.mubr.msk.f32.vlgmr.msra.gmra.mrb[18].mxu1 %vm100_vm3, %v2082_v28 }
0x31df   :  { %3444 = vmatpush3.bf16.msra.mxu1 %v4160_v15  ;;  %3222 = vmatprep.mubr.msk.f32.mxu1 %vm3729_vm1, %v3730_v1 }
0x31e0   :  { %3445 = vmatprep.subr.bf16.mxu1 %v3728_v0 }
0x31e3   :  { %3447 = vmatpush3.bf16.msra.mxu1 %v4166_v17 }
0x31e4   :  { %3448 = vmatprep.subr.bf16.mxu1 %v3728_v0 }
0x32b1   :  { %v2152_v29 = vpop.f32.mrb[18].mxu1 }
0x32b2   :  { %v2153_v30 = vadd.f32 %v4114_v27, %v2152_v29  ;;  %v3194_v31 = vpop.f32.mrb[19].mxu1 }
0x32b4   :  { %3615 = vtanh.f32 %v2153_v30  ;;  %v2156_v34 = vsub.f32 0.0, %v2153_v30 }
0x32b6   :  { %v2157_v35 = vmul.f32 1.442695, %v2156_v34 }
0x32b8   :  { %3617 = vpow2.f32 %v2157_v35 }
0x32be   :  { %v3616_v33 = vpop.eup %3615 }
0x32bf   :  { %2169 = vrot.lane.b32.xlu1 %v3616_v33, %s3731_s13 }
0x32c2   :  { %v3618_v37 = vpop.eup %3617 }
0x32c3   :  { %v2159_v38 = vadd.f32 1.0, %v3618_v37 }
0x32c5   :  { %3619 = vrcp.f32 %v2159_v38 }
0x32cf   :  { %v3620_v40 = vpop.eup %3619 }
0x32d0   :  { %v2167_v45 = vmul.f32 %v3620_v40, %v2165_v44 }
0x3331   :  { %v2170_v41 = vpop.permute.xlu1 %2169 }
0x3332   :  { %v2172_v43 = vmul.f32 %v3620_v40, %v2170_v41 }
0x3334   :  { %2174 = vrot.lane.b32.xlu1 %v2172_v43, %s3723_s7 }
0x33a6   :  { %v2175_v46 = vpop.permute.xlu1 %2174 }
0x33a7   :  { %v2177_v48 = vadd.f32 %v2175_v46, %v2167_v45 }
0x33a9   :  { %3621 = vtanh.f32 %v2177_v48 }
0x33b3   :  { %v3622_v49 = vpop.eup %3621 }
0x33b4   :  { %2180 = vrot.lane.b32.xlu0 %v3622_v49, %s3731_s13 }
0x3426   :  { %v2181_v50 = vpop.permute.xlu0 %2180 }
0x3427   :  { %v2183_v51 = vmul.f32 %v3620_v40, %v2181_v50 }
0x3429   :  { %2190 = vrot.lane.b32.xlu1 %v2183_v51, %s3732_s14 }
0x342d   :  { %1996 = vrot.lane.b32.xlu1 %v1988_v14, %s3734_s18 }
0x349b   :  { %v2191_v52 = vpop.permute.xlu1 %2190 }
0x349c   :  { %2193 = vst.msk [vmem:[#allocation2] sm:$0x3] %vm211_vm5, %v2191_v52 }
0x349f   :  { %v1997_v53 = vpop.permute.xlu1 %1996 }
0x34a0   :  { %1999 = vst.msk [vmem:[#allocation3 + $0x2] sm:$0x3] %vm54_vm4, %v1997_v53 }
0x34a3   :  { %v2194_v54 = vld [vmem:[#allocation2] sm:$0x3] }
0x34a4   :  { %2196 = vrot.lane.b32.xlu0 %v2194_v54, %s3733_s15 }
0x34a7   :  { %v2276_v55 = vld [vmem:[#allocation3 + $0x2] sm:$0x3] }
0x34a8   :  { %2278 = vrot.lane.b32.xlu1 %v2276_v55, %s3723_s7 }
0x3516   :  { %v2197_v56 = vpop.permute.xlu0 %2196 }
0x3517   :  { %3212 = vmatmul.mubr.msk.f32.vlgmr.msra.gmra.mrb[18].mxu0 %vm217_vm6, %v2197_v56 }
0x3518   :  { %3456 = vmatpush3.bf16.msra.mxu0 %v3860_v32  ;;  %3254 = vmatprep.mubr.msk.f32.mxu0 %vm3729_vm1, %v3730_v1 }
0x3519   :  { %3457 = vmatprep.subr.bf16.mxu0 %v3728_v0 }
0x351c   :  { %3459 = vmatpush3.bf16.msra.mxu0 %v3863_v36 }
0x351d   :  { %3460 = vmatprep.subr.bf16.mxu0 %v3728_v0 }
0x3520   :  { %3462 = vmatpush3.bf16.msra.mxu0 %v3868_v39 }
0x3521   :  { %3463 = vmatprep.subr.bf16.mxu0 %v3728_v0 }
0x3524   :  { %3465 = vmatpush3.bf16.msra.mxu0 %v3872_v42  ;;  %v2279_v42 = vpop.permute.xlu1 %2278 }
0x35ea   :  { %v2266_v57 = vpop.f32.mrb[18].mxu0 }
0x35eb   :  { %v2267_v58 = vadd.f32 %v4143_v11, %v2266_v57  ;;  %v3213_v59 = vpop.f32.mrb[19].mxu0 }
0x35ed   :  { %3623 = vtanh.f32 %v2267_v58  ;;  %v2270_v60 = vsub.f32 0.0, %v2267_v58 }
0x35ef   :  { %v2271_v61 = vmul.f32 1.442695, %v2270_v60 }
0x35f1   :  { %3625 = vpow2.f32 %v2271_v61 }
0x35f7   :  { %v3624_v32 = vpop.eup %3623 }
0x35f8   :  { %2283 = vrot.lane.b32.xlu0 %v3624_v32, %s3731_s13 }
0x35fb   :  { %v3626_v36 = vpop.eup %3625 }
0x35fc   :  { %v2273_v62 = vadd.f32 1.0, %v3626_v36 }
0x35fe   :  { %3627 = vrcp.f32 %v2273_v62 }
0x3608   :  { %v3628_v63 = vpop.eup %3627 }
0x3609   :  { %v2281_v3 = vmul.f32 %v3628_v63, %v2279_v42 }
0x366a   :  { %v2284_v39 = vpop.permute.xlu0 %2283 }
0x366b   :  { %v2286_v2 = vmul.f32 %v3628_v63, %v2284_v39 }
0x366d   :  { %2288 = vrot.lane.b32.xlu0 %v2286_v2, %s3723_s7 }
0x36df   :  { %v2289_v4 = vpop.permute.xlu0 %2288 }
0x36e0   :  { %v2291_v6 = vadd.f32 %v2289_v4, %v2281_v3 }
0x36e2   :  { %3629 = vtanh.f32 %v2291_v6 }
0x36ec   :  { %v3630_v7 = vpop.eup %3629 }
0x36ed   :  { %2294 = vrot.lane.b32.xlu1 %v3630_v7, %s3731_s13 }
0x375f   :  { %v2295_v10 = vpop.permute.xlu1 %2294 }
0x3760   :  { %v2297_v12 = vmul.f32 %v3628_v63, %v2295_v10 }
0x3762   :  { %2304 = vrot.lane.b32.xlu1 %v2297_v12, %s3735_s19  ;;  %2308 = vrot.lane.b32.xlu0 %v2297_v12, %s3723_s7 }
0x3766   :  { %2185 = vrot.lane.b32.xlu0 %v2177_v48, %s3734_s18 }
0x37d4   :  { %v2305_v13 = vpop.permute.xlu1 %2304  ;;  %v2309_v14 = vpop.permute.xlu0 %2308 }
0x37d5   :  { %2307 = vst.msk [vmem:[#allocation2] sm:$0x3] %vm328_vm7, %v2305_v13  ;;  %3223 = vmatmul.mubr.msk.f32.vlgmr.msra.gmra.mrb[20].mxu1 %vm1704_vm8, %v2309_v14 }
0x37d6   :  { %3450 = vmatpush3.bf16.msra.mxu1 %v3815_v5  ;;  %3235 = vmatprep.mubr.msk.f32.mxu1 %vm3729_vm1, %v3730_v1 }
0x37d7   :  { %3451 = vmatprep.subr.bf16.mxu1 %v3728_v0 }
0x37d8   :  { %v2186_v16 = vpop.permute.xlu0 %2185 }
0x37d9   :  { %2188 = vst.msk [vmem:[#allocation3] sm:$0x3] %vm54_vm4, %v2186_v16 }
0x37da   :  { %3453 = vmatpush3.bf16.msra.mxu1 %v3822_v8 }
0x37db   :  { %3233 = vmatprep.subr.mxu1 %v3730_v1 }
0x37de   :  { %3234 = vmatpush3.msra.mxu1 %v4188_v23 }
0x37df   :  { %3466 = vmatprep.subr.bf16.mxu1 %v3728_v0 }
0x37e0   :  { %v2465_v18 = vld [vmem:[#allocation3] sm:$0x3] }
0x37e1   :  { %2467 = vrot.lane.b32.xlu0 %v2465_v18, %s3723_s7 }
0x38a8   :  { %v2378_v5 = vpop.f32.mrb[20].mxu1 }
0x38a9   :  { %v2379_v19 = vadd.f32 %v4196_v25, %v2378_v5  ;;  %v3224_v47 = vpop.f32.mrb[21].mxu1 }
0x38ab   :  { %2383 = vst.msk [vmem:[#allocation9 + $0x4] sm:$0x3] %vm97_vm2, %v2379_v19  ;;  %2384 = vst.msk [vmem:[#allocation2] sm:$0x3] %vm97_vm2, %v2379_v19 }
0x38b2   :  { %v2385_v20 = vld [vmem:[#allocation2] sm:$0x3] }
0x38b3   :  { %3236 = vmatmul.mubr.msk.f32.vlgmr.msra.gmra.mrb[22].mxu1 %vm100_vm3, %v2385_v20 }
0x38b4   :  { %3468 = vmatpush3.bf16.msra.mxu1 %v4160_v15  ;;  %3265 = vmatprep.mubr.msk.f32.mxu1 %vm3729_vm1, %v3730_v1 }
0x38b5   :  { %3469 = vmatprep.subr.bf16.mxu1 %v3728_v0  ;;  %v2468_v0 = vpop.permute.xlu0 %2467 }
0x38b8   :  { %3471 = vmatpush3.bf16.msra.mxu1 %v4166_v17 }
0x3986   :  { %v2455_v8 = vpop.f32.mrb[22].mxu1 }
0x3987   :  { %v2456_v23 = vadd.f32 %v4114_v27, %v2455_v8  ;;  %v3237_v21 = vpop.f32.mrb[23].mxu1 }
0x3989   :  { %3631 = vtanh.f32 %v2456_v23  ;;  %v2459_v24 = vsub.f32 0.0, %v2456_v23 }
0x398b   :  { %v2460_v9 = vmul.f32 1.442695, %v2459_v24 }
0x398d   :  { %3633 = vpow2.f32 %v2460_v9 }
0x3993   :  { %v3632_v22 = vpop.eup %3631 }
0x3994   :  { %2472 = vrot.lane.b32.xlu1 %v3632_v22, %s3731_s13 }
0x3997   :  { %v3634_v26 = vpop.eup %3633 }
0x3998   :  { %v2462_v15 = vadd.f32 1.0, %v3634_v26 }
0x399a   :  { %3635 = vrcp.f32 %v2462_v15 }
0x39a4   :  { %v3636_v28 = vpop.eup %3635 }
0x39a5   :  { %v2470_v17 = vmul.f32 %v3636_v28, %v2468_v0 }
0x3a06   :  { %v2473_v1 = vpop.permute.xlu1 %2472 }
0x3a07   :  { %v2475_v29 = vmul.f32 %v3636_v28, %v2473_v1 }
0x3a09   :  { %2477 = vrot.lane.b32.xlu1 %v2475_v29, %s3723_s7 }
0x3a7b   :  { %v2478_v30 = vpop.permute.xlu1 %2477 }
0x3a7c   :  { %v2480_v27 = vadd.f32 %v2478_v30, %v2470_v17 }
0x3a7e   :  { %3637 = vtanh.f32 %v2480_v27 }
0x3a88   :  { %v3638_v31 = vpop.eup %3637 }
0x3a89   :  { %2483 = vrot.lane.b32.xlu0 %v3638_v31, %s3731_s13 }
0x3afb   :  { %v2484_v33 = vpop.permute.xlu0 %2483 }
0x3afc   :  { %v2486_v34 = vmul.f32 %v3636_v28, %v2484_v33 }
0x3afe   :  { %2493 = vrot.lane.b32.xlu1 %v2486_v34, %s3732_s14 }
0x3b02   :  { %2299 = vrot.lane.b32.xlu1 %v2291_v6, %s3734_s18 }
0x3b70   :  { %v2494_v35 = vpop.permute.xlu1 %2493 }
0x3b71   :  { %2496 = vst.msk [vmem:[#allocation2] sm:$0x3] %vm211_vm5, %v2494_v35 }
0x3b74   :  { %v2300_v37 = vpop.permute.xlu1 %2299 }
0x3b75   :  { %2302 = vst.msk [vmem:[#allocation3 + $0x2] sm:$0x3] %vm54_vm4, %v2300_v37 }
0x3b78   :  { %v2497_v38 = vld [vmem:[#allocation2] sm:$0x3] }
0x3b79   :  { %2499 = vrot.lane.b32.xlu0 %v2497_v38, %s3733_s15 }
0x3b7c   :  { %v2579_v40 = vld [vmem:[#allocation3 + $0x2] sm:$0x3] }
0x3b7d   :  { %2581 = vrot.lane.b32.xlu1 %v2579_v40, %s3723_s7 }
0x3beb   :  { %v2500_v41 = vpop.permute.xlu0 %2499 }
0x3bec   :  { %3255 = vmatmul.mubr.msk.f32.vlgmr.msra.gmra.mrb[20].mxu0 %vm217_vm6, %v2500_v41 }
0x3bef   :  { %v2582_v55 = vpop.permute.xlu1 %2581 }
0x3cbf   :  { %v2569_v43 = vpop.f32.mrb[20].mxu0 }
0x3cc0   :  { %v2570_v44 = vadd.f32 %v4143_v11, %v2569_v43  ;;  %v3256_v45 = vpop.f32.mrb[21].mxu0 }
0x3cc2   :  { %3639 = vtanh.f32 %v2570_v44  ;;  %v2573_v48 = vsub.f32 0.0, %v2570_v44 }
0x3cc4   :  { %v2574_v49 = vmul.f32 1.442695, %v2573_v48 }
0x3cc6   :  { %3641 = vpow2.f32 %v2574_v49 }
0x3ccc   :  { %v3640_v46 = vpop.eup %3639 }
0x3ccd   :  { %2586 = vrot.lane.b32.xlu0 %v3640_v46, %s3731_s13 }
0x3cd0   :  { %v3642_v50 = vpop.eup %3641 }
0x3cd1   :  { %v2576_v51 = vadd.f32 1.0, %v3642_v50 }
0x3cd3   :  { %3643 = vrcp.f32 %v2576_v51 }
0x3cdd   :  { %v3644_v52 = vpop.eup %3643 }
0x3cde   :  { %v2584_v56 = vmul.f32 %v3644_v52, %v2582_v55 }
0x3d3f   :  { %v2587_v53 = vpop.permute.xlu0 %2586 }
0x3d40   :  { %v2589_v54 = vmul.f32 %v3644_v52, %v2587_v53 }
0x3d42   :  { %2591 = vrot.lane.b32.xlu0 %v2589_v54, %s3723_s7 }
0x3db4   :  { %v2592_v57 = vpop.permute.xlu0 %2591 }
0x3db5   :  { %v2594_v11 = vadd.f32 %v2592_v57, %v2584_v56 }
0x3db7   :  { %3645 = vtanh.f32 %v2594_v11 }
0x3dc1   :  { %v3646_v58 = vpop.eup %3645 }
0x3dc2   :  { %2597 = vrot.lane.b32.xlu1 %v3646_v58, %s3731_s13 }
0x3e34   :  { %v2598_v59 = vpop.permute.xlu1 %2597 }
0x3e35   :  { %v2600_v32 = vmul.f32 %v3644_v52, %v2598_v59 }
0x3e37   :  { %2607 = vrot.lane.b32.xlu1 %v2600_v32, %s3735_s19  ;;  %2611 = vrot.lane.b32.xlu0 %v2600_v32, %s3723_s7 }
0x3e3b   :  { %2602 = vrot.lane.b32.xlu1 %v2594_v11, %s3734_s18  ;;  %2488 = vrot.lane.b32.xlu0 %v2480_v27, %s3734_s18 }
0x3ea9   :  { %v2608_v60 = vpop.permute.xlu1 %2607  ;;  %v2612_v61 = vpop.permute.xlu0 %2611 }
0x3eaa   :  { %2610 = vst.msk [vmem:[#allocation2] sm:$0x3] %vm328_vm7, %v2608_v60  ;;  %3266 = vmatmul.mubr.msk.f32.vlgmr.msra.gmra.mrb[24].mxu1 %vm1704_vm8, %v2612_v61 }
0x3ead   :  { %v2603_v36 = vpop.permute.xlu1 %2602  ;;  %v2489_v62 = vpop.permute.xlu0 %2488 }
0x3eae   :  { %2605 = vst.msk [vmem:[#allocation3 + $0x2] sm:$0x3] %vm54_vm4, %v2603_v36  ;;  %2491 = vst.msk [vmem:[#allocation3] sm:$0x3] %vm54_vm4, %v2489_v62 }
0x3f7d   :  { %v2681_v63 = vpop.f32.mrb[24].mxu1 }
0x3f7e   :  { %v2682_v39 = vadd.f32 %v4196_v25, %v2681_v63  ;;  %v3267_v2 = vpop.f32.mrb[25].mxu1 }
0x3f80   :  { %2686 = vst.msk [vmem:[#allocation9 + $0x6] sm:$0x3] %vm97_vm2, %v2682_v39  ;;  %2687 = vst.msk [vmem:[#allocation2] sm:$0x3] %vm97_vm2, %v2682_v39 }
0x3f81   :  { %3705 = shalt.err (!%p3702_p6)
}
0x3f82   :  { %s3706_s13 = scalar_lea.hbm %s4354_s6, 128 }
0x3f83   :  { %p3707_p7 = scmp.ne.s32.totalorder %s4354_s6, %s3706_s13  ;;  %p3710_p8 = scmp.lt.u32.totalorder %s3706_s13, %s4354_s6 }
0x3f85   :  { %p3712_p9 = pnand %p3710_p8, %p3707_p7 }
0x3f87   :  { %3715 = shalt.err (!%p3712_p9)
}
0x3f88   :  { %2699 = dma.vmem_to_hbm [thread:$0]  %s2694_s5, 128, %s4354_s6, [#allocation6], %s3723_s7, %s3723_s7, %s3724_s8  }
0x3f89   :  { %3720 = dma.done.wait [#allocation6], 128  }
0x3f8a   :  { %3721 = vsyncadd [#allocation6], 4294967168 }
0x3f8b   :  { %2703 = vsyncpa [#allocation5], 1 }
0x3f8c   :  { %2704 = vsyncpa [#allocation8], 1 }
0x3f8d   :  { %2705 = vsyncpa [#allocation6], 1 }

</bundles_post_ra>
